<compile_context>
chip_gen: v7x
topology: tpu7x:2x2x1
jax: 0.10.0
libtpu: 0.0.40
codegen_flags: <defaults>
</compile_context>

<pallas_src>
from functools import partial

import jax
import jax.numpy as jnp
from jax.experimental import pallas as pl
from jax.experimental.pallas import tpu as pltpu

LN_EPS = 1e-5


def _gelu_tanh(x):
    # tanh-approximate GELU (lowers cleanly on TPU).
    # TODO(synk): torch nn.GELU default is the exact erf form; the tanh
    # approximation differs by ~1e-3 relative.
    c = jnp.sqrt(2.0 / jnp.pi).astype(x.dtype)
    return 0.5 * x * (1.0 + jnp.tanh(c * (x + 0.044715 * x * x * x)))


def _device_kind():
    try:
        return jax.devices()[0].device_kind.lower()
    except Exception:
        return ""


def _use_bf16_gelu():
    # bf16 VALU/EUP exists on v6e/v7x; on v5e (and older) bf16 elementwise math
    # is not faster, so keep the GELU in f32 there.
    kind = _device_kind()
    return ("v6" in kind) or ("v7" in kind) or ("7x" in kind)


def _vmem_limit_bytes():
    # ~75% of physical per-core VMEM, capped at 100 MiB:
    #   v5e/v6e (128 MiB physical) -> 96 MiB;  v7x (64 MiB physical) -> 48 MiB.
    cap = None
    try:
        cap = getattr(pltpu.get_tpu_info(), "vmem_capacity_bytes", None)
    except Exception:
        cap = None
    if cap is None:
        kind = _device_kind()
        cap = 64 * 1024 * 1024 if (("v7" in kind) or ("7x" in kind)) else 128 * 1024 * 1024
    return min(int(cap * 3 // 4), 100 * 1024 * 1024)


def _const_spec(shape, *, single_buffer=False):
    """BlockSpec for a grid-invariant (VMEM-resident) operand."""
    idx = lambda i: tuple(0 for _ in shape)
    if single_buffer:
        try:
            return pl.BlockSpec(shape, idx, pipeline_mode=pl.Buffered(1))
        except TypeError:
            pass  # older jax without pipeline_mode kwarg; fall back to default
    return pl.BlockSpec(shape, idx)


def _prenorm_residual_kernel(x_ref, g_ref, beta_ref,
                             w1_ref, b1_ref, w2_ref, b2_ref,
                             o_ref, *, n_chunks, gelu_dtype):
    # x_ref: (row_tile, D) tile of rows.  w1/w2 are bf16; everything else f32.
    row_tile = x_ref.shape[0]
    chunk = row_tile // n_chunks

    # Hoist grid-invariant loads out of the chunk loop.
    g = g_ref[...]
    beta = beta_ref[...]
    b1 = b1_ref[...]
    b2 = b2_ref[...]
    w1 = w1_ref[...]
    w2 = w2_ref[...]

    # Statically unrolled sub-chunks: independent LN -> dot1 -> GELU -> dot2
    # chains let the LLO scheduler overlap MXU work of one chunk with the
    # VPU/EUP (LN / GELU) work of its neighbours.
    for c in range(n_chunks):
        r0 = c * chunk
        x = x_ref[r0:r0 + chunk, :].astype(jnp.float32)

        # --- LayerNorm over the last dim (f32) ---
        mean = jnp.mean(x, axis=-1, keepdims=True)
        cen = x - mean
        var = jnp.mean(cen * cen, axis=-1, keepdims=True)
        xn = cen * jax.lax.rsqrt(var + LN_EPS)
        xn = xn * g + beta

        # --- fn: Linear -> GELU -> Linear.  bf16 MXU matmuls, f32 accum ---
        h = jnp.dot(xn.astype(jnp.bfloat16), w1,
                    preferred_element_type=jnp.float32) + b1
        h = _gelu_tanh(h.astype(gelu_dtype))       # bf16 on v6e/v7x, f32 on v5e
        y = jnp.dot(h.astype(jnp.bfloat16), w2,
                    preferred_element_type=jnp.float32) + b2

        # --- residual ---
        o_ref[r0:r0 + chunk, :] = (y + x).astype(o_ref.dtype)


def prenorm_residual(x, gamma, beta, w1, b1, w2, b2, *,
                     row_tile=512, chunk_rows=128):
    """x: (B, S, D). Params: gamma/beta (D,), w1 (D,H), b1 (H,), w2 (H,D), b2 (D,).

    w1/w2 should already be stored in bf16 (convert once at init, not per call).
    x may be f32 or bf16; LayerNorm / residual math is done in f32 in-kernel.
    """
    B, S, D = x.shape
    H = w1.shape[1]
    rows = B * S
    x2 = x.reshape(rows, D)

    # Cast weights only if the caller did not pre-convert (prefer once-at-init).
    if w1.dtype != jnp.bfloat16:
        w1 = w1.astype(jnp.bfloat16)
    if w2.dtype != jnp.bfloat16:
        w2 = w2.astype(jnp.bfloat16)

    # Small 1-D params as (1, N) f32 rows.
    gamma2 = gamma.reshape(1, D).astype(jnp.float32)
    beta2 = beta.reshape(1, D).astype(jnp.float32)
    b1_2 = b1.reshape(1, H).astype(jnp.float32)
    b2_2 = b2.reshape(1, D).astype(jnp.float32)

    # Tile selection: full-extent block for small problems (no padding copy);
    # otherwise keep row_tile and let Pallas handle the ragged last block
    # (OOB output rows are discarded; rows are independent, so this is safe).
    if rows <= row_tile:
        row_tile = rows
    grid_m = pl.cdiv(rows, row_tile)

    # Intra-tile sub-chunking (2-4 chunks of ~chunk_rows rows each).
    if row_tile > chunk_rows and row_tile % chunk_rows == 0:
        n_chunks = min(row_tile // chunk_rows, 4)
    else:
        n_chunks = 1
    if row_tile % n_chunks != 0:
        n_chunks = 1

    gelu_dtype = jnp.bfloat16 if _use_bf16_gelu() else jnp.float32

    kernel = partial(_prenorm_residual_kernel,
                     n_chunks=n_chunks, gelu_dtype=gelu_dtype)

    out = pl.pallas_call(
        kernel,
        out_shape=jax.ShapeDtypeStruct((rows, D), x.dtype),
        grid=(grid_m,),
        in_specs=[
            pl.BlockSpec((row_tile, D), lambda i: (i, 0)),       # x rows (streamed)
            _const_spec((1, D)),                                 # gamma
            _const_spec((1, D)),                                 # beta
            _const_spec((D, H), single_buffer=True),             # w1 (bf16, resident)
            _const_spec((1, H)),                                 # b1
            _const_spec((H, D), single_buffer=True),             # w2 (bf16, resident)
            _const_spec((1, D)),                                 # b2
        ],
        out_specs=pl.BlockSpec((row_tile, D), lambda i: (i, 0)),
        compiler_params=pltpu.CompilerParams(
            dimension_semantics=("parallel",),       # rows shard across TCs (v7x)
            vmem_limit_bytes=_vmem_limit_bytes(),    # per-generation headroom
        ),
    )(x2, gamma2, beta2, w1, b1_2, w2, b2_2)

    return out.reshape(B, S, D)


def _reference(x, gamma, beta, w1, b1, w2, b2):
    # Mirrors the kernel's precision policy (bf16 matmul operands, f32 accum,
    # generation-gated GELU dtype).
    gelu_dtype = jnp.bfloat16 if _use_bf16_gelu() else jnp.float32
    x32 = x.astype(jnp.float32)
    mean = jnp.mean(x32, axis=-1, keepdims=True)
    var = jnp.mean((x32 - mean) ** 2, axis=-1, keepdims=True)
    xn = (x32 - mean) * jax.lax.rsqrt(var + LN_EPS)
    xn = xn * gamma.astype(jnp.float32) + beta.astype(jnp.float32)
    h = jnp.dot(xn.astype(jnp.bfloat16), w1.astype(jnp.bfloat16),
                preferred_element_type=jnp.float32) + b1.astype(jnp.float32)
    h = _gelu_tanh(h.astype(gelu_dtype))
    y = jnp.dot(h.astype(jnp.bfloat16), w2.astype(jnp.bfloat16),
                preferred_element_type=jnp.float32) + b2.astype(jnp.float32)
    return (y + x32).astype(x.dtype)


if __name__ == "__main__":
    # Small but lane-dense shapes: D, H multiples of 128 keep stores unmasked.
    B, S, D, H = 2, 128, 256, 512   # batch, seq (tokens), dim, mlp hidden

    key = jax.random.PRNGKey(0)
    kx, kg, kb, k1, k2 = jax.random.split(key, 5)

    x = jax.random.normal(kx, (B, S, D), dtype=jnp.float32)

    # LayerNorm params (PyTorch init is ones/zeros; lightly randomized here so
    # the correctness check actually exercises the affine terms).
    gamma = 1.0 + 0.1 * jax.random.normal(kg, (D,), jnp.float32)
    beta = 0.05 * jax.random.normal(kb, (D,), jnp.float32)

    # fn (FeedForward) params, converted to bf16 ONCE at init (not per call).
    w1 = (jax.random.normal(k1, (D, H), jnp.float32) *
          (1.0 / jnp.sqrt(D))).astype(jnp.bfloat16)
    b1 = jnp.zeros((H,), jnp.float32)
    w2 = (jax.random.normal(k2, (H, D), jnp.float32) *
          (1.0 / jnp.sqrt(H))).astype(jnp.bfloat16)
    b2 = jnp.zeros((D,), jnp.float32)

    out = prenorm_residual(x, gamma, beta, w1, b1, w2, b2)
    out = jax.block_until_ready(out)

    ref = _reference(x, gamma, beta, w1, b1, w2, b2)
    assert out.shape == x.shape and out.dtype == x.dtype
    assert jnp.allclose(out, ref, atol=2e-2, rtol=2e-2), "mismatch vs reference"

    print("KERNEL_OK")
</pallas_src>

<mosaic_0001>
module attributes {stable_mosaic.version = 11 : i64} {
  func.func @_prenorm_residual_kernel(%arg0: i32, %arg1: memref<256x256xf32, #tpu.memory_space<vmem>>, %arg2: memref<1x256xf32, #tpu.memory_space<vmem>>, %arg3: memref<1x256xf32, #tpu.memory_space<vmem>>, %arg4: memref<256x512xbf16, #tpu.memory_space<vmem>>, %arg5: memref<1x512xf32, #tpu.memory_space<vmem>>, %arg6: memref<512x256xbf16, #tpu.memory_space<vmem>>, %arg7: memref<1x256xf32, #tpu.memory_space<vmem>>, %arg8: memref<256x256xf32, #tpu.memory_space<vmem>>) attributes {dimension_semantics = [#tpu.dimension_semantics<parallel>], iteration_bounds = array<i64: 1>, scalar_prefetch = 0 : i64, scratch_operands = 0 : i64, tpu.core_type = #tpu.core_type<tc>, window_params = [{transform_indices = @transform_0, window_bounds = array<i64: 256, 256>}, {pipeline_mode = #tpu.pipeline_mode<synchronous>, transform_indices = @transform_1, window_bounds = array<i64: 1, 256>}, {pipeline_mode = #tpu.pipeline_mode<synchronous>, transform_indices = @transform_2, window_bounds = array<i64: 1, 256>}, {pipeline_mode = #tpu.pipeline_mode<synchronous>, transform_indices = @transform_3, window_bounds = array<i64: 256, 512>}, {pipeline_mode = #tpu.pipeline_mode<synchronous>, transform_indices = @transform_4, window_bounds = array<i64: 1, 512>}, {pipeline_mode = #tpu.pipeline_mode<synchronous>, transform_indices = @transform_5, window_bounds = array<i64: 512, 256>}, {pipeline_mode = #tpu.pipeline_mode<synchronous>, transform_indices = @transform_6, window_bounds = array<i64: 1, 256>}, {transform_indices = @transform_7, window_bounds = array<i64: 256, 256>}]} {
    %c0 = arith.constant 0 : index
    %c0_0 = arith.constant 0 : index
    %0 = vector.load %arg2[%c0, %c0_0] : memref<1x256xf32, #tpu.memory_space<vmem>>, vector<1x256xf32>
    %c0_1 = arith.constant 0 : index
    %c0_2 = arith.constant 0 : index
    %1 = vector.load %arg3[%c0_1, %c0_2] : memref<1x256xf32, #tpu.memory_space<vmem>>, vector<1x256xf32>
    %c0_3 = arith.constant 0 : index
    %c0_4 = arith.constant 0 : index
    %2 = vector.load %arg5[%c0_3, %c0_4] : memref<1x512xf32, #tpu.memory_space<vmem>>, vector<1x512xf32>
    %c0_5 = arith.constant 0 : index
    %c0_6 = arith.constant 0 : index
    %3 = vector.load %arg7[%c0_5, %c0_6] : memref<1x256xf32, #tpu.memory_space<vmem>>, vector<1x256xf32>
    %c0_7 = arith.constant 0 : index
    %c0_8 = arith.constant 0 : index
    %4 = vector.load %arg4[%c0_7, %c0_8] : memref<256x512xbf16, #tpu.memory_space<vmem>>, vector<256x512xbf16>
    %c0_9 = arith.constant 0 : index
    %c0_10 = arith.constant 0 : index
    %5 = vector.load %arg6[%c0_9, %c0_10] : memref<512x256xbf16, #tpu.memory_space<vmem>>, vector<512x256xbf16>
    %c0_11 = arith.constant 0 : index
    %c0_12 = arith.constant 0 : index
    %6 = vector.load %arg1[%c0_11, %c0_12] : memref<256x256xf32, #tpu.memory_space<vmem>>, vector<128x256xf32>
    %cst = arith.constant dense<0.000000e+00> : vector<128xf32>
    %7 = vector.multi_reduction <add>, %6, %cst [1] : vector<128x256xf32> to vector<128xf32>
    %8 = vector.shape_cast %7 : vector<128xf32> to vector<128x1xf32>
    %cst_13 = arith.constant 2.560000e+02 : f32
    %9 = vector.broadcast %cst_13 : f32 to vector<128x1xf32>
    %10 = arith.divf %8, %9 : vector<128x1xf32>
    %11 = vector.broadcast %10 : vector<128x1xf32> to vector<128x256xf32>
    %12 = arith.subf %6, %11 : vector<128x256xf32>
    %13 = arith.mulf %12, %12 : vector<128x256xf32>
    %cst_14 = arith.constant dense<0.000000e+00> : vector<128xf32>
    %14 = vector.multi_reduction <add>, %13, %cst_14 [1] : vector<128x256xf32> to vector<128xf32>
    %15 = vector.shape_cast %14 : vector<128xf32> to vector<128x1xf32>
    %cst_15 = arith.constant 2.560000e+02 : f32
    %16 = vector.broadcast %cst_15 : f32 to vector<128x1xf32>
    %17 = arith.divf %15, %16 : vector<128x1xf32>
    %cst_16 = arith.constant 9.99999974E-6 : f32
    %18 = vector.broadcast %cst_16 : f32 to vector<128x1xf32>
    %19 = arith.addf %17, %18 : vector<128x1xf32>
    %20 = math.rsqrt %19 : vector<128x1xf32>
    %21 = vector.broadcast %20 : vector<128x1xf32> to vector<128x256xf32>
    %22 = arith.mulf %12, %21 : vector<128x256xf32>
    %23 = vector.broadcast %0 : vector<1x256xf32> to vector<128x256xf32>
    %24 = arith.mulf %22, %23 : vector<128x256xf32>
    %25 = vector.broadcast %1 : vector<1x256xf32> to vector<128x256xf32>
    %26 = arith.addf %24, %25 : vector<128x256xf32>
    %27 = arith.truncf %26 : vector<128x256xf32> to vector<128x256xbf16>
    %cst_17 = arith.constant dense<0.000000e+00> : vector<128x512xf32>
    %28 = tpu.matmul %27, %4, %cst_17 {dimension_numbers = #tpu.dot_dimension_numbers<[1], [0], [0], [1], [0, 0, 1, 1], [], []>} : vector<128x256xbf16>, vector<256x512xbf16>, vector<128x512xf32> -> vector<128x512xf32>
    %29 = vector.broadcast %2 : vector<1x512xf32> to vector<128x512xf32>
    %30 = arith.addf %28, %29 : vector<128x512xf32>
    %cst_18 = arith.constant 0.636619746 : f32
    %31 = math.sqrt %cst_18 : f32
    %cst_19 = arith.constant 5.000000e-01 : f32
    %32 = vector.broadcast %cst_19 : f32 to vector<128x512xf32>
    %33 = arith.mulf %32, %30 : vector<128x512xf32>
    %cst_20 = arith.constant 4.471500e-02 : f32
    %34 = vector.broadcast %cst_20 : f32 to vector<128x512xf32>
    %35 = arith.mulf %34, %30 : vector<128x512xf32>
    %36 = arith.mulf %35, %30 : vector<128x512xf32>
    %37 = arith.mulf %36, %30 : vector<128x512xf32>
    %38 = arith.addf %30, %37 : vector<128x512xf32>
    %39 = vector.broadcast %31 : f32 to vector<128x512xf32>
    %40 = arith.mulf %39, %38 : vector<128x512xf32>
    %41 = math.tanh %40 : vector<128x512xf32>
    %cst_21 = arith.constant 1.000000e+00 : f32
    %42 = vector.broadcast %cst_21 : f32 to vector<128x512xf32>
    %43 = arith.addf %42, %41 : vector<128x512xf32>
    %44 = arith.mulf %33, %43 : vector<128x512xf32>
    %45 = arith.truncf %44 : vector<128x512xf32> to vector<128x512xbf16>
    %cst_22 = arith.constant dense<0.000000e+00> : vector<128x256xf32>
    %46 = tpu.matmul %45, %5, %cst_22 {dimension_numbers = #tpu.dot_dimension_numbers<[1], [0], [0], [1], [0, 0, 1, 1], [], []>} : vector<128x512xbf16>, vector<512x256xbf16>, vector<128x256xf32> -> vector<128x256xf32>
    %47 = vector.broadcast %3 : vector<1x256xf32> to vector<128x256xf32>
    %48 = arith.addf %46, %47 : vector<128x256xf32>
    %49 = arith.addf %48, %6 : vector<128x256xf32>
    %c0_23 = arith.constant 0 : index
    %c0_24 = arith.constant 0 : index
    %50 = vector.load %arg8[%c0_23, %c0_24] : memref<256x256xf32, #tpu.memory_space<vmem>>, vector<128x256xf32>
    tpu.vector_store %arg8[%c0_23, %c0_24], %49 {strides = array<i32>} : memref<256x256xf32, #tpu.memory_space<vmem>>, vector<128x256xf32>,
    %c128 = arith.constant 128 : index
    %c0_25 = arith.constant 0 : index
    %51 = vector.load %arg1[%c128, %c0_25] : memref<256x256xf32, #tpu.memory_space<vmem>>, vector<128x256xf32>
    %cst_26 = arith.constant dense<0.000000e+00> : vector<128xf32>
    %52 = vector.multi_reduction <add>, %51, %cst_26 [1] : vector<128x256xf32> to vector<128xf32>
    %53 = vector.shape_cast %52 : vector<128xf32> to vector<128x1xf32>
    %cst_27 = arith.constant 2.560000e+02 : f32
    %54 = vector.broadcast %cst_27 : f32 to vector<128x1xf32>
    %55 = arith.divf %53, %54 : vector<128x1xf32>
    %56 = vector.broadcast %55 : vector<128x1xf32> to vector<128x256xf32>
    %57 = arith.subf %51, %56 : vector<128x256xf32>
    %58 = arith.mulf %57, %57 : vector<128x256xf32>
    %cst_28 = arith.constant dense<0.000000e+00> : vector<128xf32>
    %59 = vector.multi_reduction <add>, %58, %cst_28 [1] : vector<128x256xf32> to vector<128xf32>
    %60 = vector.shape_cast %59 : vector<128xf32> to vector<128x1xf32>
    %cst_29 = arith.constant 2.560000e+02 : f32
    %61 = vector.broadcast %cst_29 : f32 to vector<128x1xf32>
    %62 = arith.divf %60, %61 : vector<128x1xf32>
    %cst_30 = arith.constant 9.99999974E-6 : f32
    %63 = vector.broadcast %cst_30 : f32 to vector<128x1xf32>
    %64 = arith.addf %62, %63 : vector<128x1xf32>
    %65 = math.rsqrt %64 : vector<128x1xf32>
    %66 = vector.broadcast %65 : vector<128x1xf32> to vector<128x256xf32>
    %67 = arith.mulf %57, %66 : vector<128x256xf32>
    %68 = vector.broadcast %0 : vector<1x256xf32> to vector<128x256xf32>
    %69 = arith.mulf %67, %68 : vector<128x256xf32>
    %70 = vector.broadcast %1 : vector<1x256xf32> to vector<128x256xf32>
    %71 = arith.addf %69, %70 : vector<128x256xf32>
    %72 = arith.truncf %71 : vector<128x256xf32> to vector<128x256xbf16>
    %cst_31 = arith.constant dense<0.000000e+00> : vector<128x512xf32>
    %73 = tpu.matmul %72, %4, %cst_31 {dimension_numbers = #tpu.dot_dimension_numbers<[1], [0], [0], [1], [0, 0, 1, 1], [], []>} : vector<128x256xbf16>, vector<256x512xbf16>, vector<128x512xf32> -> vector<128x512xf32>
    %74 = vector.broadcast %2 : vector<1x512xf32> to vector<128x512xf32>
    %75 = arith.addf %73, %74 : vector<128x512xf32>
    %cst_32 = arith.constant 0.636619746 : f32
    %76 = math.sqrt %cst_32 : f32
    %cst_33 = arith.constant 5.000000e-01 : f32
    %77 = vector.broadcast %cst_33 : f32 to vector<128x512xf32>
    %78 = arith.mulf %77, %75 : vector<128x512xf32>
    %cst_34 = arith.constant 4.471500e-02 : f32
    %79 = vector.broadcast %cst_34 : f32 to vector<128x512xf32>
    %80 = arith.mulf %79, %75 : vector<128x512xf32>
    %81 = arith.mulf %80, %75 : vector<128x512xf32>
    %82 = arith.mulf %81, %75 : vector<128x512xf32>
    %83 = arith.addf %75, %82 : vector<128x512xf32>
    %84 = vector.broadcast %76 : f32 to vector<128x512xf32>
    %85 = arith.mulf %84, %83 : vector<128x512xf32>
    %86 = math.tanh %85 : vector<128x512xf32>
    %cst_35 = arith.constant 1.000000e+00 : f32
    %87 = vector.broadcast %cst_35 : f32 to vector<128x512xf32>
    %88 = arith.addf %87, %86 : vector<128x512xf32>
    %89 = arith.mulf %78, %88 : vector<128x512xf32>
    %90 = arith.truncf %89 : vector<128x512xf32> to vector<128x512xbf16>
    %cst_36 = arith.constant dense<0.000000e+00> : vector<128x256xf32>
    %91 = tpu.matmul %90, %5, %cst_36 {dimension_numbers = #tpu.dot_dimension_numbers<[1], [0], [0], [1], [0, 0, 1, 1], [], []>} : vector<128x512xbf16>, vector<512x256xbf16>, vector<128x256xf32> -> vector<128x256xf32>
    %92 = vector.broadcast %3 : vector<1x256xf32> to vector<128x256xf32>
    %93 = arith.addf %91, %92 : vector<128x256xf32>
    %94 = arith.addf %93, %51 : vector<128x256xf32>
    %c128_37 = arith.constant 128 : index
    %c0_38 = arith.constant 0 : index
    %95 = vector.load %arg8[%c128_37, %c0_38] : memref<256x256xf32, #tpu.memory_space<vmem>>, vector<128x256xf32>
    tpu.vector_store %arg8[%c128_37, %c0_38], %94 {strides = array<i32>} : memref<256x256xf32, #tpu.memory_space<vmem>>, vector<128x256xf32>,
    return
  }
  func.func @transform_0(%arg0: i32) -> (i32, i32) {
    %c0_i32 = arith.constant 0 : i32
    %c0_i32_0 = arith.constant 0 : i32
    return %arg0, %c0_i32 : i32, i32
  }
  func.func @transform_1(%arg0: i32) -> (i32, i32) {
    %c0_i32 = arith.constant 0 : i32
    %c0_i32_0 = arith.constant 0 : i32
    %c0_i32_1 = arith.constant 0 : i32
    return %c0_i32, %c0_i32_0 : i32, i32
  }
  func.func @transform_2(%arg0: i32) -> (i32, i32) {
    %c0_i32 = arith.constant 0 : i32
    %c0_i32_0 = arith.constant 0 : i32
    %c0_i32_1 = arith.constant 0 : i32
    return %c0_i32, %c0_i32_0 : i32, i32
  }
  func.func @transform_3(%arg0: i32) -> (i32, i32) {
    %c0_i32 = arith.constant 0 : i32
    %c0_i32_0 = arith.constant 0 : i32
    %c0_i32_1 = arith.constant 0 : i32
    return %c0_i32, %c0_i32_0 : i32, i32
  }
  func.func @transform_4(%arg0: i32) -> (i32, i32) {
    %c0_i32 = arith.constant 0 : i32
    %c0_i32_0 = arith.constant 0 : i32
    %c0_i32_1 = arith.constant 0 : i32
    return %c0_i32, %c0_i32_0 : i32, i32
  }
  func.func @transform_5(%arg0: i32) -> (i32, i32) {
    %c0_i32 = arith.constant 0 : i32
    %c0_i32_0 = arith.constant 0 : i32
    %c0_i32_1 = arith.constant 0 : i32
    return %c0_i32, %c0_i32_0 : i32, i32
  }
  func.func @transform_6(%arg0: i32) -> (i32, i32) {
    %c0_i32 = arith.constant 0 : i32
    %c0_i32_0 = arith.constant 0 : i32
    %c0_i32_1 = arith.constant 0 : i32
    return %c0_i32, %c0_i32_0 : i32, i32
  }
  func.func @transform_7(%arg0: i32) -> (i32, i32) {
    %c0_i32 = arith.constant 0 : i32
    %c0_i32_0 = arith.constant 0 : i32
    return %arg0, %c0_i32 : i32, i32
  }
}

</mosaic_0001>

<bundles_post_ra>
// kernel: tpu_custom_call.1
= control target key start
LH: loop header
LB: loop body
LE: loop exit
PB: predicated region body
PF: predicated region fallthrough
CT: control target
= control target key end

     0   :  { %12 = vsyncpa [#allocation3], 0  ;;  %s7758_s0 = inlined_call_operand.hbm [shape: f32[256,256], index: 0, kind: input, shape index: {}]   ;;  %s7759_s1 = inlined_call_operand.hbm [shape: f32[1,256], index: 1, kind: input, shape index: {}]   ;;  %s7760_s2 = inlined_call_operand.hbm [shape: f32[1,256], index: 2, kind: input, shape index: {}]   ;;  %s7761_s3 = inlined_call_operand.hbm [shape: bf16[256,512], index: 3, kind: input, shape index: {}]   ;;  %s7762_s4 = inlined_call_operand.hbm [shape: f32[1,512], index: 4, kind: input, shape index: {}]   ;;  %s7763_s5 = inlined_call_operand.hbm [shape: bf16[512,256], index: 5, kind: input, shape index: {}]   ;;  %s7764_s6 = inlined_call_operand.hbm [shape: f32[1,256], index: 6, kind: input, shape index: {}]   ;;  %s7765_s7 = inlined_call_operand.hbm [shape: f32[256,256], index: 7, kind: output, shape index: {}]  }
   0x1   :  { %13 = vsyncpa [#allocation6], 0 }
   0x2   :  { %14 = vsyncpa [#allocation9], 0 }
   0x3   :  { %15 = vsyncpa [#allocation12], 0 }
   0x4   :  { %16 = vsyncpa [#allocation4], 0  ;;  %s5072_s24 = smov [#allocation5]   ;;  %s4886_s28 = scalar_lea.hbm %s7759_s1, 32 }
   0x5   :  { %s35_s25 = sshll.u32 %s5072_s24, 4  ;;  %p4887_p0 = scmp.ne.s32.totalorder %s7759_s1, %s4886_s28  ;;  %s36_s25 = int_to_ptr.vmem [resolvable:$true] %s35_s25 }
   0x6   :  { %p4890_p1 = scmp.lt.u32.totalorder %s4886_s28, %s7759_s1 }
   0x8   :  { %p4892_p2 = pnand %p4890_p1, %p4887_p0 }
   0xa   :  { %4895 = shalt.err (!%p4892_p2)
}
   0xb   :  { %s4896_s10 = scalar_lea.vmem %s36_s25, 32  ;;  %p4901_p4 = scmp.lt.s32.totalorder %s36_s25, %s36_s25 }
   0xc   :  { %p4897_p3 = scmp.ne.s32.totalorder %s36_s25, %s4896_s10  ;;  %p4902_p5 = scmp.lt.s32.totalorder %s4896_s10, %s4896_s10 }
   0xe   :  { %p4903_p6 = por %p4902_p5, %p4901_p4 }
  0x10   :  { %p4904_p7 = pnand %p4903_p6, %p4897_p3 }
  0x12   :  { %4907 = shalt.err (!%p4904_p7)
}
  0x13   :  { %38 = dma.hbm_to_vmem [thread:$0]  %s7759_s1, 32, %s36_s25, [#allocation6]  }
  0x14   :  { %s5073_s13 = smov [#allocation8]   ;;  %s5074_s15 = smov [#allocation11]  }
  0x15   :  { %s54_s14 = sshll.u32 %s5073_s13, 4  ;;  %s76_s16 = sshll.u32 %s5074_s15, 4  ;;  %s55_s14 = int_to_ptr.vmem [resolvable:$true] %s54_s14  ;;  %s77_s16 = int_to_ptr.vmem [resolvable:$true] %s76_s16 }
  0x16   :  { %s4908_s19 = scalar_lea.hbm %s7761_s3, 8192 }
  0x17   :  { %p4909_p8 = scmp.ne.s32.totalorder %s7761_s3, %s4908_s19  ;;  %p4912_p9 = scmp.lt.u32.totalorder %s4908_s19, %s7761_s3 }
  0x19   :  { %p4914_p10 = pnand %p4912_p9, %p4909_p8 }
  0x1b   :  { %4917 = shalt.err (!%p4914_p10)
}
  0x1c   :  { %s4918_s1 = scalar_lea.vmem %s55_s14, 8192  ;;  %p4923_p12 = scmp.lt.s32.totalorder %s55_s14, %s55_s14 }
  0x1d   :  { %p4919_p11 = scmp.ne.s32.totalorder %s55_s14, %s4918_s1  ;;  %p4924_p13 = scmp.lt.s32.totalorder %s4918_s1, %s4918_s1 }
  0x1f   :  { %p4925_p0 = por %p4924_p13, %p4923_p12 }
  0x21   :  { %p4926_p1 = pnand %p4925_p0, %p4919_p11 }
  0x23   :  { %4929 = shalt.err (!%p4926_p1)
}
  0x24   :  { %s5075_s24 = smov 256   ;;  %s5076_s25 = smov 16  }
  0x25   :  { %60 = dma.hbm_to_vmem [thread:$0]  %s7761_s3, 8192, %s55_s14, [#allocation9], %s5075_s24, %s5075_s24, %s5076_s25  }
  0x26   :  { %s4930_s30 = scalar_lea.hbm %s7763_s5, 8192 }
  0x27   :  { %p4931_p2 = scmp.ne.s32.totalorder %s7763_s5, %s4930_s30  ;;  %p4934_p3 = scmp.lt.u32.totalorder %s4930_s30, %s7763_s5 }
  0x29   :  { %p4936_p4 = pnand %p4934_p3, %p4931_p2 }
  0x2b   :  { %4939 = shalt.err (!%p4936_p4)
}
  0x2c   :  { %s4940_s12 = scalar_lea.vmem %s77_s16, 8192  ;;  %p4945_p6 = scmp.lt.s32.totalorder %s77_s16, %s77_s16 }
  0x2d   :  { %p4941_p5 = scmp.ne.s32.totalorder %s77_s16, %s4940_s12  ;;  %p4946_p7 = scmp.lt.s32.totalorder %s4940_s12, %s4940_s12 }
  0x2f   :  { %p4947_p8 = por %p4946_p7, %p4945_p6 }
  0x31   :  { %p4948_p9 = pnand %p4947_p8, %p4941_p5 }
  0x33   :  { %4951 = shalt.err (!%p4948_p9)
}
  0x34   :  { %s5077_s3 = smov 128   ;;  %s5078_s13 = smov 8  }
  0x35   :  { %82 = dma.hbm_to_vmem [thread:$0]  %s7763_s5, 8192, %s77_s16, [#allocation12], %s5077_s3, %s5077_s3, %s5078_s13  }
  0x36   :  { %s5079_s17 = smov [#allocation2]   ;;  %s5080_s19 = smov [#allocation7]  }
  0x37   :  { %s22_s18 = sshll.u32 %s5079_s17, 4  ;;  %s45_s20 = sshll.u32 %s5080_s19, 4  ;;  %s23_s18 = int_to_ptr.vmem [resolvable:$true] %s22_s18  ;;  %s46_s20 = int_to_ptr.vmem [resolvable:$true] %s45_s20 }
  0x38   :  { %s4952_s23 = scalar_lea.hbm %s7758_s0, 8192 }
  0x39   :  { %p4953_p10 = scmp.ne.s32.totalorder %s7758_s0, %s4952_s23  ;;  %p4956_p11 = scmp.lt.u32.totalorder %s4952_s23, %s7758_s0 }
  0x3b   :  { %p4958_p12 = pnand %p4956_p11, %p4953_p10 }
  0x3d   :  { %4961 = shalt.err (!%p4958_p12)
}
  0x3e   :  { %s4962_s5 = scalar_lea.vmem %s23_s18, 8192  ;;  %p4967_p0 = scmp.lt.s32.totalorder %s23_s18, %s23_s18 }
  0x3f   :  { %p4963_p13 = scmp.ne.s32.totalorder %s23_s18, %s4962_s5  ;;  %p4968_p1 = scmp.lt.s32.totalorder %s4962_s5, %s4962_s5 }
  0x41   :  { %p4969_p2 = por %p4968_p1, %p4967_p0 }
  0x43   :  { %p4970_p3 = pnand %p4969_p2, %p4963_p13 }
  0x45   :  { %4973 = shalt.err (!%p4970_p3)
}
  0x46   :  { %28 = dma.hbm_to_vmem [thread:$0]  %s7758_s0, 8192, %s23_s18, [#allocation3], %s5075_s24, %s5075_s24, %s5076_s25  }
  0x47   :  { %s4974_s9 = scalar_lea.hbm %s7760_s2, 32 }
  0x48   :  { %p4975_p4 = scmp.ne.s32.totalorder %s7760_s2, %s4974_s9  ;;  %p4978_p5 = scmp.lt.u32.totalorder %s4974_s9, %s7760_s2 }
  0x4a   :  { %p4980_p6 = pnand %p4978_p5, %p4975_p4 }
  0x4c   :  { %4983 = shalt.err (!%p4980_p6)
}
  0x4d   :  { %s4984_s13 = scalar_lea.vmem %s46_s20, 32  ;;  %p4989_p8 = scmp.lt.s32.totalorder %s46_s20, %s46_s20 }
  0x4e   :  { %p4985_p7 = scmp.ne.s32.totalorder %s46_s20, %s4984_s13  ;;  %p4990_p9 = scmp.lt.s32.totalorder %s4984_s13, %s4984_s13 }
  0x50   :  { %p4991_p10 = por %p4990_p9, %p4989_p8 }
  0x52   :  { %p4992_p11 = pnand %p4991_p10, %p4985_p7 }
  0x54   :  { %4995 = shalt.err (!%p4992_p11)
}
  0x55   :  { %48 = dma.hbm_to_vmem [thread:$0]  %s7760_s2, 32, %s46_s20, [#allocation6]  }
  0x56   :  { %s5081_s15 = smov [#allocation10]   ;;  %s5082_s18 = smov [#allocation13]  }
  0x57   :  { %s67_s17 = sshll.u32 %s5081_s15, 4  ;;  %s89_s19 = sshll.u32 %s5082_s18, 4  ;;  %s68_s17 = int_to_ptr.vmem [resolvable:$true] %s67_s17  ;;  %s90_s19 = int_to_ptr.vmem [resolvable:$true] %s89_s19 }
  0x58   :  { %s4996_s23 = scalar_lea.hbm %s7762_s4, 64 }
  0x59   :  { %p4997_p12 = scmp.ne.s32.totalorder %s7762_s4, %s4996_s23  ;;  %p5000_p13 = scmp.lt.u32.totalorder %s4996_s23, %s7762_s4 }
  0x5b   :  { %p5002_p0 = pnand %p5000_p13, %p4997_p12 }
  0x5d   :  { %5005 = shalt.err (!%p5002_p0)
}
  0x5e   :  { %s5006_s2 = scalar_lea.vmem %s68_s17, 64  ;;  %p5011_p2 = scmp.lt.s32.totalorder %s68_s17, %s68_s17 }
  0x5f   :  { %p5007_p1 = scmp.ne.s32.totalorder %s68_s17, %s5006_s2  ;;  %p5012_p3 = scmp.lt.s32.totalorder %s5006_s2, %s5006_s2 }
  0x61   :  { %p5013_p4 = por %p5012_p3, %p5011_p2 }
  0x63   :  { %p5014_p5 = pnand %p5013_p4, %p5007_p1 }
  0x65   :  { %5017 = shalt.err (!%p5014_p5)
}
  0x66   :  { %70 = dma.hbm_to_vmem [thread:$0]  %s7762_s4, 64, %s68_s17, [#allocation9]  }
  0x67   :  { %s5018_s30 = scalar_lea.hbm %s7764_s6, 32 }
  0x68   :  { %p5019_p6 = scmp.ne.s32.totalorder %s7764_s6, %s5018_s30  ;;  %p5022_p7 = scmp.lt.u32.totalorder %s5018_s30, %s7764_s6 }
  0x6a   :  { %p5024_p8 = pnand %p5022_p7, %p5019_p6 }
  0x6c   :  { %5027 = shalt.err (!%p5024_p8)
}
  0x6d   :  { %s5028_s12 = scalar_lea.vmem %s90_s19, 32  ;;  %p5033_p10 = scmp.lt.s32.totalorder %s90_s19, %s90_s19 }
  0x6e   :  { %p5029_p9 = scmp.ne.s32.totalorder %s90_s19, %s5028_s12  ;;  %p5034_p11 = scmp.lt.s32.totalorder %s5028_s12, %s5028_s12 }
  0x70   :  { %p5035_p12 = por %p5034_p11, %p5033_p10 }
  0x72   :  { %p5036_p13 = pnand %p5035_p12, %p5029_p9 }
  0x74   :  { %5039 = shalt.err (!%p5036_p13)
}
  0x75   :  { %92 = dma.hbm_to_vmem [thread:$0]  %s7764_s6, 32, %s90_s19, [#allocation12]  }
  0x76   :  { %5062 = dma.done.wait [#allocation3], 8192  }
  0x77   :  { %5063 = vsyncadd [#allocation3], 4294959104 }
  0x78   :  { %5064 = dma.done.wait [#allocation6], 64  }
  0x79   :  { %5065 = vsyncadd [#allocation6], 4294967232 }
  0x7a   :  { %5066 = dma.done.wait [#allocation9], 8256  }
  0x7b   :  { %5067 = vsyncadd [#allocation9], 4294959040 }
  0x7c   :  { %5068 = dma.done.wait [#allocation12], 8224  }
  0x7d   :  { %5069 = vsyncadd [#allocation12], 4294959072  ;;  %v5214_v0 = vld [vmem:[#allocation2] sm:$0xff]  ;;  %v5216_v1 = vld [vmem:[#allocation2 + $0x8] sm:$0xff]  ;;  %s5083_s6 = smov [#allocation14]  }
  0x7e   :  { %v5218_v2 = vld [vmem:[#allocation2 + $0x20] sm:$0xff]  ;;  %v278_v3 = vadd.f32 %v5216_v1, %v5214_v0  ;;  %v5222_v4 = vld [vmem:[#allocation2 + $0x28] sm:$0xff]  ;;  %v5224_v5 = vld [vmem:[#allocation2 + $0x10] sm:$0xff]  ;;  %s3930_s13 = sshll.u32 %s5083_s6, 4  ;;  %s3931_s13 = int_to_ptr.vmem [resolvable:$true] %s3930_s13 }
  0x7f   :  { %v5226_v6 = vld [vmem:[#allocation2 + $0x18] sm:$0xff]  ;;  %v284_v7 = vadd.f32 %v5222_v4, %v5218_v2  ;;  %v5230_v8 = vld [vmem:[#allocation2 + $0x30] sm:$0xff]  ;;  %v5238_v12 = vld [vmem:[#allocation2 + $0x40] sm:$0xff]  ;;  %s5040_s0 = scalar_lea.vmem %s3931_s13, 8192  ;;  %p5045_p1 = scmp.lt.s32.totalorder %s3931_s13, %s3931_s13 }
  0x80   :  { %v5232_v9 = vld [vmem:[#allocation2 + $0x38] sm:$0xff]  ;;  %279 = vadd.xlane.f32.xlu0 %v278_v3  ;;  %v281_v10 = vadd.f32 %v5226_v6, %v5224_v5  ;;  %v5240_v13 = vld [vmem:[#allocation2 + $0x48] sm:$0xff]  ;;  %v5242_v14 = vld [vmem:[#allocation2 + $0x50] sm:$0xff]  ;;  %p5041_p0 = scmp.ne.s32.totalorder %s3931_s13, %s5040_s0  ;;  %p5046_p2 = scmp.lt.s32.totalorder %s5040_s0, %s5040_s0 }
  0x81   :  { %285 = vadd.xlane.f32.xlu1 %v284_v7  ;;  %v287_v11 = vadd.f32 %v5232_v9, %v5230_v8  ;;  %v5244_v15 = vld [vmem:[#allocation2 + $0x58] sm:$0xff]  ;;  %v290_v16 = vadd.f32 %v5240_v13, %v5238_v12  ;;  %v5250_v18 = vld [vmem:[#allocation2 + $0x60] sm:$0xff]  ;;  %v5252_v19 = vld [vmem:[#allocation2 + $0x68] sm:$0xff] }
  0x82   :  { %v293_v17 = vadd.f32 %v5244_v15, %v5242_v14  ;;  %v5254_v20 = vld [vmem:[#allocation2 + $0x70] sm:$0xff]  ;;  %v5256_v21 = vld [vmem:[#allocation2 + $0x78] sm:$0xff]  ;;  %v5258_v22 = vld [vmem:[#allocation2 + $0x80] sm:$0xff]  ;;  %v296_v24 = vadd.f32 %v5252_v19, %v5250_v18  ;;  %p5047_p3 = por %p5046_p2, %p5045_p1 }
  0x83   :  { %v5260_v23 = vld [vmem:[#allocation2 + $0x88] sm:$0xff]  ;;  %v5264_v25 = vld [vmem:[#allocation2 + $0x90] sm:$0xff]  ;;  %v5266_v26 = vld [vmem:[#allocation2 + $0x98] sm:$0xff]  ;;  %v299_v27 = vadd.f32 %v5256_v21, %v5254_v20 }
  0x84   :  { %282 = vadd.xlane.f32.xlu0 %v281_v10  ;;  %v5270_v28 = vld [vmem:[#allocation2 + $0xa0] sm:$0xff]  ;;  %v5272_v29 = vld [vmem:[#allocation2 + $0xa8] sm:$0xff]  ;;  %v302_v30 = vadd.f32 %v5260_v23, %v5258_v22  ;;  %v5276_v31 = vld [vmem:[#allocation2 + $0xb0] sm:$0xff]  ;;  %v305_v33 = vadd.f32 %v5266_v26, %v5264_v25  ;;  %p5048_p4 = pnand %p5047_p3, %p5041_p0 }
  0x85   :  { %288 = vadd.xlane.f32.xlu1 %v287_v11  ;;  %v5278_v32 = vld [vmem:[#allocation2 + $0xb8] sm:$0xff]  ;;  %v5282_v34 = vld [vmem:[#allocation2 + $0xc0] sm:$0xff]  ;;  %v5284_v35 = vld [vmem:[#allocation2 + $0xc8] sm:$0xff]  ;;  %v308_v36 = vadd.f32 %v5272_v29, %v5270_v28 }
  0x86   :  { %v5288_v37 = vld [vmem:[#allocation2 + $0xd0] sm:$0xff]  ;;  %v5290_v38 = vld [vmem:[#allocation2 + $0xd8] sm:$0xff]  ;;  %v311_v39 = vadd.f32 %v5278_v32, %v5276_v31  ;;  %v5294_v40 = vld [vmem:[#allocation2 + $0xe0] sm:$0xff]  ;;  %v314_v42 = vadd.f32 %v5284_v35, %v5282_v34 }
  0x87   :  { %v5296_v41 = vld [vmem:[#allocation2 + $0xe8] sm:$0xff]  ;;  %v5300_v43 = vld [vmem:[#allocation2 + $0xf0] sm:$0xff]  ;;  %v5302_v44 = vld [vmem:[#allocation2 + $0xf8] sm:$0xff]  ;;  %v317_v45 = vadd.f32 %v5290_v38, %v5288_v37 }
  0x88   :  { %291 = vadd.xlane.f32.xlu0 %v290_v16  ;;  %v320_v46 = vadd.f32 %v5296_v41, %v5294_v40  ;;  %v323_v47 = vadd.f32 %v5302_v44, %v5300_v43  ;;  %v4213_v48 = vld [vmem:[#allocation8 + $0x4] ss:$16 sps:$4 sm:$0xff]   ;;  %v4215_v49 = vld [vmem:[#allocation8] ss:$16 sps:$4 sm:$0xff]  }
  0x89   :  { %294 = vadd.xlane.f32.xlu1 %v293_v17  ;;  %v4216_v50 = vld [vmem:[#allocation8 + $0x24] ss:$16 sps:$4 sm:$0xff]   ;;  %978 = vmatprep.subr.bf16.mxu1 %v4213_v48  ;;  %v4218_v51 = vld [vmem:[#allocation8 + $0x20] ss:$16 sps:$4 sm:$0xff]  }
  0x8a   :  { %979 = vmatpush1.bf16.msra.mxu1 %v4215_v49  ;;  %v4219_v52 = vld [vmem:[#allocation8 + $0x44] ss:$16 sps:$4 sm:$0xff]   ;;  %v4221_v53 = vld [vmem:[#allocation8 + $0x40] ss:$16 sps:$4 sm:$0xff]  }
  0x8b   :  { %980 = vmatprep.subr.bf16.mxu1 %v4216_v50  ;;  %v4222_v54 = vld [vmem:[#allocation8 + $0x64] ss:$16 sps:$4 sm:$0xff]   ;;  %v4224_v55 = vld [vmem:[#allocation8 + $0x60] ss:$16 sps:$4 sm:$0xff]  }
  0x8c   :  { %297 = vadd.xlane.f32.xlu0 %v296_v24  ;;  %v4225_v56 = vld [vmem:[#allocation8 + $0x84] ss:$16 sps:$4 sm:$0xff]   ;;  %v4227_v57 = vld [vmem:[#allocation8 + $0x80] ss:$16 sps:$4 sm:$0xff]  }
  0x8d   :  { %300 = vadd.xlane.f32.xlu1 %v299_v27  ;;  %v4228_v58 = vld [vmem:[#allocation8 + $0xa4] ss:$16 sps:$4 sm:$0xff]   ;;  %v4230_v59 = vld [vmem:[#allocation8 + $0xa0] ss:$16 sps:$4 sm:$0xff]  }
  0x8e   :  { %981 = vmatpush1.bf16.msra.mxu1 %v4218_v51  ;;  %v4231_v60 = vld [vmem:[#allocation8 + $0xc4] ss:$16 sps:$4 sm:$0xff]   ;;  %v4233_v61 = vld [vmem:[#allocation8 + $0xc0] ss:$16 sps:$4 sm:$0xff]  }
  0x8f   :  { %982 = vmatprep.subr.bf16.mxu1 %v4219_v52  ;;  %v4234_v62 = vld [vmem:[#allocation8 + $0xe4] ss:$16 sps:$4 sm:$0xff]   ;;  %v4236_v63 = vld [vmem:[#allocation8 + $0xe0] ss:$16 sps:$4 sm:$0xff]  }
  0x90   :  { %303 = vadd.xlane.f32.xlu0 %v302_v30  ;;  %v4237_v3 = vld [vmem:[#allocation8 + $0x104] ss:$16 sps:$4 sm:$0xff]   ;;  %v4239_v7 = vld [vmem:[#allocation8 + $0x100] ss:$16 sps:$4 sm:$0xff]  }
  0x91   :  { %306 = vadd.xlane.f32.xlu1 %v305_v33 }
  0x92   :  { %983 = vmatpush1.bf16.msra.mxu1 %v4221_v53 }
  0x93   :  { %984 = vmatprep.subr.bf16.mxu1 %v4222_v54 }
  0x94   :  { %309 = vadd.xlane.f32.xlu0 %v308_v36 }
  0x95   :  { %312 = vadd.xlane.f32.xlu1 %v311_v39 }
  0x96   :  { %985 = vmatpush1.bf16.msra.mxu1 %v4224_v55 }
  0x97   :  { %986 = vmatprep.subr.bf16.mxu1 %v4225_v56 }
  0x98   :  { %315 = vadd.xlane.f32.xlu0 %v314_v42 }
  0x99   :  { %318 = vadd.xlane.f32.xlu1 %v317_v45 }
  0x9a   :  { %987 = vmatpush1.bf16.msra.mxu1 %v4227_v57 }
  0x9b   :  { %988 = vmatprep.subr.bf16.mxu1 %v4228_v58 }
  0x9c   :  { %321 = vadd.xlane.f32.xlu0 %v320_v46 }
  0x9d   :  { %324 = vadd.xlane.f32.xlu1 %v323_v47 }
  0x9e   :  { %989 = vmatpush1.bf16.msra.mxu1 %v4230_v59 }
  0x9f   :  { %990 = vmatprep.subr.bf16.mxu1 %v4231_v60 }
  0xa2   :  { %991 = vmatpush1.bf16.msra.mxu1 %v4233_v61 }
  0xa3   :  { %992 = vmatprep.subr.bf16.mxu1 %v4234_v62 }
  0xa6   :  { %993 = vmatpush1.bf16.msra.mxu1 %v4236_v63 }
  0xa7   :  { %994 = vmatprep.subr.bf16.mxu1 %v4237_v3 }
  0xaa   :  { %995 = vmatpush1.bf16.msra.mxu1 %v4239_v7 }
 0x10d   :  { %v280_v10 = vpop.xlane.xlu0 %279 }
 0x10e   :  { %v327_v11 = vmul.f32 0.00390625, %v280_v10  ;;  %v286_v16 = vpop.xlane.xlu1 %285 }
 0x10f   :  { %v329_v17 = vmul.f32 0.00390625, %v286_v16 }
 0x110   :  { %v5311_v24 = vsub.f32 %v5214_v0, %v327_v11  ;;  %v5314_v27 = vsub.f32 %v5216_v1, %v327_v11 }
 0x111   :  { %v5317_v30 = vsub.f32 %v5218_v2, %v329_v17  ;;  %v5320_v33 = vsub.f32 %v5222_v4, %v329_v17  ;;  %v283_v36 = vpop.xlane.xlu0 %282 }
 0x112   :  { %v328_v39 = vmul.f32 0.00390625, %v283_v36  ;;  %v289_v42 = vpop.xlane.xlu1 %288  ;;  %v375_v45 = vmul.f32 %v5311_v24, %v5311_v24  ;;  %v376_v46 = vmul.f32 %v5314_v27, %v5314_v27 }
 0x113   :  { %v330_v0 = vmul.f32 0.00390625, %v289_v42  ;;  %v379_v1 = vmul.f32 %v5317_v30, %v5317_v30  ;;  %v380_v2 = vmul.f32 %v5320_v33, %v5320_v33 }
 0x114   :  { %v5331_v47 = vsub.f32 %v5224_v5, %v328_v39  ;;  %v5334_v4 = vsub.f32 %v5226_v6, %v328_v39  ;;  %v407_v48 = vadd.f32 %v376_v46, %v375_v45 }
 0x115   :  { %v5337_v49 = vsub.f32 %v5230_v8, %v330_v0  ;;  %v5340_v50 = vsub.f32 %v5232_v9, %v330_v0  ;;  %v292_v51 = vpop.xlane.xlu0 %291  ;;  %v413_v54 = vadd.f32 %v380_v2, %v379_v1 }
 0x116   :  { %v331_v52 = vmul.f32 0.00390625, %v292_v51  ;;  %408 = vadd.xlane.f32.xlu0 %v407_v48  ;;  %v295_v53 = vpop.xlane.xlu1 %294  ;;  %v377_v55 = vmul.f32 %v5331_v47, %v5331_v47  ;;  %v378_v5 = vmul.f32 %v5334_v4, %v5334_v4 }
 0x117   :  { %v332_v6 = vmul.f32 0.00390625, %v295_v53  ;;  %v381_v56 = vmul.f32 %v5337_v49, %v5337_v49  ;;  %v382_v8 = vmul.f32 %v5340_v50, %v5340_v50 }
 0x118   :  { %v5351_v9 = vsub.f32 %v5238_v12, %v331_v52  ;;  %v5354_v57 = vsub.f32 %v5240_v13, %v331_v52  ;;  %v410_v58 = vadd.f32 %v378_v5, %v377_v55 }
 0x119   :  { %v5357_v59 = vsub.f32 %v5242_v14, %v332_v6  ;;  %v5360_v60 = vsub.f32 %v5244_v15, %v332_v6  ;;  %v298_v61 = vpop.xlane.xlu0 %297  ;;  %v416_v3 = vadd.f32 %v382_v8, %v381_v56  ;;  %v4240_v6 = vld [vmem:[#allocation8 + $0x124] ss:$16 sps:$4 sm:$0xff]   ;;  %v4242_v8 = vld [vmem:[#allocation8 + $0x120] ss:$16 sps:$4 sm:$0xff]  }
 0x11a   :  { %v333_v62 = vmul.f32 0.00390625, %v298_v61  ;;  %414 = vadd.xlane.f32.xlu0 %v413_v54  ;;  %411 = vadd.xlane.f32.xlu1 %v410_v58  ;;  %v301_v63 = vpop.xlane.xlu1 %300  ;;  %v383_v12 = vmul.f32 %v5351_v9, %v5351_v9  ;;  %v384_v13 = vmul.f32 %v5354_v57, %v5354_v57 }
 0x11b   :  { %v334_v7 = vmul.f32 0.00390625, %v301_v63  ;;  %v385_v14 = vmul.f32 %v5357_v59, %v5357_v59  ;;  %v386_v15 = vmul.f32 %v5360_v60, %v5360_v60  ;;  %996 = vmatprep.subr.bf16.mxu1 %v4240_v6 }
 0x11c   :  { %v5371_v10 = vsub.f32 %v5250_v18, %v333_v62  ;;  %v5374_v11 = vsub.f32 %v5252_v19, %v333_v62  ;;  %v419_v16 = vadd.f32 %v384_v13, %v383_v12  ;;  %997 = vmatpush1.bf16.msra.mxu1 %v4242_v8 }
 0x11d   :  { %v5377_v17 = vsub.f32 %v5254_v20, %v334_v7  ;;  %v5380_v36 = vsub.f32 %v5256_v21, %v334_v7  ;;  %v304_v39 = vpop.xlane.xlu0 %303  ;;  %v422_v46 = vadd.f32 %v386_v15, %v385_v14  ;;  %v5426_v15 = vld [vmem:[#allocation2 + $0x100] sm:$0xff] }
 0x11e   :  { %v335_v42 = vmul.f32 0.00390625, %v304_v39  ;;  %417 = vadd.xlane.f32.xlu1 %v416_v3  ;;  %420 = vadd.xlane.f32.xlu0 %v419_v16  ;;  %v307_v45 = vpop.xlane.xlu1 %306  ;;  %v387_v18 = vmul.f32 %v5371_v10, %v5371_v10  ;;  %v388_v19 = vmul.f32 %v5374_v11, %v5374_v11 }
 0x11f   :  { %v336_v0 = vmul.f32 0.00390625, %v307_v45  ;;  %v389_v20 = vmul.f32 %v5377_v17, %v5377_v17  ;;  %v390_v21 = vmul.f32 %v5380_v36, %v5380_v36 }
 0x120   :  { %v5391_v1 = vsub.f32 %v5258_v22, %v335_v42  ;;  %v5394_v2 = vsub.f32 %v5260_v23, %v335_v42  ;;  %v425_v48 = vadd.f32 %v388_v19, %v387_v18  ;;  %v4243_v42 = vld [vmem:[#allocation8 + $0x144] ss:$16 sps:$4 sm:$0xff]   ;;  %v4245_v19 = vld [vmem:[#allocation8 + $0x140] ss:$16 sps:$4 sm:$0xff]  }
 0x121   :  { %v5397_v51 = vsub.f32 %v5264_v25, %v336_v0  ;;  %v5400_v52 = vsub.f32 %v5266_v26, %v336_v0  ;;  %v310_v53 = vpop.xlane.xlu0 %309  ;;  %v428_v5 = vadd.f32 %v390_v21, %v389_v20  ;;  %998 = vmatprep.subr.bf16.mxu1 %v4243_v42  ;;  %v4254_v42 = vld [vmem:[#allocation8 + $0x1a0] ss:$16 sps:$4 sm:$0xff]  }
 0x122   :  { %7825 = vst [vmem:[#allocation20_spill] sm:$0xff] %v5391_v1  ;;  %v337_v54 = vmul.f32 0.00390625, %v310_v53  ;;  %423 = vadd.xlane.f32.xlu1 %v422_v46  ;;  %426 = vadd.xlane.f32.xlu0 %v425_v48  ;;  %v313_v55 = vpop.xlane.xlu1 %312  ;;  %v391_v22 = vmul.f32 %v5391_v1, %v5391_v1  ;;  %v392_v23 = vmul.f32 %v5394_v2, %v5394_v2  ;;  %v5448_v53 = vld [vmem:[#allocation2 + $0x110] sm:$0xff] }
 0x123   :  { %7826 = vst [vmem:[#allocation21_spill] sm:$0xff] %v5397_v51  ;;  %v338_v56 = vmul.f32 0.00390625, %v313_v55  ;;  %v393_v25 = vmul.f32 %v5397_v51, %v5397_v51  ;;  %v394_v26 = vmul.f32 %v5400_v52, %v5400_v52  ;;  %999 = vmatpush1.bf16.msra.mxu1 %v4245_v19 }
 0x124   :  { %v5411_v58 = vsub.f32 %v5270_v28, %v337_v54  ;;  %v5414_v61 = vsub.f32 %v5272_v29, %v337_v54  ;;  %v431_v62 = vadd.f32 %v392_v23, %v391_v22  ;;  %v5450_v54 = vld [vmem:[#allocation2 + $0x118] sm:$0xff] }
 0x125   :  { %v5417_v63 = vsub.f32 %v5276_v31, %v338_v56  ;;  %v5420_v3 = vsub.f32 %v5278_v32, %v338_v56  ;;  %v316_v12 = vpop.xlane.xlu0 %315  ;;  %v434_v7 = vadd.f32 %v394_v26, %v393_v25  ;;  %v5428_v31 = vld [vmem:[#allocation2 + $0x108] sm:$0xff]  ;;  %v2468_v56 = vadd.f32 %v5450_v54, %v5448_v53  ;;  %v4248_v25 = vld [vmem:[#allocation8 + $0x160] ss:$16 sps:$4 sm:$0xff]  }
 0x126   :  { %7827 = vst [vmem:[#allocation22_spill] sm:$0xff] %v5411_v58  ;;  %7828 = vst [vmem:[#allocation23_spill] sm:$0xff] %v5414_v61  ;;  %429 = vadd.xlane.f32.xlu1 %v428_v5  ;;  %432 = vadd.xlane.f32.xlu0 %v431_v62  ;;  %v339_v13 = vmul.f32 0.00390625, %v316_v12  ;;  %v395_v28 = vmul.f32 %v5411_v58, %v5411_v58  ;;  %v396_v29 = vmul.f32 %v5414_v61, %v5414_v61  ;;  %v319_v14 = vpop.xlane.xlu1 %318  ;;  %v4246_v22 = vld [vmem:[#allocation8 + $0x164] ss:$16 sps:$4 sm:$0xff]  }
 0x127   :  { %7829 = vst [vmem:[#allocation24_spill] sm:$0xff] %v5417_v63  ;;  %7830 = vst [vmem:[#allocation25_spill] sm:$0xff] %v5420_v3  ;;  %v340_v16 = vmul.f32 0.00390625, %v319_v14  ;;  %v397_v32 = vmul.f32 %v5417_v63, %v5417_v63  ;;  %v398_v39 = vmul.f32 %v5420_v3, %v5420_v3  ;;  %v2465_v48 = vadd.f32 %v5428_v31, %v5426_v15 }
 0x128   :  { %v5435_v45 = vsub.f32 %v5282_v34, %v339_v13  ;;  %v5438_v46 = vsub.f32 %v5284_v35, %v339_v13  ;;  %v437_v18 = vadd.f32 %v396_v29, %v395_v28  ;;  %1000 = vmatprep.subr.bf16.mxu1 %v4246_v22  ;;  %v4249_v13 = vld [vmem:[#allocation8 + $0x184] ss:$16 sps:$4 sm:$0xff]   ;;  %v5500_v22 = vld [vmem:[#allocation2 + $0x150] sm:$0xff] }
 0x129   :  { %v5441_v0 = vsub.f32 %v5288_v37, %v340_v16  ;;  %v5444_v20 = vsub.f32 %v5290_v38, %v340_v16  ;;  %v322_v21 = vpop.xlane.xlu0 %321  ;;  %v440_v35 = vadd.f32 %v398_v39, %v397_v32  ;;  %1001 = vmatpush1.bf16.msra.mxu1 %v4248_v25  ;;  %v5482_v16 = vld [vmem:[#allocation2 + $0x120] sm:$0xff]  ;;  %v5484_v32 = vld [vmem:[#allocation2 + $0x128] sm:$0xff] }
 0x12a   :  { %7831 = vst [vmem:[#allocation26_spill] sm:$0xff] %v5435_v45  ;;  %7832 = vst [vmem:[#allocation27_spill] sm:$0xff] %v5438_v46  ;;  %435 = vadd.xlane.f32.xlu1 %v434_v7  ;;  %438 = vadd.xlane.f32.xlu0 %v437_v18  ;;  %v341_v34 = vmul.f32 0.00390625, %v322_v21  ;;  %v325_v55 = vpop.xlane.xlu1 %324  ;;  %v399_v37 = vmul.f32 %v5435_v45, %v5435_v45  ;;  %v400_v38 = vmul.f32 %v5438_v46, %v5438_v46  ;;  %v4251_v7 = vld [vmem:[#allocation8 + $0x180] ss:$16 sps:$4 sm:$0xff]  }
 0x12b   :  { %7833 = vst [vmem:[#allocation28_spill] sm:$0xff] %v5441_v0  ;;  %7834 = vst [vmem:[#allocation29_spill] sm:$0xff] %v5444_v20  ;;  %v342_v5 = vmul.f32 0.00390625, %v325_v55  ;;  %v401_v62 = vmul.f32 %v5441_v0, %v5441_v0  ;;  %v402_v12 = vmul.f32 %v5444_v20, %v5444_v20  ;;  %1002 = vmatprep.subr.bf16.mxu1 %v4249_v13  ;;  %v4252_v39 = vld [vmem:[#allocation8 + $0x1a4] ss:$16 sps:$4 sm:$0xff]   ;;  %v5488_v21 = vld [vmem:[#allocation2 + $0x130] sm:$0xff] }
 0x12c   :  { %v5457_v23 = vsub.f32 %v5294_v40, %v341_v34  ;;  %v5460_v6 = vsub.f32 %v5296_v41, %v341_v34  ;;  %v443_v8 = vadd.f32 %v400_v38, %v399_v37  ;;  %v2471_v19 = vadd.f32 %v5484_v32, %v5482_v16  ;;  %v5492_v34 = vld [vmem:[#allocation2 + $0x140] sm:$0xff]  ;;  %v4255_v55 = vld [vmem:[#allocation8 + $0x1c4] ss:$16 sps:$4 sm:$0xff]   ;;  %v5512_v13 = vld [vmem:[#allocation2 + $0x170] sm:$0xff] }
 0x12d   :  { %v5465_v26 = vsub.f32 %v5300_v43, %v342_v5  ;;  %v5472_v40 = vsub.f32 %v5302_v44, %v342_v5  ;;  %v446_v28 = vadd.f32 %v402_v12, %v401_v62  ;;  %1003 = vmatpush1.bf16.msra.mxu1 %v4251_v7  ;;  %v4257_v37 = vld [vmem:[#allocation8 + $0x1c0] ss:$16 sps:$4 sm:$0xff]   ;;  %v4258_v62 = vld [vmem:[#allocation8 + $0x1e4] ss:$16 sps:$4 sm:$0xff]  }
 0x12e   :  { %7835 = vst [vmem:[#allocation30_spill] sm:$0xff] %v5457_v23  ;;  %7836 = vst [vmem:[#allocation31_spill] sm:$0xff] %v5460_v6  ;;  %441 = vadd.xlane.f32.xlu1 %v440_v35  ;;  %2466 = vadd.xlane.f32.xlu0 %v2465_v48  ;;  %v403_v41 = vmul.f32 %v5457_v23, %v5457_v23  ;;  %v404_v43 = vmul.f32 %v5460_v6, %v5460_v6  ;;  %v5490_v48 = vld [vmem:[#allocation2 + $0x138] sm:$0xff]  ;;  %v5494_v35 = vld [vmem:[#allocation2 + $0x148] sm:$0xff] }
 0x12f   :  { %7837 = vst [vmem:[#allocation32_spill] sm:$0xff] %v5465_v26  ;;  %7838 = vst [vmem:[#allocation33_spill] sm:$0xff] %v5472_v40  ;;  %v405_v14 = vmul.f32 %v5465_v26, %v5465_v26  ;;  %v406_v44 = vmul.f32 %v5472_v40, %v5472_v40  ;;  %1004 = vmatprep.subr.bf16.mxu1 %v4252_v39  ;;  %v2474_v38 = vadd.f32 %v5490_v48, %v5488_v21  ;;  %v5504_v25 = vld [vmem:[#allocation2 + $0x160] sm:$0xff]  ;;  %v5514_v7 = vld [vmem:[#allocation2 + $0x178] sm:$0xff] }
 0x130   :  { %v449_v29 = vadd.f32 %v404_v43, %v403_v41  ;;  %v2477_v5 = vadd.f32 %v5494_v35, %v5492_v34  ;;  %v4260_v12 = vld [vmem:[#allocation8 + $0x1e0] ss:$16 sps:$4 sm:$0xff]   ;;  %v5554_v26 = vld [vmem:[#allocation2 + $0x1e8] sm:$0xff]  ;;  %v5562_v6 = vld [vmem:[#allocation2 + $0x1f8] sm:$0xff] }
 0x131   :  { %v452_v18 = vadd.f32 %v406_v44, %v405_v14  ;;  %1005 = vmatpush1.bf16.msra.mxu1 %v4254_v42  ;;  %v4263_v14 = vld [vmem:[#allocation8 + $0xc] ss:$16 sps:$4 sm:$0xff]   ;;  %v2486_v44 = vadd.f32 %v5514_v7, %v5512_v13  ;;  %7846 = vst [vmem:[#allocation41_spill] sm:$0xff] %v5554_v26  ;;  %7848 = vst [vmem:[#allocation43_spill] sm:$0xff] %v5562_v6 }
 0x132   :  { %2469 = vadd.xlane.f32.xlu1 %v2468_v56  ;;  %444 = vadd.xlane.f32.xlu0 %v443_v8  ;;  %v5502_v56 = vld [vmem:[#allocation2 + $0x158] sm:$0xff]  ;;  %v5506_v8 = vld [vmem:[#allocation2 + $0x168] sm:$0xff]  ;;  %v5524_v42 = vld [vmem:[#allocation2 + $0x190] sm:$0xff] }
 0x133   :  { %1006 = vmatprep.subr.bf16.mxu1 %v4255_v55  ;;  %v2480_v41 = vadd.f32 %v5502_v56, %v5500_v22  ;;  %v2483_v43 = vadd.f32 %v5506_v8, %v5504_v25  ;;  %v5530_v55 = vld [vmem:[#allocation2 + $0x1a8] sm:$0xff]  ;;  %v5552_v23 = vld [vmem:[#allocation2 + $0x1e0] sm:$0xff]  ;;  %v5560_v40 = vld [vmem:[#allocation2 + $0x1f0] sm:$0xff] }
 0x134   :  { %7845 = vst [vmem:[#allocation40_spill] sm:$0xff] %v5552_v23  ;;  %7847 = vst [vmem:[#allocation42_spill] sm:$0xff] %v5560_v40  ;;  %v2510_v45 = vadd.f32 %v5562_v6, %v5560_v40 }
 0x135   :  { %1007 = vmatpush1.bf16.msra.mxu1 %v4257_v37 }
 0x136   :  { %447 = vadd.xlane.f32.xlu1 %v446_v28  ;;  %450 = vadd.xlane.f32.xlu0 %v449_v29  ;;  %v5516_v28 = vld [vmem:[#allocation2 + $0x180] sm:$0xff]  ;;  %v5518_v29 = vld [vmem:[#allocation2 + $0x188] sm:$0xff] }
 0x137   :  { %1008 = vmatprep.subr.bf16.mxu1 %v4258_v62  ;;  %v2489_v39 = vadd.f32 %v5518_v29, %v5516_v28  ;;  %v5538_v62 = vld [vmem:[#allocation2 + $0x1b8] sm:$0xff] }
 0x138   :  { %7840 = vst [vmem:[#allocation35_spill] sm:$0xff] %v5538_v62 }
 0x139   :  { %1009 = vmatpush1.bf16.msra.mxu1 %v4260_v12  ;;  %v5540_v12 = vld [vmem:[#allocation2 + $0x1c0] sm:$0xff] }
 0x13a   :  { %453 = vadd.xlane.f32.xlu1 %v452_v18  ;;  %2472 = vadd.xlane.f32.xlu0 %v2471_v19  ;;  %v5526_v18 = vld [vmem:[#allocation2 + $0x198] sm:$0xff]  ;;  %v5528_v19 = vld [vmem:[#allocation2 + $0x1a0] sm:$0xff]  ;;  %7841 = vst [vmem:[#allocation36_spill] sm:$0xff] %v5540_v12 }
 0x13b   :  { %1091 = vmatprep.subr.bf16.mxu1 %v4263_v14  ;;  %v2492_v37 = vadd.f32 %v5526_v18, %v5524_v42 }
 0x13e   :  { %2475 = vadd.xlane.f32.xlu1 %v2474_v38  ;;  %2478 = vadd.xlane.f32.xlu0 %v2477_v5  ;;  %v2495_v38 = vadd.f32 %v5530_v55, %v5528_v19  ;;  %v5536_v5 = vld [vmem:[#allocation2 + $0x1b0] sm:$0xff] }
 0x13f   :  { %7839 = vst [vmem:[#allocation34_spill] sm:$0xff] %v5536_v5 }
 0x142   :  { %2481 = vadd.xlane.f32.xlu1 %v2480_v41  ;;  %2484 = vadd.xlane.f32.xlu0 %v2483_v43  ;;  %v5542_v41 = vld [vmem:[#allocation2 + $0x1c8] sm:$0xff]  ;;  %v2498_v43 = vadd.f32 %v5538_v62, %v5536_v5 }
 0x143   :  { %7842 = vst [vmem:[#allocation37_spill] sm:$0xff] %v5542_v41  ;;  %v2501_v14 = vadd.f32 %v5542_v41, %v5540_v12 }
 0x146   :  { %2487 = vadd.xlane.f32.xlu1 %v2486_v44  ;;  %2490 = vadd.xlane.f32.xlu0 %v2489_v39  ;;  %v5548_v44 = vld [vmem:[#allocation2 + $0x1d0] sm:$0xff]  ;;  %v5550_v39 = vld [vmem:[#allocation2 + $0x1d8] sm:$0xff] }
 0x147   :  { %7843 = vst [vmem:[#allocation38_spill] sm:$0xff] %v5548_v44  ;;  %7844 = vst [vmem:[#allocation39_spill] sm:$0xff] %v5550_v39 }
 0x14a   :  { %2493 = vadd.xlane.f32.xlu1 %v2492_v37  ;;  %2496 = vadd.xlane.f32.xlu0 %v2495_v38  ;;  %v2504_v37 = vadd.f32 %v5550_v39, %v5548_v44  ;;  %v2507_v38 = vadd.f32 %v5554_v26, %v5552_v23 }
 0x14e   :  { %2499 = vadd.xlane.f32.xlu1 %v2498_v43  ;;  %2502 = vadd.xlane.f32.xlu0 %v2501_v14  ;;  %v536_v14 = vlaneseq }
 0x150   :  { %v5566_v44 = vshrl.u32 %v536_v14, 7 }
 0x152   :  { %2505 = vadd.xlane.f32.xlu1 %v2504_v37  ;;  %2508 = vadd.xlane.f32.xlu0 %v2507_v38  ;;  %7849 = vst [vmem:[#allocation44_spill] sm:$0xff] %v5566_v44 }
 0x156   :  { %2511 = vadd.xlane.f32.xlu1 %v2510_v45 }
 0x1a3   :  { %v409_v0 = vpop.xlane.xlu0 %408 }
 0x1a4   :  { %v455_v20 = vmul.f32 0.00390625, %v409_v0  ;;  %v5569_v0 = vsub.s32 0, %v5566_v44 }
 0x1a6   :  { %v471_v43 = vadd.f32 1e-05, %v455_v20  ;;  %7850 = vst [vmem:[#allocation45_spill] sm:$0xff] %v5569_v0  ;;  %v5572_v20 = vsub.s32 1, %v5566_v44 }
 0x1a7   :  { %v412_v46 = vpop.xlane.xlu1 %411  ;;  %v415_v63 = vpop.xlane.xlu0 %414 }
 0x1a8   :  { %4405 = vrsqrt.f32 %v471_v43  ;;  %v456_v58 = vmul.f32 0.00390625, %v412_v46  ;;  %v457_v39 = vmul.f32 0.00390625, %v415_v63  ;;  %7851 = vst [vmem:[#allocation46_spill] sm:$0xff] %v5572_v20 }
 0x1aa   :  { %v472_v26 = vadd.f32 1e-05, %v456_v58  ;;  %v473_v23 = vadd.f32 1e-05, %v457_v39  ;;  %v114_v58 = vld [vmem:[#allocation5] sm:$0x3] }
 0x1ab   :  { %v418_v3 = vpop.xlane.xlu1 %417  ;;  %v421_v37 = vpop.xlane.xlu0 %420 }
 0x1ac   :  { %4407 = vrsqrt.f32 %v472_v26  ;;  %v458_v38 = vmul.f32 0.00390625, %v418_v3  ;;  %v459_v61 = vmul.f32 0.00390625, %v421_v37  ;;  %v115_v3 = vld [vmem:[#allocation7] sm:$0x3] }
 0x1ad   :  { %4409 = vrsqrt.f32 %v473_v23  ;;  %v5575_v23 = vrot.slane %v114_v58, %v5569_v0 }
 0x1ae   :  { %v474_v45 = vadd.f32 1e-05, %v458_v38  ;;  %v475_v6 = vadd.f32 1e-05, %v459_v61  ;;  %v5578_v61 = vrot.slane %v114_v58, %v5572_v20  ;;  %v5587_v58 = vrot.slane %v115_v3, %v5572_v20 }
 0x1af   :  { %v424_v46 = vpop.xlane.xlu1 %423  ;;  %v427_v63 = vpop.xlane.xlu0 %426 }
 0x1b0   :  { %4411 = vrsqrt.f32 %v474_v45  ;;  %v460_v39 = vmul.f32 0.00390625, %v424_v46  ;;  %v461_v43 = vmul.f32 0.00390625, %v427_v63 }
 0x1b1   :  { %4413 = vrsqrt.f32 %v475_v6  ;;  %v5583_v6 = vrot.slane %v115_v3, %v5569_v0 }
 0x1b2   :  { %v4406_v14 = vpop.eup %4405  ;;  %v476_v26 = vadd.f32 1e-05, %v460_v39  ;;  %v477_v63 = vadd.f32 1e-05, %v461_v43 }
 0x1b3   :  { %v430_v37 = vpop.xlane.xlu1 %429  ;;  %v433_v38 = vpop.xlane.xlu0 %432  ;;  %v504_v44 = vmul.f32 %v4406_v14, %v5314_v27  ;;  %v503_v40 = vmul.f32 %v4406_v14, %v5311_v24 }
 0x1b4   :  { %4415 = vrsqrt.f32 %v476_v26  ;;  %v462_v45 = vmul.f32 0.00390625, %v430_v37  ;;  %v463_v46 = vmul.f32 0.00390625, %v433_v38 }
 0x1b5   :  { %v547_v12 = vmul.f32 %v5578_v61, %v504_v44  ;;  %v546_v62 = vmul.f32 %v5575_v23, %v503_v40  ;;  %4417 = vrsqrt.f32 %v477_v63 }
 0x1b6   :  { %v4408_v39 = vpop.eup %4407  ;;  %v478_v41 = vadd.f32 1e-05, %v462_v45  ;;  %v479_v43 = vadd.f32 1e-05, %v463_v46 }
 0x1b7   :  { %v4410_v5 = vpop.eup %4409  ;;  %v436_v27 = vpop.xlane.xlu1 %435  ;;  %v506_v24 = vmul.f32 %v4408_v39, %v5334_v4  ;;  %v505_v14 = vmul.f32 %v4408_v39, %v5331_v47  ;;  %v590_v40 = vadd.f32 %v5587_v58, %v547_v12  ;;  %v589_v45 = vadd.f32 %v5583_v6, %v546_v62 }
 0x1b8   :  { %v439_v51 = vpop.xlane.xlu0 %438  ;;  %v508_v26 = vmul.f32 %v4410_v5, %v5320_v33  ;;  %v464_v37 = vmul.f32 0.00390625, %v436_v27  ;;  %4419 = vrsqrt.f32 %v478_v41  ;;  %v507_v12 = vmul.f32 %v4410_v5, %v5317_v30  ;;  %v5617_v30 = vld [vmem:[#allocation8 + $0x2c] ss:$16 sps:$4 sm:$0xff]  }
 0x1b9   :  { %v549_v38 = vmul.f32 %v5578_v61, %v506_v24  ;;  %v548_v44 = vmul.f32 %v5575_v23, %v505_v14  ;;  %4421 = vrsqrt.f32 %v479_v43  ;;  %v465_v27 = vmul.f32 0.00390625, %v439_v51  ;;  %7852 = vst [vmem:[#allocation47_spill] sm:$0xff] %v5617_v30 }
 0x1ba   :  { %v4412_v3 = vpop.eup %4411  ;;  %v551_v20 = vmul.f32 %v5578_v61, %v508_v26  ;;  %v480_v24 = vadd.f32 1e-05, %v464_v37  ;;  %v5607_v26 = vld [vmem:[#allocation8 + $0x8] ss:$16 sps:$4 sm:$0xff]  }
 0x1bb   :  { %v442_v4 = vpop.xlane.xlu1 %441  ;;  %v592_v47 = vadd.f32 %v5587_v58, %v549_v38  ;;  %v591_v33 = vadd.f32 %v5583_v6, %v548_v44  ;;  %v510_v46 = vmul.f32 %v4412_v3, %v5340_v50  ;;  %v509_v63 = vmul.f32 %v4412_v3, %v5337_v49  ;;  %v4414_v39 = vpop.eup %4413 }
 0x1bc   :  { %v2467_v0 = vpop.xlane.xlu0 %2466  ;;  %v466_v1 = vmul.f32 0.00390625, %v442_v4  ;;  %v594_v51 = vadd.f32 %v5587_v58, %v551_v20  ;;  %v512_v3 = vmul.f32 %v4414_v39, %v5354_v57  ;;  %v550_v20 = vmul.f32 %v5575_v23, %v507_v12 }
 0x1bd   :  { %v2513_v41 = vmul.f32 0.00390625, %v2467_v0  ;;  %v5603_v62 = vpack.c.bf16 %v592_v47, %v590_v40  ;;  %v5605_v14 = vpack.c.bf16 %v591_v33, %v589_v45  ;;  %v553_v38 = vmul.f32 %v5578_v61, %v510_v46  ;;  %v5633_v33 = vld [vmem:[#allocation8 + $0x28] ss:$16 sps:$4 sm:$0xff]  }
 0x1be   :  { %v4416_v44 = vpop.eup %4415  ;;  %v552_v37 = vmul.f32 %v5575_v23, %v509_v63  ;;  %4423 = vrsqrt.f32 %v480_v24  ;;  %v481_v4 = vadd.f32 1e-05, %v465_v27  ;;  %7853 = vst [vmem:[#allocation48_spill] sm:$0xff] %v5633_v33  ;;  %v5643_v27 = vld [vmem:[#allocation8 + $0x4c] ss:$16 sps:$4 sm:$0xff]  }
 0x1bf   :  { %v5611_v50 = vsub.f32 %v5426_v15, %v2513_v41  ;;  %v5614_v49 = vsub.f32 %v5428_v31, %v2513_v41  ;;  %v2470_v5 = vpop.xlane.xlu1 %2469  ;;  %1010 = vmatprep.mubr.bf16.mxu1 %v5603_v62  ;;  %v596_v43 = vadd.f32 %v5587_v58, %v553_v38  ;;  %v514_v15 = vmul.f32 %v4416_v44, %v5360_v60  ;;  %v4418_v12 = vpop.eup %4417 }
 0x1c0   :  { %v445_v0 = vpop.xlane.xlu0 %444  ;;  %v2514_v40 = vmul.f32 0.00390625, %v2470_v5  ;;  %1011 = vmatmul.mubr.bf16.vlgmr.msra.gmra.mrb[0].mxu1 %v5605_v14  ;;  %v595_v63 = vadd.f32 %v5583_v6, %v552_v37  ;;  %v555_v41 = vmul.f32 %v5578_v61, %v512_v3  ;;  %v482_v24 = vadd.f32 1e-05, %v466_v1 }
 0x1c1   :  { %v467_v45 = vmul.f32 0.00390625, %v445_v0  ;;  %v2561_v31 = vmul.f32 %v5611_v50, %v5611_v50  ;;  %1092 = vmatpush1.bf16.msra.mxu1 %v5607_v26  ;;  %v5629_v47 = vpack.c.bf16 %v596_v43, %v594_v51  ;;  %v2562_v57 = vmul.f32 %v5614_v49, %v5614_v49 }
 0x1c2   :  { %v5636_v60 = vsub.f32 %v5448_v53, %v2514_v40  ;;  %v5639_v46 = vsub.f32 %v5450_v54, %v2514_v40  ;;  %1093 = vmatprep.subr.bf16.mxu1 %v5617_v30  ;;  %v557_v53 = vmul.f32 %v5578_v61, %v514_v15  ;;  %v511_v54 = vmul.f32 %v4414_v39, %v5351_v9  ;;  %v4420_v0 = vpop.eup %4419 }
 0x1c3   :  { %v448_v38 = vpop.xlane.xlu1 %447  ;;  %1020 = vmatprep.mubr.bf16.mxu1 %v5629_v47  ;;  %v2593_v5 = vadd.f32 %v2562_v57, %v2561_v31  ;;  %v483_v43 = vadd.f32 1e-05, %v467_v45  ;;  %v593_v30 = vadd.f32 %v5583_v6, %v550_v20  ;;  %v598_v31 = vadd.f32 %v5587_v58, %v555_v41  ;;  %v5657_v9 = vpop.eup %4421  ;;  %v5661_v45 = vld [vmem:[#allocation8 + $0x48] ss:$16 sps:$4 sm:$0xff]   ;;  %v5668_v41 = vld [vmem:[#allocation8 + $0x6c] ss:$16 sps:$4 sm:$0xff]  }
 0x1c4   :  { %v451_v51 = vpop.xlane.xlu0 %450  ;;  %v468_v40 = vmul.f32 0.00390625, %v448_v38  ;;  %v2563_v37 = vmul.f32 %v5636_v60, %v5636_v60  ;;  %v2564_v1 = vmul.f32 %v5639_v46, %v5639_v46  ;;  %v600_v15 = vadd.f32 %v5587_v58, %v557_v53  ;;  %7854 = vst [vmem:[#allocation49_spill] sm:$0xff] %v5668_v41 }
 0x1c5   :  { %v469_v3 = vmul.f32 0.00390625, %v451_v51  ;;  %2594 = vadd.xlane.f32.xlu0 %v2593_v5  ;;  %1094 = vmatpush1.bf16.msra.mxu1 %v5633_v33  ;;  %4425 = vrsqrt.f32 %v481_v4  ;;  %v5659_v39 = vpack.c.bf16 %v595_v63, %v593_v30  ;;  %v513_v20 = vmul.f32 %v4416_v44, %v5357_v59 }
 0x1c6   :  { %1095 = vmatprep.subr.bf16.mxu1 %v5643_v27  ;;  %v554_v57 = vmul.f32 %v5575_v23, %v511_v54  ;;  %v2596_v5 = vadd.f32 %v2564_v1, %v2563_v37  ;;  %v5666_v33 = vpack.c.bf16 %v600_v15, %v598_v31  ;;  %v516_v53 = vmul.f32 %v4418_v12, %v5374_v11  ;;  %v5693_v15 = vld [vmem:[#allocation8 + $0x8c] ss:$16 sps:$4 sm:$0xff]  }
 0x1c7   :  { %v454_v38 = vpop.xlane.xlu1 %453  ;;  %v518_v30 = vmul.f32 %v4420_v0, %v5380_v36  ;;  %4427 = vrsqrt.f32 %v482_v24  ;;  %v484_v4 = vadd.f32 1e-05, %v468_v40  ;;  %v556_v59 = vmul.f32 %v5575_v23, %v513_v20  ;;  %v5686_v24 = vld [vmem:[#allocation8 + $0x68] ss:$16 sps:$4 sm:$0xff]   ;;  %7856 = vst [vmem:[#allocation51_spill] sm:$0xff] %v5693_v15 }
 0x1c8   :  { %v2473_v51 = vpop.xlane.xlu0 %2472  ;;  %1021 = vmatmul.mubr.bf16.gmra.mrb[4].mxu1 %v5659_v39  ;;  %4429 = vrsqrt.f32 %v483_v43  ;;  %v5674_v44 = vadd.f32 1e-05, %v469_v3  ;;  %2597 = vadd.xlane.f32.xlu1 %v2596_v5  ;;  %v559_v54 = vmul.f32 %v5578_v61, %v516_v53  ;;  %7855 = vst [vmem:[#allocation50_spill] sm:$0xff] %v5686_v24  ;;  %v597_v43 = vadd.f32 %v5583_v6, %v554_v57  ;;  %v5690_v3 = vpop.eup %4423 }
 0x1c9   :  { %v2515_v63 = vmul.f32 0.00390625, %v2473_v51  ;;  %1030 = vmatprep.mubr.bf16.mxu1 %v5666_v33  ;;  %v561_v37 = vmul.f32 %v5578_v61, %v518_v30  ;;  %1096 = vmatpush1.bf16.msra.mxu1 %v5661_v45  ;;  %v599_v40 = vadd.f32 %v5583_v6, %v556_v59  ;;  %v515_v20 = vmul.f32 %v4418_v12, %v5371_v10 }
 0x1ca   :  { %1097 = vmatprep.subr.bf16.mxu1 %v5668_v41  ;;  %v517_v51 = vmul.f32 %v4420_v0, %v5377_v17  ;;  %4431 = vrsqrt.f32 %v484_v4  ;;  %v5721_v0 = vld [vmem:[#allocation8 + $0x88] ss:$16 sps:$4 sm:$0xff]  }
 0x1cb   :  { %v5680_v11 = vsub.f32 %v5482_v16, %v2515_v63  ;;  %v5683_v36 = vsub.f32 %v5484_v32, %v2515_v63  ;;  %v2476_v1 = vpop.xlane.xlu1 %2475  ;;  %v602_v16 = vadd.f32 %v5587_v58, %v559_v54  ;;  %v604_v32 = vadd.f32 %v5587_v58, %v561_v37  ;;  %7857 = vst [vmem:[#allocation52_spill] sm:$0xff] %v5721_v0 }
 0x1cc   :  { %v2479_v31 = vpop.xlane.xlu0 %2478  ;;  %v2516_v57 = vmul.f32 0.00390625, %v2476_v1  ;;  %v5703_v63 = vpack.c.bf16 %v599_v40, %v597_v43  ;;  %v558_v54 = vmul.f32 %v5575_v23, %v515_v20  ;;  %4433 = vrsqrt.f32 %v5674_v44 }
 0x1cd   :  { %v2517_v5 = vmul.f32 0.00390625, %v2479_v31  ;;  %v2565_v53 = vmul.f32 %v5680_v11, %v5680_v11  ;;  %v2566_v30 = vmul.f32 %v5683_v36, %v5683_v36  ;;  %v5705_v59 = vpack.c.bf16 %v604_v32, %v602_v16  ;;  %1098 = vmatpush1.bf16.msra.mxu1 %v5686_v24 }
 0x1ce   :  { %v5709_v37 = vsub.f32 %v5488_v21, %v2516_v57  ;;  %v5712_v10 = vsub.f32 %v5490_v48, %v2516_v57  ;;  %1099 = vmatprep.subr.bf16.mxu1 %v5693_v15  ;;  %v5724_v21 = vld [vmem:[#allocation8 + $0xac] ss:$16 sps:$4 sm:$0xff]   ;;  %v560_v48 = vmul.f32 %v5575_v23, %v517_v51  ;;  %v601_v1 = vadd.f32 %v5583_v6, %v558_v54 }
 0x1cf   :  { %v5715_v17 = vsub.f32 %v5492_v34, %v2517_v5  ;;  %v5718_v12 = vsub.f32 %v5494_v35, %v2517_v5  ;;  %v2482_v4 = vpop.xlane.xlu1 %2481  ;;  %v2599_v40 = vadd.f32 %v2566_v30, %v2565_v53  ;;  %7858 = vst [vmem:[#allocation53_spill] sm:$0xff] %v5724_v21  ;;  %v520_v34 = vmul.f32 %v5657_v9, %v5394_v2  ;;  %v5730_v35 = vpop.eup %4425 }
 0x1d0   :  { %v2485_v43 = vpop.xlane.xlu0 %2484  ;;  %v2518_v31 = vmul.f32 0.00390625, %v2482_v4  ;;  %1031 = vmatmul.mubr.bf16.gmra.mrb[8].mxu1 %v5703_v63  ;;  %v2567_v32 = vmul.f32 %v5709_v37, %v5709_v37  ;;  %v2568_v20 = vmul.f32 %v5712_v10, %v5712_v10  ;;  %v470_v57 = vmul.f32 0.00390625, %v454_v38 }
 0x1d1   :  { %v2519_v16 = vmul.f32 0.00390625, %v2485_v43  ;;  %2600 = vadd.xlane.f32.xlu0 %v2599_v40  ;;  %1040 = vmatprep.mubr.bf16.mxu1 %v5705_v59  ;;  %v2569_v51 = vmul.f32 %v5715_v17, %v5715_v17  ;;  %v2570_v2 = vmul.f32 %v5718_v12, %v5718_v12  ;;  %v603_v5 = vadd.f32 %v5583_v6, %v560_v48  ;;  %v5743_v53 = vpop.eup %4427  ;;  %v5758_v43 = vld [vmem:[#allocation8 + $0xa8] ss:$16 sps:$4 sm:$0xff]  }
 0x1d2   :  { %v5746_v30 = vsub.f32 %v5500_v22, %v2518_v31  ;;  %v5749_v54 = vsub.f32 %v5502_v56, %v2518_v31  ;;  %1100 = vmatpush1.bf16.msra.mxu1 %v5721_v0  ;;  %7859 = vst [vmem:[#allocation54_spill] sm:$0xff] %v5758_v43  ;;  %v5760_v40 = vpop.eup %4429  ;;  %v2602_v24 = vadd.f32 %v2568_v20, %v2567_v32  ;;  %v5765_v31 = vld [vmem:[#allocation8 + $0xcc] ss:$16 sps:$4 sm:$0xff]  }
 0x1d3   :  { %v5752_v38 = vsub.f32 %v5504_v25, %v2519_v16  ;;  %v5755_v4 = vsub.f32 %v5506_v8, %v2519_v16  ;;  %v2488_v48 = vpop.xlane.xlu1 %2487  ;;  %v2605_v22 = vadd.f32 %v2570_v2, %v2569_v51  ;;  %1101 = vmatprep.subr.bf16.mxu1 %v5724_v21  ;;  %v5763_v56 = vpack.c.bf16 %v603_v5, %v601_v1  ;;  %v5794_v2 = vld [vmem:[#allocation8 + $0xc8] ss:$16 sps:$4 sm:$0xff]  }
 0x1d4   :  { %v2491_v15 = vpop.xlane.xlu0 %2490  ;;  %7860 = vst [vmem:[#allocation55_spill] sm:$0xff] %v5765_v31  ;;  %v522_v25 = vmul.f32 %v5690_v3, %v5400_v52  ;;  %v2520_v8 = vmul.f32 0.00390625, %v2488_v48  ;;  %v2571_v0 = vmul.f32 %v5746_v30, %v5746_v30  ;;  %v2572_v41 = vmul.f32 %v5749_v54, %v5749_v54  ;;  %2603 = vadd.xlane.f32.xlu1 %v2602_v24  ;;  %v5779_v20 = vpop.eup %4431 }
 0x1d5   :  { %v2521_v16 = vmul.f32 0.00390625, %v2491_v15  ;;  %2606 = vadd.xlane.f32.xlu0 %v2605_v22  ;;  %v2573_v1 = vmul.f32 %v5752_v38, %v5752_v38  ;;  %v2574_v32 = vmul.f32 %v5755_v4, %v5755_v4  ;;  %v563_v52 = vmul.f32 %v5578_v61, %v520_v34  ;;  %7863 = vst [vmem:[#allocation58_spill] sm:$0xff] %v5794_v2 }
 0x1d6   :  { %v5782_v15 = vsub.f32 %v5512_v13, %v2520_v8  ;;  %v5785_v51 = vsub.f32 %v5514_v7, %v2520_v8  ;;  %1102 = vmatpush1.bf16.msra.mxu1 %v5758_v43  ;;  %v2608_v48 = vadd.f32 %v2572_v41, %v2571_v0  ;;  %v565_v13 = vmul.f32 %v5578_v61, %v522_v25  ;;  %v5799_v8 = vld [vmem:[#allocation8 + $0xec] ss:$16 sps:$4 sm:$0xff]  }
 0x1d7   :  { %v5788_v44 = vsub.f32 %v5516_v28, %v2521_v16  ;;  %v5791_v24 = vsub.f32 %v5518_v29, %v2521_v16  ;;  %v2494_v5 = vpop.xlane.xlu1 %2493  ;;  %v2611_v22 = vadd.f32 %v2574_v32, %v2573_v1  ;;  %1103 = vmatprep.subr.bf16.mxu1 %v5765_v31  ;;  %v606_v7 = vadd.f32 %v5587_v58, %v563_v52  ;;  %v5826_v31 = vld [vmem:[#allocation8 + $0xe8] ss:$16 sps:$4 sm:$0xff]   ;;  %v5868_v43 = vld [vmem:[#allocation8 + $0x12c] ss:$16 sps:$4 sm:$0xff]  }
 0x1d8   :  { %v2497_v34 = vpop.xlane.xlu0 %2496  ;;  %7864 = vst [vmem:[#allocation59_spill] sm:$0xff] %v5799_v8  ;;  %v2522_v28 = vmul.f32 0.00390625, %v2494_v5  ;;  %1041 = vmatmul.mubr.bf16.gmra.mrb[12].mxu1 %v5763_v56  ;;  %v2575_v29 = vmul.f32 %v5782_v15, %v5782_v15  ;;  %v2576_v16 = vmul.f32 %v5785_v51, %v5785_v51  ;;  %v486_v41 = vadd.f32 1e-05, %v470_v57  ;;  %2609 = vadd.xlane.f32.xlu1 %v2608_v48 }
 0x1d9   :  { %7861 = vst [vmem:[#allocation56_spill] sm:$0xff] %v5788_v44  ;;  %7862 = vst [vmem:[#allocation57_spill] sm:$0xff] %v5791_v24  ;;  %v2523_v21 = vmul.f32 0.00390625, %v2497_v34  ;;  %2612 = vadd.xlane.f32.xlu0 %v2611_v22  ;;  %v608_v0 = vadd.f32 %v5587_v58, %v565_v13  ;;  %v2577_v25 = vmul.f32 %v5788_v44, %v5788_v44 }
 0x1da   :  { %v2578_v1 = vmul.f32 %v5791_v24, %v5791_v24  ;;  %v5812_v32 = vsub.f32 %v5524_v42, %v2522_v28  ;;  %v5815_v52 = vsub.f32 %v5526_v18, %v2522_v28  ;;  %1104 = vmatpush1.bf16.msra.mxu1 %v5794_v2  ;;  %v2614_v13 = vadd.f32 %v2576_v16, %v2575_v29  ;;  %v7869_v42 = vld [vmem:[#allocation20_spill] sm:$0xff]  ;;  %v7871_v16 = vld [vmem:[#allocation21_spill] sm:$0xff] }
 0x1db   :  { %v5818_v5 = vsub.f32 %v5528_v19, %v2523_v21  ;;  %v5821_v57 = vsub.f32 %v5530_v55, %v2523_v21  ;;  %v5824_v34 = vpack.c.bf16 %v608_v0, %v606_v7  ;;  %v2500_v48 = vpop.xlane.xlu1 %2499  ;;  %7868 = vst [vmem:[#allocation63_spill] sm:$0xff] %v5826_v31  ;;  %1105 = vmatprep.subr.bf16.mxu1 %v5799_v8  ;;  %v5835_v7 = vld [vmem:[#allocation8 + $0x10c] ss:$16 sps:$4 sm:$0xff]   ;;  %4435 = vrsqrt.f32 %v486_v41  ;;  %v5893_v24 = vld [vmem:[#allocation8 + $0x128] ss:$16 sps:$4 sm:$0xff]  }
 0x1dc   :  { %7865 = vst [vmem:[#allocation60_spill] sm:$0xff] %v5812_v32  ;;  %v2503_v22 = vpop.xlane.xlu0 %2502  ;;  %v2617_v44 = vadd.f32 %v2578_v1, %v2577_v25  ;;  %v519_v18 = vmul.f32 %v5657_v9, %v7869_v42  ;;  %v2524_v19 = vmul.f32 0.00390625, %v2500_v48  ;;  %v2579_v55 = vmul.f32 %v5812_v32, %v5812_v32  ;;  %7870 = vst [vmem:[#allocation20_spill] sm:$0xff] %v5835_v7  ;;  %v7872_v25 = vld [vmem:[#allocation34_spill] sm:$0xff]  ;;  %v7874_v48 = vld [vmem:[#allocation35_spill] sm:$0xff] }
 0x1dd   :  { %7866 = vst [vmem:[#allocation61_spill] sm:$0xff] %v5818_v5  ;;  %7867 = vst [vmem:[#allocation62_spill] sm:$0xff] %v5821_v57  ;;  %v2525_v28 = vmul.f32 0.00390625, %v2503_v22  ;;  %v2580_v21 = vmul.f32 %v5815_v52, %v5815_v52  ;;  %1050 = vmatprep.mubr.bf16.mxu1 %v5824_v34  ;;  %2615 = vadd.xlane.f32.xlu1 %v2614_v13  ;;  %v2581_v29 = vmul.f32 %v5818_v5, %v5818_v5  ;;  %v7876_v42 = vld [vmem:[#allocation36_spill] sm:$0xff]  ;;  %v7878_v8 = vld [vmem:[#allocation37_spill] sm:$0xff]  ;;  %v5856_v5 = vpop.eup %4433 }
 0x1de   :  { %v2582_v9 = vmul.f32 %v5821_v57, %v5821_v57  ;;  %v521_v0 = vmul.f32 %v5690_v3, %v7871_v16  ;;  %v5845_v1 = vsub.f32 %v7872_v25, %v2524_v19  ;;  %v5848_v22 = vsub.f32 %v7874_v48, %v2524_v19  ;;  %2618 = vadd.xlane.f32.xlu0 %v2617_v44  ;;  %v5861_v48 = vld [vmem:[#allocation8 + $0x108] ss:$16 sps:$4 sm:$0xff]  }
 0x1df   :  { %v5851_v41 = vsub.f32 %v7876_v42, %v2525_v28  ;;  %v5854_v13 = vsub.f32 %v7878_v8, %v2525_v28  ;;  %1106 = vmatpush1.bf16.msra.mxu1 %v5826_v31  ;;  %v2506_v57 = vpop.xlane.xlu1 %2505  ;;  %v2620_v3 = vadd.f32 %v2580_v21, %v2579_v55  ;;  %v562_v25 = vmul.f32 %v5575_v23, %v519_v18  ;;  %v7880_v8 = vld [vmem:[#allocation23_spill] sm:$0xff]  ;;  %v7881_v28 = vld [vmem:[#allocation25_spill] sm:$0xff] }
 0x1e0   :  { %7873 = vst [vmem:[#allocation21_spill] sm:$0xff] %v5845_v1  ;;  %7875 = vst [vmem:[#allocation34_spill] sm:$0xff] %v5848_v22  ;;  %v2509_v2 = vpop.xlane.xlu0 %2508  ;;  %v2623_v16 = vadd.f32 %v2582_v9, %v2581_v29  ;;  %v564_v19 = vmul.f32 %v5575_v23, %v521_v0  ;;  %v2526_v42 = vmul.f32 0.00390625, %v2506_v57  ;;  %1107 = vmatprep.subr.bf16.mxu1 %v5835_v7  ;;  %v7883_v57 = vld [vmem:[#allocation38_spill] sm:$0xff]  ;;  %v7885_v9 = vld [vmem:[#allocation39_spill] sm:$0xff] }
 0x1e1   :  { %7877 = vst [vmem:[#allocation35_spill] sm:$0xff] %v5851_v41  ;;  %7879 = vst [vmem:[#allocation36_spill] sm:$0xff] %v5861_v48  ;;  %v2527_v32 = vmul.f32 0.00390625, %v2509_v2  ;;  %v524_v44 = vmul.f32 %v5730_v35, %v7880_v8  ;;  %v526_v31 = vmul.f32 %v5743_v53, %v7881_v28  ;;  %2621 = vadd.xlane.f32.xlu1 %v2620_v3  ;;  %v7886_v8 = vld [vmem:[#allocation40_spill] sm:$0xff]  ;;  %v7888_v3 = vld [vmem:[#allocation41_spill] sm:$0xff] }
 0x1e2   :  { %7882 = vst [vmem:[#allocation37_spill] sm:$0xff] %v5868_v43  ;;  %v605_v55 = vadd.f32 %v5583_v6, %v562_v25  ;;  %v607_v18 = vadd.f32 %v5583_v6, %v564_v19  ;;  %v2583_v21 = vmul.f32 %v5845_v1, %v5845_v1  ;;  %v2584_v2 = vmul.f32 %v5848_v22, %v5848_v22 }
 0x1e3   :  { %v5877_v29 = vsub.f32 %v7883_v57, %v2526_v42  ;;  %v5880_v0 = vsub.f32 %v7885_v9, %v2526_v42  ;;  %v5883_v28 = vsub.f32 %v7886_v8, %v2527_v32  ;;  %v5886_v7 = vsub.f32 %v7888_v3, %v2527_v32  ;;  %2624 = vadd.xlane.f32.xlu0 %v2623_v16  ;;  %v2512_v57 = vpop.xlane.xlu1 %2511  ;;  %v7893_v8 = vld [vmem:[#allocation43_spill] sm:$0xff] }
 0x1e4   :  { %v5888_v25 = vpack.c.bf16 %v607_v18, %v605_v55  ;;  %v567_v19 = vmul.f32 %v5578_v61, %v524_v44  ;;  %v569_v1 = vmul.f32 %v5578_v61, %v526_v31  ;;  %1108 = vmatpush1.bf16.msra.mxu1 %v5861_v48  ;;  %v2626_v22 = vadd.f32 %v2584_v2, %v2583_v21  ;;  %v5902_v44 = vld [vmem:[#allocation8 + $0x14c] ss:$16 sps:$4 sm:$0xff]  }
 0x1e5   :  { %7884 = vst [vmem:[#allocation23_spill] sm:$0xff] %v5877_v29  ;;  %7887 = vst [vmem:[#allocation25_spill] sm:$0xff] %v5883_v28  ;;  %v2528_v42 = vmul.f32 0.00390625, %v2512_v57  ;;  %v2585_v9 = vmul.f32 %v5851_v41, %v5851_v41  ;;  %v2586_v32 = vmul.f32 %v5854_v13, %v5854_v13  ;;  %1109 = vmatprep.subr.bf16.mxu1 %v5868_v43  ;;  %v7891_v21 = vld [vmem:[#allocation42_spill] sm:$0xff]  ;;  %v4436_v41 = vpop.eup %4435 }
 0x1e6   :  { %7889 = vst [vmem:[#allocation38_spill] sm:$0xff] %v5893_v24  ;;  %v2587_v16 = vmul.f32 %v5877_v29, %v5877_v29  ;;  %7890 = vst [vmem:[#allocation39_spill] sm:$0xff] %v5902_v44  ;;  %1051 = vmatmul.mubr.bf16.gmra.mrb[16].mxu1 %v5888_v25  ;;  %v610_v31 = vadd.f32 %v5587_v58, %v567_v19  ;;  %v612_v55 = vadd.f32 %v5587_v58, %v569_v1  ;;  %v7894_v19 = vld [vmem:[#allocation22_spill] sm:$0xff] }
 0x1e7   :  { %2627 = vadd.xlane.f32.xlu1 %v2626_v22  ;;  %v2588_v18 = vmul.f32 %v5880_v0, %v5880_v0  ;;  %v5910_v2 = vsub.f32 %v7891_v21, %v2528_v42  ;;  %v5913_v3 = vsub.f32 %v7893_v8, %v2528_v42  ;;  %v2629_v57 = vadd.f32 %v2586_v32, %v2585_v9  ;;  %v5924_v29 = vld [vmem:[#allocation8 + $0x148] ss:$16 sps:$4 sm:$0xff]   ;;  %v7897_v32 = vld [vmem:[#allocation27_spill] sm:$0xff] }
 0x1e8   :  { %v2589_v43 = vmul.f32 %v5883_v28, %v5883_v28  ;;  %v5917_v48 = vpack.c.bf16 %v612_v55, %v610_v31  ;;  %1110 = vmatpush1.bf16.msra.mxu1 %v5893_v24  ;;  %v2590_v22 = vmul.f32 %v5886_v7, %v5886_v7  ;;  %v523_v21 = vmul.f32 %v5730_v35, %v7894_v19  ;;  %v7896_v42 = vld [vmem:[#allocation24_spill] sm:$0xff]  ;;  %v7898_v55 = vld [vmem:[#allocation29_spill] sm:$0xff] }
 0x1e9   :  { %7892 = vst [vmem:[#allocation40_spill] sm:$0xff] %v5910_v2  ;;  %v2632_v1 = vadd.f32 %v2588_v18, %v2587_v16  ;;  %7895 = vst [vmem:[#allocation41_spill] sm:$0xff] %v5924_v29  ;;  %2630 = vadd.xlane.f32.xlu0 %v2629_v57  ;;  %v525_v9 = vmul.f32 %v5743_v53, %v7896_v42  ;;  %1111 = vmatprep.subr.bf16.mxu1 %v5902_v44  ;;  %v5937_v57 = vld [vmem:[#allocation8 + $0x16c] ss:$16 sps:$4 sm:$0xff]  }
 0x1ea   :  { %v528_v31 = vmul.f32 %v5760_v40, %v7897_v32  ;;  %v530_v16 = vmul.f32 %v5779_v20, %v7898_v55  ;;  %1060 = vmatprep.mubr.bf16.mxu1 %v5917_v48  ;;  %v2635_v18 = vadd.f32 %v2590_v22, %v2589_v43  ;;  %v566_v35 = vmul.f32 %v5575_v23, %v523_v21  ;;  %v5946_v43 = vld [vmem:[#allocation8 + $0x168] ss:$16 sps:$4 sm:$0xff]   ;;  %v5954_v44 = vld [vmem:[#allocation8 + $0x18c] ss:$16 sps:$4 sm:$0xff]  }
 0x1eb   :  { %2633 = vadd.xlane.f32.xlu1 %v2632_v1  ;;  %v2591_v8 = vmul.f32 %v5910_v2, %v5910_v2  ;;  %v568_v53 = vmul.f32 %v5575_v23, %v525_v9  ;;  %v2592_v32 = vmul.f32 %v5913_v3, %v5913_v3  ;;  %v7899_v1 = vld [vmem:[#allocation28_spill] sm:$0xff]  ;;  %v7900_v2 = vld [vmem:[#allocation26_spill] sm:$0xff]  ;;  %v7902_v28 = vld [vmem:[#allocation33_spill] sm:$0xff] }
 0x1ec   :  { %v571_v19 = vmul.f32 %v5578_v61, %v528_v31  ;;  %v573_v42 = vmul.f32 %v5578_v61, %v530_v16  ;;  %v609_v55 = vadd.f32 %v5583_v6, %v566_v35  ;;  %1112 = vmatpush1.bf16.msra.mxu1 %v5924_v29  ;;  %v529_v22 = vmul.f32 %v5779_v20, %v7899_v1  ;;  %v7901_v29 = vld [vmem:[#allocation31_spill] sm:$0xff] }
 0x1ed   :  { %2636 = vadd.xlane.f32.xlu0 %v2635_v18  ;;  %v611_v21 = vadd.f32 %v5583_v6, %v568_v53  ;;  %v2638_v31 = vadd.f32 %v2592_v32, %v2591_v8  ;;  %v527_v16 = vmul.f32 %v5760_v40, %v7900_v2  ;;  %1113 = vmatprep.subr.bf16.mxu1 %v5937_v57  ;;  %v5967_v40 = vld [vmem:[#allocation8 + $0x188] ss:$16 sps:$4 sm:$0xff]  }
 0x1ee   :  { %v616_v9 = vadd.f32 %v5587_v58, %v573_v42  ;;  %v614_v35 = vadd.f32 %v5587_v58, %v571_v19  ;;  %v532_v24 = vmul.f32 %v5856_v5, %v7901_v29  ;;  %v534_v20 = vmul.f32 %v4436_v41, %v7902_v28  ;;  %v5973_v29 = vld [vmem:[#allocation8 + $0x1ac] ss:$16 sps:$4 sm:$0xff]  }
 0x1ef   :  { %v5961_v18 = vpack.c.bf16 %v611_v21, %v609_v55  ;;  %2639 = vadd.xlane.f32.xlu1 %v2638_v31  ;;  %v572_v53 = vmul.f32 %v5575_v23, %v529_v22  ;;  %v570_v19 = vmul.f32 %v5575_v23, %v527_v16  ;;  %v7903_v32 = vld [vmem:[#allocation32_spill] sm:$0xff] }
 0x1f0   :  { %v5964_v8 = vpack.c.bf16 %v616_v9, %v614_v35  ;;  %1114 = vmatpush1.bf16.msra.mxu1 %v5946_v43  ;;  %v577_v2 = vmul.f32 %v5578_v61, %v534_v20  ;;  %v575_v28 = vmul.f32 %v5578_v61, %v532_v24  ;;  %v533_v55 = vmul.f32 %v4436_v41, %v7903_v32  ;;  %v5981_v22 = vld [vmem:[#allocation8 + $0x1a8] ss:$16 sps:$4 sm:$0xff]   ;;  %v5987_v16 = vld [vmem:[#allocation8 + $0x1cc] ss:$16 sps:$4 sm:$0xff]  }
 0x1f1   :  { %1061 = vmatmul.mubr.bf16.gmra.mrb[20].mxu1 %v5961_v18  ;;  %1115 = vmatprep.subr.bf16.mxu1 %v5954_v44  ;;  %v615_v42 = vadd.f32 %v5583_v6, %v572_v53  ;;  %v613_v21 = vadd.f32 %v5583_v6, %v570_v19  ;;  %v7904_v9 = vld [vmem:[#allocation30_spill] sm:$0xff] }
 0x1f2   :  { %1070 = vmatprep.mubr.bf16.mxu1 %v5964_v8  ;;  %v620_v1 = vadd.f32 %v5587_v58, %v577_v2  ;;  %v531_v31 = vmul.f32 %v5856_v5, %v7904_v9  ;;  %v618_v24 = vadd.f32 %v5587_v58, %v575_v28  ;;  %v576_v41 = vmul.f32 %v5575_v23, %v533_v55  ;;  %v5996_v53 = vld [vmem:[#allocation8 + $0x1c8] ss:$16 sps:$4 sm:$0xff]   ;;  %v6001_v5 = vld [vmem:[#allocation8 + $0x1ec] ss:$16 sps:$4 sm:$0xff]  }
 0x1f3   :  { %v5990_v35 = vpack.c.bf16 %v615_v42, %v613_v21  ;;  %v6006_v28 = vld [vmem:[#allocation8 + $0x1e8] ss:$16 sps:$4 sm:$0xff]   ;;  %v4725_v21 = vld [vmem:[#allocation8 + $0x4] ss:$16 sps:$4 sm:$0xff]  }
 0x1f4   :  { %1116 = vmatpush1.bf16.msra.mxu1 %v5967_v40  ;;  %v5993_v20 = vpack.c.bf16 %v620_v1, %v618_v24  ;;  %v574_v2 = vmul.f32 %v5575_v23, %v531_v31  ;;  %v619_v19 = vadd.f32 %v5583_v6, %v576_v41  ;;  %v4309_v55 = vld [vmem:[#allocation11 + $0x4] ss:$8 sps:$4 sm:$0xff]   ;;  %v4311_v1 = vld [vmem:[#allocation11] ss:$8 sps:$4 sm:$0xff]   ;;  %v4312_v9 = vld [vmem:[#allocation11 + $0x14] ss:$8 sps:$4 sm:$0xff]  }
 0x1f5   :  { %1117 = vmatprep.subr.bf16.mxu1 %v5973_v29  ;;  %2143 = vmatprep.subr.bf16.mxu0 %v4309_v55  ;;  %v4314_v31 = vld [vmem:[#allocation11 + $0x10] ss:$8 sps:$4 sm:$0xff]   ;;  %v4315_v24 = vld [vmem:[#allocation11 + $0x24] ss:$8 sps:$4 sm:$0xff]   ;;  %v4317_v41 = vld [vmem:[#allocation11 + $0x20] ss:$8 sps:$4 sm:$0xff]  }
 0x1f6   :  { %v617_v42 = vadd.f32 %v5583_v6, %v574_v2  ;;  %2144 = vmatpush1.bf16.msra.mxu0 %v4311_v1  ;;  %v4318_v2 = vld [vmem:[#allocation11 + $0x34] ss:$8 sps:$4 sm:$0xff]   ;;  %v4729_v1 = vld [vmem:[#allocation8 + $0x44] ss:$16 sps:$4 sm:$0xff]  }
 0x1f7   :  { %2145 = vmatprep.subr.bf16.mxu0 %v4312_v9  ;;  %v4728_v55 = vld [vmem:[#allocation8 + $0x20] ss:$16 sps:$4 sm:$0xff]   ;;  %v4323_v9 = vld [vmem:[#allocation11 + $0x40] ss:$8 sps:$4 sm:$0xff]  }
 0x1f8   :  { %1118 = vmatpush1.bf16.msra.mxu1 %v5981_v22  ;;  %v6010_v32 = vpack.c.bf16 %v619_v19, %v617_v42  ;;  %v4726_v19 = vld [vmem:[#allocation8] ss:$16 sps:$4 sm:$0xff]   ;;  %v4727_v42 = vld [vmem:[#allocation8 + $0x24] ss:$16 sps:$4 sm:$0xff]  }
 0x1f9   :  { %1071 = vmatmul.mubr.bf16.gmra.mrb[24].mxu1 %v5990_v35  ;;  %1119 = vmatprep.subr.bf16.mxu1 %v5987_v16 }
 0x1fa   :  { %1080 = vmatprep.mubr.bf16.mxu1 %v5993_v20  ;;  %2146 = vmatpush1.bf16.msra.mxu0 %v4314_v31  ;;  %v4324_v31 = vld [vmem:[#allocation11 + $0x54] ss:$8 sps:$4 sm:$0xff]  }
 0x1fb   :  { %2147 = vmatprep.subr.bf16.mxu0 %v4315_v24  ;;  %v4326_v24 = vld [vmem:[#allocation11 + $0x50] ss:$8 sps:$4 sm:$0xff]  }
 0x1fc   :  { %1120 = vmatpush1.bf16.msra.mxu1 %v5996_v53 }
 0x1fd   :  { %1121 = vmatprep.subr.bf16.mxu1 %v6001_v5 }
 0x1fe   :  { %2148 = vmatpush1.bf16.msra.mxu0 %v4317_v41  ;;  %v4327_v41 = vld [vmem:[#allocation11 + $0x64] ss:$8 sps:$4 sm:$0xff]  }
 0x1ff   :  { %2149 = vmatprep.subr.bf16.mxu0 %v4318_v2  ;;  %v4732_v2 = vld [vmem:[#allocation8 + $0x60] ss:$16 sps:$4 sm:$0xff]  }
 0x200   :  { %1122 = vmatpush1.bf16.msra.mxu1 %v6006_v28 }
 0x201   :  { %1081 = vmatmul.mubr.bf16.gmra.mrb[28].mxu1 %v6010_v32  ;;  %2801 = vmatprep.subr.bf16.mxu1 %v4725_v21  ;;  %v4320_v21 = vld [vmem:[#allocation11 + $0x30] ss:$8 sps:$4 sm:$0xff]  }
 0x202   :  { %1123 = vmatprep.mubr.bf16.mxu1 %v5603_v62  ;;  %v4321_v62 = vld [vmem:[#allocation11 + $0x44] ss:$8 sps:$4 sm:$0xff]   ;;  %2150 = vmatpush1.bf16.msra.mxu0 %v4320_v21  ;;  %v4330_v21 = vld [vmem:[#allocation11 + $0x74] ss:$8 sps:$4 sm:$0xff]  }
 0x203   :  { %2151 = vmatprep.subr.bf16.mxu0 %v4321_v62  ;;  %v4332_v62 = vld [vmem:[#allocation11 + $0x70] ss:$8 sps:$4 sm:$0xff]  }
 0x206   :  { %2152 = vmatpush1.bf16.msra.mxu0 %v4323_v9  ;;  %v4737_v9 = vld [vmem:[#allocation8 + $0xc4] ss:$16 sps:$4 sm:$0xff]  }
 0x207   :  { %2153 = vmatprep.subr.bf16.mxu0 %v4324_v31  ;;  %v4335_v31 = vld [vmem:[#allocation11 + $0x80] ss:$8 sps:$4 sm:$0xff]  }
 0x209   :  { %1124 = vmatmul.mubr.bf16.vlgmr.msra.gmra.mrb[32].mxu1 %v5605_v14  ;;  %v4730_v14 = vld [vmem:[#allocation8 + $0x40] ss:$16 sps:$4 sm:$0xff]  }
 0x20a   :  { %1133 = vmatprep.mubr.bf16.mxu1 %v5629_v47  ;;  %2802 = vmatpush1.bf16.msra.mxu1 %v4726_v19  ;;  %v4731_v47 = vld [vmem:[#allocation8 + $0x64] ss:$16 sps:$4 sm:$0xff]  }
 0x20b   :  { %2803 = vmatprep.subr.bf16.mxu1 %v4727_v42  ;;  %v4733_v19 = vld [vmem:[#allocation8 + $0x84] ss:$16 sps:$4 sm:$0xff]   ;;  %2154 = vmatpush1.bf16.msra.mxu0 %v4326_v24  ;;  %v4339_v24 = vld [vmem:[#allocation11 + $0xa4] ss:$8 sps:$4 sm:$0xff]  }
 0x20c   :  { %v4329_v42 = vld [vmem:[#allocation11 + $0x60] ss:$8 sps:$4 sm:$0xff]   ;;  %2155 = vmatprep.subr.bf16.mxu0 %v4327_v41  ;;  %v4740_v41 = vld [vmem:[#allocation8 + $0xe0] ss:$16 sps:$4 sm:$0xff]  }
 0x20e   :  { %2804 = vmatpush1.bf16.msra.mxu1 %v4728_v55  ;;  %v4333_v55 = vld [vmem:[#allocation11 + $0x84] ss:$8 sps:$4 sm:$0xff]  }
 0x20f   :  { %2805 = vmatprep.subr.bf16.mxu1 %v4729_v1  ;;  %2156 = vmatpush1.bf16.msra.mxu0 %v4329_v42  ;;  %v4736_v1 = vld [vmem:[#allocation8 + $0xa0] ss:$16 sps:$4 sm:$0xff]  }
 0x210   :  { %2157 = vmatprep.subr.bf16.mxu0 %v4330_v21  ;;  %v4342_v42 = vld [vmem:[#allocation11 + $0xb4] ss:$8 sps:$4 sm:$0xff]   ;;  %v4344_v21 = vld [vmem:[#allocation11 + $0xb0] ss:$8 sps:$4 sm:$0xff]  }
 0x211   :  { %1134 = vmatmul.mubr.bf16.gmra.mrb[36].mxu1 %v5659_v39  ;;  %v4735_v39 = vld [vmem:[#allocation8 + $0xa4] ss:$16 sps:$4 sm:$0xff]  }
 0x212   :  { %1143 = vmatprep.mubr.bf16.mxu1 %v5666_v33  ;;  %2806 = vmatpush1.bf16.msra.mxu1 %v4730_v14  ;;  %v4734_v33 = vld [vmem:[#allocation8 + $0x80] ss:$16 sps:$4 sm:$0xff]  }
 0x213   :  { %2807 = vmatprep.subr.bf16.mxu1 %v4731_v47  ;;  %2158 = vmatpush1.bf16.msra.mxu0 %v4332_v62  ;;  %v4336_v14 = vld [vmem:[#allocation11 + $0x94] ss:$8 sps:$4 sm:$0xff]   ;;  %v4338_v47 = vld [vmem:[#allocation11 + $0x90] ss:$8 sps:$4 sm:$0xff]  }
 0x214   :  { %2159 = vmatprep.subr.bf16.mxu0 %v4333_v55  ;;  %v4745_v62 = vld [vmem:[#allocation8 + $0x144] ss:$16 sps:$4 sm:$0xff]  }
 0x215   :  { %v4347_v55 = vld [vmem:[#allocation11 + $0xc0] ss:$8 sps:$4 sm:$0xff]  }
 0x216   :  { %2808 = vmatpush1.bf16.msra.mxu1 %v4732_v2  ;;  %v4741_v2 = vld [vmem:[#allocation8 + $0x104] ss:$16 sps:$4 sm:$0xff]  }
 0x217   :  { %2809 = vmatprep.subr.bf16.mxu1 %v4733_v19  ;;  %2160 = vmatpush1.bf16.msra.mxu0 %v4335_v31  ;;  %v4341_v19 = vld [vmem:[#allocation11 + $0xa0] ss:$8 sps:$4 sm:$0xff]   ;;  %v4351_v31 = vld [vmem:[#allocation11 + $0xe4] ss:$8 sps:$4 sm:$0xff]  }
 0x218   :  { %2161 = vmatprep.subr.bf16.mxu0 %v4336_v14  ;;  %v4748_v14 = vld [vmem:[#allocation8 + $0x160] ss:$16 sps:$4 sm:$0xff]  }
 0x219   :  { %1144 = vmatmul.mubr.bf16.gmra.mrb[40].mxu1 %v5703_v63  ;;  %v4738_v63 = vld [vmem:[#allocation8 + $0xc0] ss:$16 sps:$4 sm:$0xff]  }
 0x21a   :  { %1153 = vmatprep.mubr.bf16.mxu1 %v5705_v59  ;;  %2810 = vmatpush1.bf16.msra.mxu1 %v4734_v33  ;;  %v4739_v59 = vld [vmem:[#allocation8 + $0xe4] ss:$16 sps:$4 sm:$0xff]   ;;  %v4345_v33 = vld [vmem:[#allocation11 + $0xc4] ss:$8 sps:$4 sm:$0xff]  }
 0x21b   :  { %2811 = vmatprep.subr.bf16.mxu1 %v4735_v39  ;;  %2162 = vmatpush1.bf16.msra.mxu0 %v4338_v47  ;;  %v4744_v39 = vld [vmem:[#allocation8 + $0x120] ss:$16 sps:$4 sm:$0xff]  }
 0x21c   :  { %2163 = vmatprep.subr.bf16.mxu0 %v4339_v24  ;;  %v4354_v47 = vld [vmem:[#allocation11 + $0xf4] ss:$8 sps:$4 sm:$0xff]   ;;  %v4356_v24 = vld [vmem:[#allocation11 + $0xf0] ss:$8 sps:$4 sm:$0xff]  }
 0x21e   :  { %2812 = vmatpush1.bf16.msra.mxu1 %v4736_v1  ;;  %v4348_v1 = vld [vmem:[#allocation11 + $0xd4] ss:$8 sps:$4 sm:$0xff]  }
 0x21f   :  { %2813 = vmatprep.subr.bf16.mxu1 %v4737_v9  ;;  %2164 = vmatpush1.bf16.msra.mxu0 %v4341_v19  ;;  %v4350_v9 = vld [vmem:[#allocation11 + $0xd0] ss:$8 sps:$4 sm:$0xff]   ;;  %v4754_v19 = vld [vmem:[#allocation8 + $0x1c0] ss:$16 sps:$4 sm:$0xff]  }
 0x220   :  { %2165 = vmatprep.subr.bf16.mxu0 %v4342_v42  ;;  %v4359_v42 = vld [vmem:[#allocation11 + $0x104] ss:$8 sps:$4 sm:$0xff]  }
 0x221   :  { %1154 = vmatmul.mubr.bf16.gmra.mrb[44].mxu1 %v5763_v56  ;;  %v4742_v56 = vld [vmem:[#allocation8 + $0x100] ss:$16 sps:$4 sm:$0xff]  }
 0x222   :  { %1163 = vmatprep.mubr.bf16.mxu1 %v5824_v34  ;;  %2814 = vmatpush1.bf16.msra.mxu1 %v4738_v63  ;;  %v4743_v34 = vld [vmem:[#allocation8 + $0x124] ss:$16 sps:$4 sm:$0xff]  }
 0x223   :  { %2815 = vmatprep.subr.bf16.mxu1 %v4739_v59  ;;  %2166 = vmatpush1.bf16.msra.mxu0 %v4344_v21  ;;  %v4749_v63 = vld [vmem:[#allocation8 + $0x184] ss:$16 sps:$4 sm:$0xff]  }
 0x224   :  { %2167 = vmatprep.subr.bf16.mxu0 %v4345_v33  ;;  %v4353_v59 = vld [vmem:[#allocation11 + $0xe0] ss:$8 sps:$4 sm:$0xff]  }
 0x226   :  { %2816 = vmatpush1.bf16.msra.mxu1 %v4740_v41  ;;  %v4752_v41 = vld [vmem:[#allocation8 + $0x1a0] ss:$16 sps:$4 sm:$0xff]  }
 0x227   :  { %2817 = vmatprep.subr.bf16.mxu1 %v4741_v2  ;;  %2168 = vmatpush1.bf16.msra.mxu0 %v4347_v55  ;;  %v4753_v2 = vld [vmem:[#allocation8 + $0x1c4] ss:$16 sps:$4 sm:$0xff]  }
 0x228   :  { %2169 = vmatprep.subr.bf16.mxu0 %v4348_v1 }
 0x229   :  { %1164 = vmatmul.mubr.bf16.gmra.mrb[48].mxu1 %v5888_v25  ;;  %v4747_v25 = vld [vmem:[#allocation8 + $0x164] ss:$16 sps:$4 sm:$0xff]  }
 0x22a   :  { %1173 = vmatprep.mubr.bf16.mxu1 %v5917_v48  ;;  %2818 = vmatpush1.bf16.msra.mxu1 %v4742_v56  ;;  %v4746_v48 = vld [vmem:[#allocation8 + $0x140] ss:$16 sps:$4 sm:$0xff]   ;;  %v4757_v56 = vld [vmem:[#allocation8 + $0xc] ss:$16 sps:$4 sm:$0xff]  }
 0x22b   :  { %2819 = vmatprep.subr.bf16.mxu1 %v4743_v34  ;;  %2170 = vmatpush1.bf16.msra.mxu0 %v4350_v9 }
 0x22c   :  { %2171 = vmatprep.subr.bf16.mxu0 %v4351_v31 }
 0x22e   :  { %2820 = vmatpush1.bf16.msra.mxu1 %v4744_v39 }
 0x22f   :  { %2821 = vmatprep.subr.bf16.mxu1 %v4745_v62  ;;  %2172 = vmatpush1.bf16.msra.mxu0 %v4353_v59 }
 0x230   :  { %2173 = vmatprep.subr.bf16.mxu0 %v4354_v47 }
 0x231   :  { %1174 = vmatmul.mubr.bf16.gmra.mrb[52].mxu1 %v5961_v18  ;;  %v4750_v18 = vld [vmem:[#allocation8 + $0x180] ss:$16 sps:$4 sm:$0xff]  }
 0x232   :  { %1183 = vmatprep.mubr.bf16.mxu1 %v5964_v8  ;;  %2822 = vmatpush1.bf16.msra.mxu1 %v4746_v48  ;;  %v4751_v8 = vld [vmem:[#allocation8 + $0x1a4] ss:$16 sps:$4 sm:$0xff]  }
 0x233   :  { %2823 = vmatprep.subr.bf16.mxu1 %v4747_v25  ;;  %2174 = vmatpush1.bf16.msra.mxu0 %v4356_v24 }
 0x234   :  { %2256 = vmatprep.subr.bf16.mxu0 %v4359_v42 }
 0x236   :  { %2824 = vmatpush1.bf16.msra.mxu1 %v4748_v14 }
 0x237   :  { %2825 = vmatprep.subr.bf16.mxu1 %v4749_v63 }
 0x239   :  { %1184 = vmatmul.mubr.bf16.gmra.mrb[56].mxu1 %v5990_v35  ;;  %v4755_v35 = vld [vmem:[#allocation8 + $0x1e4] ss:$16 sps:$4 sm:$0xff]  }
 0x23a   :  { %1193 = vmatprep.mubr.bf16.mxu1 %v5993_v20  ;;  %2826 = vmatpush1.bf16.msra.mxu1 %v4750_v18  ;;  %v4756_v20 = vld [vmem:[#allocation8 + $0x1e0] ss:$16 sps:$4 sm:$0xff]  }
 0x23b   :  { %2827 = vmatprep.subr.bf16.mxu1 %v4751_v8 }
 0x23e   :  { %2828 = vmatpush1.bf16.msra.mxu1 %v4752_v41 }
 0x23f   :  { %2829 = vmatprep.subr.bf16.mxu1 %v4753_v2 }
 0x241   :  { %1194 = vmatmul.mubr.bf16.gmra.mrb[60].mxu1 %v6010_v32 }
 0x242   :  { %2830 = vmatpush1.bf16.msra.mxu1 %v4754_v19 }
 0x243   :  { %2831 = vmatprep.subr.bf16.mxu1 %v4755_v35 }
 0x246   :  { %2832 = vmatpush1.bf16.msra.mxu1 %v4756_v20 }
 0x247   :  { %2914 = vmatprep.subr.bf16.mxu1 %v4757_v56 }
 0x252   :  { %v2595_v34 = vpop.xlane.xlu0 %2594 }
 0x253   :  { %v2641_v21 = vmul.f32 0.00390625, %v2595_v34 }
 0x255   :  { %v2657_v33 = vadd.f32 1e-05, %v2641_v21  ;;  %v2598_v39 = vpop.xlane.xlu1 %2597 }
 0x256   :  { %v2642_v62 = vmul.f32 0.00390625, %v2598_v39 }
 0x257   :  { %4437 = vrsqrt.f32 %v2657_v33 }
 0x258   :  { %v2658_v55 = vadd.f32 1e-05, %v2642_v62 }
 0x25a   :  { %4439 = vrsqrt.f32 %v2658_v55 }
 0x25e   :  { %v2601_v1 = vpop.xlane.xlu0 %2600 }
 0x25f   :  { %v2643_v32 = vmul.f32 0.00390625, %v2601_v1 }
 0x261   :  { %v4438_v48 = vpop.eup %4437  ;;  %v2659_v25 = vadd.f32 1e-05, %v2643_v32  ;;  %v2604_v31 = vpop.xlane.xlu1 %2603 }
 0x262   :  { %v2689_v9 = vmul.f32 %v4438_v48, %v5611_v50  ;;  %v2607_v14 = vpop.xlane.xlu0 %2606  ;;  %v2690_v63 = vmul.f32 %v4438_v48, %v5614_v49  ;;  %v2644_v59 = vmul.f32 0.00390625, %v2604_v31 }
 0x263   :  { %4441 = vrsqrt.f32 %v2659_v25  ;;  %v2645_v47 = vmul.f32 0.00390625, %v2607_v14 }
 0x264   :  { %v4440_v18 = vpop.eup %4439  ;;  %v2660_v8 = vadd.f32 1e-05, %v2644_v59  ;;  %v2721_v41 = vmul.f32 %v2689_v9, %v5575_v23  ;;  %v2722_v50 = vmul.f32 %v2690_v63, %v5578_v61 }
 0x265   :  { %v2661_v24 = vadd.f32 1e-05, %v2645_v47  ;;  %v2691_v2 = vmul.f32 %v4440_v18, %v5636_v60  ;;  %v2610_v19 = vpop.xlane.xlu1 %2609  ;;  %v2692_v35 = vmul.f32 %v4440_v18, %v5639_v46 }
 0x266   :  { %v2613_v42 = vpop.xlane.xlu0 %2612  ;;  %4443 = vrsqrt.f32 %v2660_v8  ;;  %v2646_v20 = vmul.f32 0.00390625, %v2610_v19  ;;  %v2754_v62 = vadd.f32 %v2722_v50, %v5587_v58  ;;  %v2753_v55 = vadd.f32 %v2721_v41, %v5583_v6  ;;  %v7905_v19 = vld [vmem:[#allocation47_spill] sm:$0xff] }
 0x267   :  { %v2647_v56 = vmul.f32 0.00390625, %v2613_v42  ;;  %v2723_v49 = vmul.f32 %v2691_v2, %v5575_v23  ;;  %4445 = vrsqrt.f32 %v2661_v24  ;;  %v2724_v34 = vmul.f32 %v2692_v35, %v5578_v61 }
 0x268   :  { %v2662_v21 = vadd.f32 1e-05, %v2646_v20 }
 0x269   :  { %v2663_v33 = vadd.f32 1e-05, %v2647_v56  ;;  %v2756_v60 = vadd.f32 %v2724_v34, %v5587_v58  ;;  %v2755_v46 = vadd.f32 %v2723_v49, %v5583_v6  ;;  %v7906_v34 = vld [vmem:[#allocation48_spill] sm:$0xff] }
 0x26a   :  { %v2616_v39 = vpop.xlane.xlu1 %2615  ;;  %4447 = vrsqrt.f32 %v2662_v21 }
 0x26b   :  { %v2648_v1 = vmul.f32 0.00390625, %v2616_v39  ;;  %v2619_v32 = vpop.xlane.xlu0 %2618  ;;  %4449 = vrsqrt.f32 %v2663_v33  ;;  %v6042_v25 = vpack.c.bf16 %v2756_v60, %v2754_v62  ;;  %v6044_v9 = vpack.c.bf16 %v2755_v46, %v2753_v55 }
 0x26c   :  { %v2649_v48 = vmul.f32 0.00390625, %v2619_v32 }
 0x26d   :  { %v4442_v31 = vpop.eup %4441  ;;  %v2664_v14 = vadd.f32 1e-05, %v2648_v1  ;;  %2833 = vmatprep.mubr.bf16.mxu1 %v6042_v25 }
 0x26e   :  { %v2665_v63 = vadd.f32 1e-05, %v2649_v48  ;;  %v2622_v59 = vpop.xlane.xlu1 %2621  ;;  %v2694_v47 = vmul.f32 %v4442_v31, %v5683_v36  ;;  %v2693_v18 = vmul.f32 %v4442_v31, %v5680_v11  ;;  %2834 = vmatmul.mubr.bf16.vlgmr.msra.gmra.mrb[64].mxu1 %v6044_v9 }
 0x26f   :  { %4451 = vrsqrt.f32 %v2664_v14  ;;  %v2650_v8 = vmul.f32 0.00390625, %v2622_v59  ;;  %2915 = vmatpush1.bf16.msra.mxu1 %v5607_v26 }
 0x270   :  { %v2625_v24 = vpop.xlane.xlu0 %2624  ;;  %v4444_v41 = vpop.eup %4443  ;;  %2916 = vmatprep.subr.bf16.mxu1 %v7905_v19  ;;  %v2726_v42 = vmul.f32 %v2694_v47, %v5578_v61  ;;  %v2725_v35 = vmul.f32 %v2693_v18, %v5575_v23  ;;  %4453 = vrsqrt.f32 %v2665_v63 }
 0x271   :  { %v2666_v2 = vadd.f32 1e-05, %v2650_v8  ;;  %v4446_v50 = vpop.eup %4445  ;;  %v2696_v11 = vmul.f32 %v4444_v41, %v5712_v10  ;;  %v2695_v20 = vmul.f32 %v4444_v41, %v5709_v37  ;;  %v2651_v56 = vmul.f32 0.00390625, %v2625_v24 }
 0x272   :  { %v2698_v26 = vmul.f32 %v4446_v50, %v5718_v12  ;;  %v2758_v55 = vadd.f32 %v2726_v42, %v5587_v58  ;;  %v2757_v37 = vadd.f32 %v2725_v35, %v5583_v6  ;;  %v2697_v63 = vmul.f32 %v4446_v50, %v5715_v17 }
 0x273   :  { %4455 = vrsqrt.f32 %v2666_v2  ;;  %2917 = vmatpush1.bf16.msra.mxu1 %v7906_v34  ;;  %v2728_v21 = vmul.f32 %v2696_v11, %v5578_v61  ;;  %v2727_v33 = vmul.f32 %v2695_v20, %v5575_v23  ;;  %v2667_v31 = vadd.f32 1e-05, %v2651_v56 }
 0x274   :  { %v2628_v36 = vpop.xlane.xlu1 %2627  ;;  %v4448_v39 = vpop.eup %4447  ;;  %2918 = vmatprep.subr.bf16.mxu1 %v5643_v27  ;;  %v2730_v48 = vmul.f32 %v2698_v26, %v5578_v61  ;;  %v2729_v50 = vmul.f32 %v2697_v63, %v5575_v23 }
 0x275   :  { %v2652_v49 = vmul.f32 0.00390625, %v2628_v36  ;;  %v4450_v10 = vpop.eup %4449  ;;  %v2760_v1 = vadd.f32 %v2728_v21, %v5587_v58  ;;  %v2759_v12 = vadd.f32 %v2727_v33, %v5583_v6  ;;  %v2700_v32 = vmul.f32 %v4448_v39, %v5749_v54  ;;  %v7907_v54 = vld [vmem:[#allocation49_spill] sm:$0xff] }
 0x276   :  { %v2631_v60 = vpop.xlane.xlu0 %2630  ;;  %v2699_v59 = vmul.f32 %v4448_v39, %v5746_v30  ;;  %v2702_v2 = vmul.f32 %v4450_v10, %v5755_v4  ;;  %v2762_v30 = vadd.f32 %v2730_v48, %v5587_v58  ;;  %v7908_v4 = vld [vmem:[#allocation50_spill] sm:$0xff] }
 0x277   :  { %v2668_v62 = vadd.f32 1e-05, %v2652_v49  ;;  %v2653_v14 = vmul.f32 0.00390625, %v2631_v60  ;;  %v6069_v27 = vpack.c.bf16 %v2760_v1, %v2758_v55  ;;  %v6071_v18 = vpack.c.bf16 %v2759_v12, %v2757_v37  ;;  %2919 = vmatpush1.bf16.msra.mxu1 %v5661_v45  ;;  %v7911_v12 = vld [vmem:[#allocation57_spill] sm:$0xff] }
 0x278   :  { %v2634_v46 = vpop.xlane.xlu1 %2633  ;;  %v2732_v8 = vmul.f32 %v2700_v32, %v5578_v61  ;;  %2920 = vmatprep.subr.bf16.mxu1 %v7907_v54  ;;  %v2731_v41 = vmul.f32 %v2699_v59, %v5575_v23  ;;  %v2734_v56 = vmul.f32 %v2702_v2, %v5578_v61  ;;  %v2761_v60 = vadd.f32 %v2729_v50, %v5583_v6  ;;  %v7914_v54 = vld [vmem:[#allocation55_spill] sm:$0xff]  ;;  %v7915_v2 = vld [vmem:[#allocation60_spill] sm:$0xff] }
 0x279   :  { %v2654_v47 = vmul.f32 0.00390625, %v2634_v46  ;;  %v4452_v24 = vpop.eup %4451  ;;  %4457 = vrsqrt.f32 %v2668_v62  ;;  %2843 = vmatprep.mubr.bf16.mxu1 %v6069_v27  ;;  %v2669_v45 = vadd.f32 1e-05, %v2653_v14  ;;  %v2701_v55 = vmul.f32 %v4450_v10, %v5752_v38  ;;  %v7910_v46 = vld [vmem:[#allocation52_spill] sm:$0xff] }
 0x27a   :  { %v2637_v17 = vpop.xlane.xlu0 %2636  ;;  %v2764_v19 = vadd.f32 %v2732_v8, %v5587_v58  ;;  %v2704_v42 = vmul.f32 %v4452_v24, %v5785_v51  ;;  %4459 = vrsqrt.f32 %v2667_v31  ;;  %2844 = vmatmul.mubr.bf16.gmra.mrb[68].mxu1 %v6071_v18  ;;  %v4454_v36 = vpop.eup %4453  ;;  %v7909_v51 = vld [vmem:[#allocation51_spill] sm:$0xff]  ;;  %v2763_v21 = vadd.f32 %v2731_v41, %v5583_v6  ;;  %v7912_v31 = vld [vmem:[#allocation53_spill] sm:$0xff] }
 0x27b   :  { %v2670_v11 = vadd.f32 1e-05, %v2654_v47  ;;  %2921 = vmatpush1.bf16.msra.mxu1 %v7908_v4  ;;  %v2655_v34 = vmul.f32 0.00390625, %v2637_v17  ;;  %v2703_v33 = vmul.f32 %v4452_v24, %v5782_v15  ;;  %4461 = vrsqrt.f32 %v2669_v45  ;;  %v7913_v47 = vld [vmem:[#allocation54_spill] sm:$0xff] }
 0x27c   :  { %v2640_v35 = vpop.xlane.xlu1 %2639  ;;  %v6084_v20 = vpack.c.bf16 %v2764_v19, %v2762_v30  ;;  %v2736_v49 = vmul.f32 %v2704_v42, %v5578_v61  ;;  %2922 = vmatprep.subr.bf16.mxu1 %v7909_v51  ;;  %v2766_v1 = vadd.f32 %v2734_v56, %v5587_v58  ;;  %v2706_v32 = vmul.f32 %v4454_v36, %v7911_v12  ;;  %v7916_v19 = vld [vmem:[#allocation34_spill] sm:$0xff] }
 0x27d   :  { %v4456_v26 = vpop.eup %4455  ;;  %v2656_v39 = vmul.f32 0.00390625, %v2640_v35  ;;  %4463 = vrsqrt.f32 %v2670_v11  ;;  %v2671_v15 = vadd.f32 1e-05, %v2655_v34  ;;  %v6100_v48 = vpack.c.bf16 %v2763_v21, %v2761_v60  ;;  %v7917_v35 = vld [vmem:[#allocation56_spill] sm:$0xff]  ;;  %v7918_v11 = vld [vmem:[#allocation58_spill] sm:$0xff]  ;;  %v7920_v21 = vld [vmem:[#allocation59_spill] sm:$0xff] }
 0x27e   :  { %2853 = vmatprep.mubr.bf16.mxu1 %v6084_v20  ;;  %v2768_v62 = vadd.f32 %v2736_v49, %v5587_v58  ;;  %v2708_v37 = vmul.f32 %v4456_v26, %v5815_v52  ;;  %v2735_v14 = vmul.f32 %v2703_v33, %v5575_v23  ;;  %v2733_v10 = vmul.f32 %v2701_v55, %v5575_v23  ;;  %v7919_v56 = vld [vmem:[#allocation62_spill] sm:$0xff]  ;;  %v7921_v60 = vld [vmem:[#allocation61_spill] sm:$0xff] }
 0x27f   :  { %2923 = vmatpush1.bf16.msra.mxu1 %v7910_v46  ;;  %v2672_v63 = vadd.f32 1e-05, %v2656_v39  ;;  %v2738_v8 = vmul.f32 %v2706_v32, %v5578_v61  ;;  %4465 = vrsqrt.f32 %v2671_v15  ;;  %v2707_v17 = vmul.f32 %v4456_v26, %v7915_v2  ;;  %v7924_v32 = vld [vmem:[#allocation20_spill] sm:$0xff]  ;;  %v7927_v2 = vld [vmem:[#allocation45_spill] sm:$0xff] }
 0x280   :  { %2924 = vmatprep.subr.bf16.mxu1 %v7912_v31  ;;  %v6104_v59 = vpack.c.bf16 %v2768_v62, %v2766_v1  ;;  %v2740_v38 = vmul.f32 %v2708_v37, %v5578_v61  ;;  %v2767_v41 = vadd.f32 %v2735_v14, %v5583_v6  ;;  %v2765_v45 = vadd.f32 %v2733_v10, %v5583_v6  ;;  %v7922_v37 = vld [vmem:[#allocation63_spill] sm:$0xff]  ;;  %v7923_v1 = vld [vmem:[#allocation21_spill] sm:$0xff] }
 0x281   :  { %4467 = vrsqrt.f32 %v2672_v63  ;;  %v2705_v50 = vmul.f32 %v4454_v36, %v7917_v35  ;;  %v2770_v4 = vadd.f32 %v2738_v8, %v5587_v58  ;;  %v2739_v26 = vmul.f32 %v2707_v17, %v5575_v23  ;;  %v6138_v31 = vld [vmem:[#allocation10] sm:$0xf] }
 0x282   :  { %2854 = vmatmul.mubr.bf16.gmra.mrb[72].mxu1 %v6100_v48  ;;  %v2772_v30 = vadd.f32 %v2740_v38, %v5587_v58  ;;  %v6122_v51 = vpack.c.bf16 %v2767_v41, %v2765_v45  ;;  %v7925_v10 = vld [vmem:[#allocation23_spill] sm:$0xff]  ;;  %v7926_v41 = vld [vmem:[#allocation36_spill] sm:$0xff]  ;;  %v6149_v17 = vrot.slane %v6138_v31, %v7927_v2  ;;  %v7929_v45 = vld [vmem:[#allocation46_spill] sm:$0xff] }
 0x283   :  { %v4458_v52 = vpop.eup %4457  ;;  %2863 = vmatprep.mubr.bf16.mxu1 %v6104_v59  ;;  %2925 = vmatpush1.bf16.msra.mxu1 %v7913_v47  ;;  %v2737_v36 = vmul.f32 %v2705_v50, %v5575_v23  ;;  %v2771_v15 = vadd.f32 %v2739_v26, %v5583_v6  ;;  %v6158_v35 = vrot.slane %v6138_v31, %v7929_v45  ;;  %v7930_v50 = vld [vmem:[#allocation37_spill] sm:$0xff] }
 0x284   :  { %v4460_v24 = vpop.eup %4459  ;;  %2926 = vmatprep.subr.bf16.mxu1 %v7914_v54  ;;  %v2712_v42 = vmul.f32 %v4458_v52, %v7916_v19  ;;  %v6126_v39 = vpack.c.bf16 %v2772_v30, %v2770_v4  ;;  %v2711_v12 = vmul.f32 %v4458_v52, %v7923_v1  ;;  %v7928_v30 = vld [vmem:[#allocation35_spill] sm:$0xff] }
 0x285   :  { %v2710_v49 = vmul.f32 %v4460_v24, %v7919_v56  ;;  %v4462_v34 = vpop.eup %4461  ;;  %v2709_v55 = vmul.f32 %v4460_v24, %v7921_v60  ;;  %v2769_v24 = vadd.f32 %v2737_v36, %v5583_v6 }
 0x286   :  { %v2744_v62 = vmul.f32 %v2712_v42, %v5578_v61  ;;  %v2714_v14 = vmul.f32 %v4462_v34, %v5854_v13  ;;  %v2713_v19 = vmul.f32 %v4462_v34, %v7928_v30 }
 0x287   :  { %2927 = vmatpush1.bf16.msra.mxu1 %v7918_v11  ;;  %v4464_v33 = vpop.eup %4463  ;;  %v2742_v46 = vmul.f32 %v2710_v49, %v5578_v61  ;;  %v2741_v54 = vmul.f32 %v2709_v55, %v5575_v23  ;;  %v6154_v42 = vpack.c.bf16 %v2771_v15, %v2769_v24 }
 0x288   :  { %2928 = vmatprep.subr.bf16.mxu1 %v7920_v21  ;;  %v2716_v63 = vmul.f32 %v4464_v33, %v5880_v0  ;;  %v2776_v38 = vadd.f32 %v2744_v62, %v5587_v58  ;;  %v2715_v47 = vmul.f32 %v4464_v33, %v7925_v10  ;;  %v2743_v0 = vmul.f32 %v2711_v12, %v5575_v23  ;;  %v7931_v62 = vld [vmem:[#allocation25_spill] sm:$0xff] }
 0x289   :  { %v4466_v8 = vpop.eup %4465  ;;  %v2774_v13 = vadd.f32 %v2742_v46, %v5587_v58  ;;  %v2746_v11 = vmul.f32 %v2714_v14, %v5578_v61  ;;  %v2773_v26 = vadd.f32 %v2741_v54, %v5583_v6  ;;  %v7934_v14 = vld [vmem:[#allocation40_spill] sm:$0xff] }
 0x28a   :  { %2864 = vmatmul.mubr.bf16.gmra.mrb[76].mxu1 %v6122_v51  ;;  %v2748_v4 = vmul.f32 %v2716_v63, %v5578_v61  ;;  %v2747_v49 = vmul.f32 %v2715_v47, %v5575_v23  ;;  %v2718_v21 = vmul.f32 %v4466_v8, %v5886_v7  ;;  %v2717_v36 = vmul.f32 %v4466_v8, %v7931_v62 }
 0x28b   :  { %2873 = vmatprep.mubr.bf16.mxu1 %v6126_v39  ;;  %2929 = vmatpush1.bf16.msra.mxu1 %v7922_v37  ;;  %v4468_v52 = vpop.eup %4467  ;;  %v6163_v56 = vpack.c.bf16 %v2776_v38, %v2774_v13  ;;  %v7932_v37 = vld [vmem:[#allocation38_spill] sm:$0xff]  ;;  %v2775_v46 = vadd.f32 %v2743_v0, %v5583_v6  ;;  %v2745_v7 = vmul.f32 %v2713_v19, %v5575_v23 }
 0x28c   :  { %2930 = vmatprep.subr.bf16.mxu1 %v7924_v32  ;;  %v2720_v33 = vmul.f32 %v4468_v52, %v5913_v3  ;;  %v7933_v32 = vld [vmem:[#allocation39_spill] sm:$0xff]  ;;  %v2778_v3 = vadd.f32 %v2746_v11, %v5587_v58  ;;  %v2780_v15 = vadd.f32 %v2748_v4, %v5587_v58  ;;  %v2719_v63 = vmul.f32 %v4468_v52, %v7934_v14 }
 0x28d   :  { %v2779_v8 = vadd.f32 %v2747_v49, %v5583_v6  ;;  %v2750_v24 = vmul.f32 %v2718_v21, %v5578_v61  ;;  %v2749_v0 = vmul.f32 %v2717_v36, %v5575_v23  ;;  %v6199_v19 = vpack.c.bf16 %v2775_v46, %v2773_v26  ;;  %v7936_v46 = vld [vmem:[#allocation44_spill] sm:$0xff] }
 0x28e   :  { %v2752_v13 = vmul.f32 %v2720_v33, %v5578_v61  ;;  %v2777_v11 = vadd.f32 %v2745_v7, %v5583_v6  ;;  %v6204_v49 = vpack.c.bf16 %v2780_v15, %v2778_v3  ;;  %v2751_v61 = vmul.f32 %v2719_v63, %v5575_v23 }
 0x28f   :  { %2931 = vmatpush1.bf16.msra.mxu1 %v7926_v41  ;;  %v2782_v62 = vadd.f32 %v2750_v24, %v5587_v58  ;;  %v648_v7 = vsub.s32 2, %v7936_v46 }
 0x290   :  { %2932 = vmatprep.subr.bf16.mxu1 %v7930_v50  ;;  %v7935_v50 = vld [vmem:[#allocation41_spill] sm:$0xff]  ;;  %v6211_v26 = vpack.c.bf16 %v2779_v8, %v2777_v11  ;;  %v2783_v63 = vadd.f32 %v2751_v61, %v5583_v6 }
 0x292   :  { %2874 = vmatmul.mubr.bf16.gmra.mrb[80].mxu1 %v6154_v42 }
 0x293   :  { %v1012_v34 = vpop.f32.mrb[0].mxu1  ;;  %2883 = vmatprep.mubr.bf16.mxu1 %v6163_v56  ;;  %2933 = vmatpush1.bf16.msra.mxu1 %v7932_v37  ;;  %v2781_v37 = vadd.f32 %v2749_v0, %v5583_v6 }
 0x294   :  { %v6172_v60 = vadd.f32 %v1012_v34, %v6149_v17  ;;  %v1014_v55 = vpop.f32.mrb[1].mxu1  ;;  %2934 = vmatprep.subr.bf16.mxu1 %v7933_v32 }
 0x295   :  { %v6179_v1 = vadd.f32 %v1014_v55, %v6158_v35  ;;  %v1016_v12 = vpop.f32.mrb[2].mxu1  ;;  %v2784_v55 = vadd.f32 %v2752_v13, %v5587_v58 }
 0x296   :  { %v1268_v38 = vmul.f32 0.044715, %v6172_v60  ;;  %v6187_v10 = vadd.f32 %v1016_v12, %v6149_v17  ;;  %v1018_v47 = vpop.f32.mrb[3].mxu1 }
 0x297   :  { %v1269_v54 = vmul.f32 0.044715, %v6179_v1  ;;  %v6193_v41 = vadd.f32 %v1018_v47, %v6158_v35  ;;  %2935 = vmatpush1.bf16.msra.mxu1 %v7935_v50 }
 0x298   :  { %v1332_v52 = vmul.f32 %v1268_v38, %v6172_v60  ;;  %v1272_v30 = vmul.f32 0.044715, %v6187_v10  ;;  %2936 = vmatprep.subr.bf16.mxu1 %v5937_v57 }
 0x299   :  { %v1273_v4 = vmul.f32 0.044715, %v6193_v41  ;;  %v1333_v21 = vmul.f32 %v1269_v54, %v6179_v1 }
 0x29a   :  { %v1396_v34 = vmul.f32 %v1332_v52, %v6172_v60  ;;  %v1336_v33 = vmul.f32 %v1272_v30, %v6187_v10  ;;  %2884 = vmatmul.mubr.bf16.gmra.mrb[84].mxu1 %v6199_v19 }
 0x29b   :  { %v1022_v36 = vpop.f32.mrb[4].mxu1  ;;  %v1337_v57 = vmul.f32 %v1273_v4, %v6193_v41  ;;  %v1397_v23 = vmul.f32 %v1333_v21, %v6179_v1  ;;  %2893 = vmatprep.mubr.bf16.mxu1 %v6204_v49  ;;  %2937 = vmatpush1.bf16.msra.mxu1 %v5946_v43 }
 0x29c   :  { %v1400_v12 = vmul.f32 %v1336_v33, %v6187_v10  ;;  %v6222_v32 = vadd.f32 %v1022_v36, %v6149_v17  ;;  %v1024_v3 = vpop.f32.mrb[5].mxu1  ;;  %v1460_v58 = vadd.f32 %v1396_v34, %v6172_v60  ;;  %2938 = vmatprep.subr.bf16.mxu1 %v5954_v44  ;;  %v6252_v36 = vpack.c.bf16 %v2784_v55, %v2782_v62 }
 0x29d   :  { %v6228_v15 = vadd.f32 %v1024_v3, %v6158_v35  ;;  %v1026_v14 = vpop.f32.mrb[6].mxu1  ;;  %v1401_v38 = vmul.f32 %v1337_v57, %v6193_v41  ;;  %v1461_v47 = vadd.f32 %v1397_v23, %v6179_v1  ;;  %v6266_v55 = vpack.c.bf16 %v2783_v63, %v2781_v37 }
 0x29e   :  { %v1276_v8 = vmul.f32 0.044715, %v6222_v32  ;;  %v6236_v24 = vadd.f32 %v1026_v14, %v6149_v17  ;;  %v1028_v43 = vpop.f32.mrb[7].mxu1  ;;  %v1464_v54 = vadd.f32 %v1400_v12, %v6187_v10  ;;  %v1524_v13 = vmul.f32 0.7978845, %v1460_v58 }
 0x29f   :  { %v1277_v0 = vmul.f32 0.044715, %v6228_v15  ;;  %v6241_v52 = vadd.f32 %v1028_v43, %v6158_v35  ;;  %v1465_v6 = vadd.f32 %v1401_v38, %v6193_v41  ;;  %v1525_v44 = vmul.f32 0.7978845, %v1461_v47  ;;  %2939 = vmatpush1.bf16.msra.mxu1 %v5967_v40 }
 0x2a0   :  { %v1340_v30 = vmul.f32 %v1276_v8, %v6222_v32  ;;  %v1280_v50 = vmul.f32 0.044715, %v6236_v24  ;;  %v1528_v11 = vmul.f32 0.7978845, %v1464_v54  ;;  %4469 = vtanh.f32 %v1524_v13  ;;  %2940 = vmatprep.subr.bf16.mxu1 %v5973_v29 }
 0x2a1   :  { %v1341_v4 = vmul.f32 %v1277_v0, %v6228_v15  ;;  %v1281_v61 = vmul.f32 0.044715, %v6241_v52  ;;  %v1529_v21 = vmul.f32 0.7978845, %v1465_v6  ;;  %4471 = vtanh.f32 %v1525_v44 }
 0x2a2   :  { %v1404_v34 = vmul.f32 %v1340_v30, %v6222_v32  ;;  %v1344_v33 = vmul.f32 %v1280_v50, %v6236_v24  ;;  %4473 = vtanh.f32 %v1528_v11  ;;  %2894 = vmatmul.mubr.bf16.gmra.mrb[88].mxu1 %v6211_v26  ;;  %v6258_v12 = vrot.slane %v6138_v31, %v648_v7 }
 0x2a3   :  { %v1405_v57 = vmul.f32 %v1341_v4, %v6228_v15  ;;  %v1345_v40 = vmul.f32 %v1281_v61, %v6241_v52  ;;  %v1032_v23 = vpop.f32.mrb[8].mxu1  ;;  %4475 = vtanh.f32 %v1529_v21  ;;  %2903 = vmatprep.mubr.bf16.mxu1 %v6252_v36  ;;  %2941 = vmatpush1.bf16.msra.mxu1 %v5981_v22  ;;  %v1204_v58 = vmul.f32 0.5, %v6172_v60 }
 0x2a4   :  { %v1408_v29 = vmul.f32 %v1344_v33, %v6236_v24  ;;  %v6262_v3 = vadd.f32 %v1032_v23, %v6149_v17  ;;  %v1034_v62 = vpop.f32.mrb[9].mxu1  ;;  %2942 = vmatprep.subr.bf16.mxu1 %v5987_v16  ;;  %v1468_v8 = vadd.f32 %v1404_v34, %v6222_v32  ;;  %v1205_v60 = vmul.f32 0.5, %v6179_v1 }
 0x2a5   :  { %v1409_v14 = vmul.f32 %v1345_v40, %v6241_v52  ;;  %v6271_v38 = vadd.f32 %v1034_v62, %v6158_v35  ;;  %v1036_v7 = vpop.f32.mrb[10].mxu1  ;;  %v1469_v47 = vadd.f32 %v1405_v57, %v6228_v15  ;;  %v1209_v34 = vmul.f32 0.5, %v6193_v41 }
 0x2a6   :  { %v1284_v43 = vmul.f32 0.044715, %v6262_v3  ;;  %v6278_v22 = vadd.f32 %v1036_v7, %v6149_v17  ;;  %v1038_v37 = vpop.f32.mrb[11].mxu1  ;;  %v1472_v63 = vadd.f32 %v1408_v29, %v6236_v24  ;;  %v1532_v30 = vmul.f32 0.7978845, %v1468_v8 }
 0x2a7   :  { %v1285_v54 = vmul.f32 0.044715, %v6271_v38  ;;  %v6284_v13 = vadd.f32 %v1038_v37, %v6158_v35  ;;  %v1473_v16 = vadd.f32 %v1409_v14, %v6241_v52  ;;  %v1533_v0 = vmul.f32 0.7978845, %v1469_v47  ;;  %2943 = vmatpush1.bf16.msra.mxu1 %v5996_v53 }
 0x2a8   :  { %v1348_v6 = vmul.f32 %v1284_v43, %v6262_v3  ;;  %v1288_v44 = vmul.f32 0.044715, %v6278_v22  ;;  %v1536_v50 = vmul.f32 0.7978845, %v1472_v63  ;;  %2944 = vmatprep.subr.bf16.mxu1 %v6001_v5  ;;  %v1208_v33 = vmul.f32 0.5, %v6187_v10 }
 0x2a9   :  { %v1349_v1 = vmul.f32 %v1285_v54, %v6271_v38  ;;  %v1289_v11 = vmul.f32 0.044715, %v6284_v13  ;;  %v1537_v4 = vmul.f32 0.7978845, %v1473_v16  ;;  %4477 = vtanh.f32 %v1533_v0 }
 0x2aa   :  { %v4470_v61 = vpop.eup %4469  ;;  %v1352_v21 = vmul.f32 %v1288_v44, %v6278_v22  ;;  %4479 = vtanh.f32 %v1532_v30  ;;  %2904 = vmatmul.mubr.bf16.gmra.mrb[92].mxu1 %v6266_v55  ;;  %v6299_v29 = vmul.f32 0.5, %v6228_v15  ;;  %v1412_v47 = vmul.f32 %v1348_v6, %v6262_v3 }
 0x2ab   :  { %v4472_v57 = vpop.eup %4471  ;;  %v1353_v53 = vmul.f32 %v1289_v11, %v6284_v13  ;;  %v1042_v40 = vpop.f32.mrb[12].mxu1  ;;  %v1652_v23 = vadd.f32 1.0, %v4470_v61  ;;  %4481 = vtanh.f32 %v1537_v4  ;;  %v1413_v62 = vmul.f32 %v1349_v1, %v6271_v38  ;;  %2946 = vmatprep.mubr.bf16.mxu1 %v6042_v25  ;;  %2945 = vmatpush1.bf16.msra.mxu1 %v6006_v28 }
 0x2ac   :  { %v4474_v5 = vpop.eup %4473  ;;  %v6303_v14 = vadd.f32 %v1042_v40, %v6149_v17  ;;  %v1044_v10 = vpop.f32.mrb[13].mxu1  ;;  %v1653_v41 = vadd.f32 1.0, %v4472_v57  ;;  %4483 = vtanh.f32 %v1536_v50  ;;  %v1416_v63 = vmul.f32 %v1352_v21, %v6278_v22 }
 0x2ad   :  { %v4476_v7 = vpop.eup %4475  ;;  %v1417_v15 = vmul.f32 %v1353_v53, %v6284_v13  ;;  %v6310_v8 = vadd.f32 %v1044_v10, %v6158_v35  ;;  %v1046_v43 = vpop.f32.mrb[14].mxu1  ;;  %v1656_v37 = vadd.f32 1.0, %v4474_v5  ;;  %v1716_v44 = vmul.f32 %v1652_v23, %v1204_v58  ;;  %v4357_v10 = vld [vmem:[#allocation11 + $0x100] ss:$8 sps:$4 sm:$0xff]  }
 0x2ae   :  { %v1292_v54 = vmul.f32 0.044715, %v6303_v14  ;;  %v6315_v25 = vadd.f32 %v1046_v43, %v6149_v17  ;;  %v1048_v28 = vpop.f32.mrb[15].mxu1  ;;  %v1657_v16 = vadd.f32 1.0, %v4476_v7  ;;  %v1717_v1 = vmul.f32 %v1653_v41, %v1205_v60 }
 0x2af   :  { %v1293_v0 = vmul.f32 0.044715, %v6310_v8  ;;  %v6319_v6 = vadd.f32 %v1048_v28, %v6158_v35  ;;  %v1720_v30 = vmul.f32 %v1656_v37, %v1208_v33  ;;  %v1477_v4 = vadd.f32 %v1413_v62, %v6271_v38  ;;  %v4362_v62 = vld [vmem:[#allocation11 + $0x114] ss:$8 sps:$4 sm:$0xff]  }
 0x2b0   :  { %v1296_v50 = vmul.f32 0.044715, %v6315_v25  ;;  %v1721_v11 = vmul.f32 %v1657_v16, %v1209_v34  ;;  %v1481_v53 = vadd.f32 %v1417_v15, %v6284_v13  ;;  %v1356_v40 = vmul.f32 %v1292_v54, %v6303_v14 }
 0x2b1   :  { %v1357_v61 = vmul.f32 %v1293_v0, %v6310_v8  ;;  %v1297_v21 = vmul.f32 0.044715, %v6319_v6  ;;  %v1780_v57 = vpack.c.bf16 %v1720_v30, %v1716_v44  ;;  %v1217_v58 = vmul.f32 0.5, %v6241_v52  ;;  %v4360_v44 = vld [vmem:[#allocation11 + $0x110] ss:$8 sps:$4 sm:$0xff]  }
 0x2b2   :  { %v1781_v5 = vpack.c.bf16 %v1721_v11, %v1717_v1  ;;  %v1541_v33 = vmul.f32 0.7978845, %v1477_v4  ;;  %v1360_v60 = vmul.f32 %v1296_v50, %v6315_v25  ;;  %2947 = vmatmul.mubr.bf16.vlgmr.msra.gmra.mrb[96].mxu1 %v6044_v9  ;;  %v1212_v41 = vmul.f32 0.5, %v6222_v32  ;;  %v4365_v4 = vld [vmem:[#allocation11 + $0x124] ss:$8 sps:$4 sm:$0xff]  }
 0x2b3   :  { %v4478_v23 = vpop.eup %4477  ;;  %v1361_v34 = vmul.f32 %v1297_v21, %v6319_v6  ;;  %v1545_v7 = vmul.f32 0.7978845, %v1481_v53  ;;  %v1421_v15 = vmul.f32 %v1357_v61, %v6310_v8  ;;  %2956 = vmatprep.mubr.bf16.mxu1 %v6069_v27  ;;  %v1476_v52 = vadd.f32 %v1412_v47, %v6262_v3 }
 0x2b4   :  { %v4480_v43 = vpop.eup %4479  ;;  %2175 = vmatprep.mubr.bf16.mxu0 %v1781_v5  ;;  %v1661_v37 = vadd.f32 1.0, %v4478_v23  ;;  %4485 = vtanh.f32 %v1541_v33  ;;  %v1480_v9 = vadd.f32 %v1416_v63, %v6278_v22  ;;  %v1420_v0 = vmul.f32 %v1356_v40, %v6303_v14  ;;  %v4363_v33 = vld [vmem:[#allocation11 + $0x120] ss:$8 sps:$4 sm:$0xff]  }
 0x2b5   :  { %v4482_v54 = vpop.eup %4481  ;;  %v1425_v28 = vmul.f32 %v1361_v34, %v6319_v6  ;;  %2176 = vmatmul.mubr.bf16.vlgmr.msra.gmra.mrb[0].mxu0 %v1780_v57  ;;  %v1660_v16 = vadd.f32 1.0, %v4480_v43  ;;  %4487 = vtanh.f32 %v1545_v7  ;;  %v1216_v27 = vmul.f32 0.5, %v6236_v24 }
 0x2b6   :  { %v4484_v32 = vpop.eup %4483  ;;  %2257 = vmatpush1.bf16.msra.mxu0 %v4357_v10  ;;  %v1665_v30 = vadd.f32 1.0, %v4482_v54  ;;  %v1540_v50 = vmul.f32 0.7978845, %v1476_v52  ;;  %v1424_v1 = vmul.f32 %v1360_v60, %v6315_v25  ;;  %v1725_v47 = vmul.f32 %v1661_v37, %v6299_v29 }
 0x2b7   :  { %2258 = vmatprep.subr.bf16.mxu0 %v4362_v62  ;;  %v1664_v11 = vadd.f32 1.0, %v4484_v32  ;;  %v1544_v61 = vmul.f32 0.7978845, %v1480_v9  ;;  %v1485_v63 = vadd.f32 %v1421_v15, %v6310_v8  ;;  %v1489_v53 = vadd.f32 %v1425_v28, %v6319_v6  ;;  %v4368_v15 = vld [vmem:[#allocation11 + $0x134] ss:$8 sps:$4 sm:$0xff]  }
 0x2b8   :  { %v1729_v57 = vmul.f32 %v1665_v30, %v1217_v58  ;;  %4489 = vtanh.f32 %v1540_v50  ;;  %v1724_v5 = vmul.f32 %v1660_v16, %v1212_v41  ;;  %v1221_v37 = vmul.f32 0.5, %v6271_v38  ;;  %v4366_v9 = vld [vmem:[#allocation11 + $0x130] ss:$8 sps:$4 sm:$0xff]  }
 0x2b9   :  { %v1052_v21 = vpop.f32.mrb[16].mxu1  ;;  %v1728_v10 = vmul.f32 %v1664_v11, %v1216_v27  ;;  %4491 = vtanh.f32 %v1544_v61  ;;  %v1549_v58 = vmul.f32 0.7978845, %v1485_v63  ;;  %v1553_v34 = vmul.f32 0.7978845, %v1489_v53 }
 0x2ba   :  { %v6344_v40 = vadd.f32 %v1052_v21, %v6149_v17  ;;  %v1054_v24 = vpop.f32.mrb[17].mxu1  ;;  %2259 = vmatpush1.bf16.msra.mxu0 %v4360_v44  ;;  %v1785_v60 = vpack.c.bf16 %v1729_v57, %v1725_v47  ;;  %2957 = vmatmul.mubr.bf16.gmra.mrb[100].mxu1 %v6071_v18  ;;  %v1484_v28 = vadd.f32 %v1420_v0, %v6303_v14  ;;  %v652_v53 = vsub.s32 3, %v7936_v46 }
 0x2bb   :  { %v6347_v29 = vadd.f32 %v1054_v24, %v6158_v35  ;;  %v1056_v23 = vpop.f32.mrb[18].mxu1  ;;  %v1784_v41 = vpack.c.bf16 %v1728_v10, %v1724_v5  ;;  %2260 = vmatprep.subr.bf16.mxu0 %v4365_v4  ;;  %2966 = vmatprep.mubr.bf16.mxu1 %v6084_v20  ;;  %4493 = vtanh.f32 %v1549_v58  ;;  %v1488_v38 = vadd.f32 %v1424_v1, %v6315_v25  ;;  %v4371_v4 = vld [vmem:[#allocation11 + $0x144] ss:$8 sps:$4 sm:$0xff]  }
 0x2bc   :  { %v1300_v62 = vmul.f32 0.044715, %v6344_v40  ;;  %v6351_v7 = vadd.f32 %v1056_v23, %v6149_v17  ;;  %v1058_v43 = vpop.f32.mrb[19].mxu1  ;;  %2185 = vmatprep.mubr.bf16.mxu0 %v1785_v60  ;;  %4495 = vtanh.f32 %v1553_v34  ;;  %v1225_v20 = vmul.f32 0.5, %v6284_v13  ;;  %v4369_v23 = vld [vmem:[#allocation11 + $0x140] ss:$8 sps:$4 sm:$0xff]  }
 0x2bd   :  { %v1301_v52 = vmul.f32 0.044715, %v6347_v29  ;;  %v6357_v54 = vadd.f32 %v1058_v43, %v6158_v35  ;;  %2186 = vmatmul.mubr.bf16.gmra.mrb[4].mxu0 %v1784_v41  ;;  %v1548_v27 = vmul.f32 0.7978845, %v1484_v28  ;;  %v1552_v61 = vmul.f32 0.7978845, %v1488_v38 }
 0x2be   :  { %v1364_v16 = vmul.f32 %v1300_v62, %v6344_v40  ;;  %v1304_v18 = vmul.f32 0.044715, %v6351_v7  ;;  %v4486_v32 = vpop.eup %4485  ;;  %2261 = vmatpush1.bf16.msra.mxu0 %v4363_v33  ;;  %v1220_v13 = vmul.f32 0.5, %v6262_v3  ;;  %v1224_v62 = vmul.f32 0.5, %v6278_v22  ;;  %v4374_v3 = vld [vmem:[#allocation11 + $0x154] ss:$8 sps:$4 sm:$0xff]  }
 0x2bf   :  { %v1365_v44 = vmul.f32 %v1301_v52, %v6347_v29  ;;  %v1305_v30 = vmul.f32 0.044715, %v6357_v54  ;;  %v4488_v50 = vpop.eup %4487  ;;  %2262 = vmatprep.subr.bf16.mxu0 %v4368_v15  ;;  %v1669_v11 = vadd.f32 1.0, %v4486_v32  ;;  %4497 = vtanh.f32 %v1548_v27 }
 0x2c0   :  { %v1428_v0 = vmul.f32 %v1364_v16, %v6344_v40  ;;  %v1368_v47 = vmul.f32 %v1304_v18, %v6351_v7  ;;  %v1673_v57 = vadd.f32 1.0, %v4488_v50  ;;  %4499 = vtanh.f32 %v1552_v61 }
 0x2c1   :  { %v1429_v1 = vmul.f32 %v1365_v44, %v6347_v29  ;;  %v1369_v21 = vmul.f32 %v1305_v30, %v6357_v54  ;;  %v1733_v10 = vmul.f32 %v1669_v11, %v1221_v37  ;;  %v1229_v41 = vmul.f32 0.5, %v6310_v8  ;;  %v4372_v11 = vld [vmem:[#allocation11 + $0x150] ss:$8 sps:$4 sm:$0xff]  }
 0x2c2   :  { %v1432_v63 = vmul.f32 %v1368_v47, %v6351_v7  ;;  %v4490_v24 = vpop.eup %4489  ;;  %2263 = vmatpush1.bf16.msra.mxu0 %v4366_v9  ;;  %v1737_v33 = vmul.f32 %v1673_v57, %v1225_v20  ;;  %2967 = vmatmul.mubr.bf16.gmra.mrb[104].mxu1 %v6100_v48  ;;  %v1492_v15 = vadd.f32 %v1428_v0, %v6344_v40  ;;  %v1228_v57 = vmul.f32 0.5, %v6303_v14 }
 0x2c3   :  { %v1433_v5 = vmul.f32 %v1369_v21, %v6357_v54  ;;  %v1493_v60 = vadd.f32 %v1429_v1, %v6347_v29  ;;  %v4492_v58 = vpop.eup %4491  ;;  %v1668_v43 = vadd.f32 1.0, %v4490_v24  ;;  %2264 = vmatprep.subr.bf16.mxu0 %v4371_v4  ;;  %2976 = vmatprep.mubr.bf16.mxu1 %v6104_v59  ;;  %v1233_v1 = vmul.f32 0.5, %v6319_v6 }
 0x2c4   :  { %v1062_v34 = vpop.f32.mrb[20].mxu1  ;;  %v1789_v37 = vpack.c.bf16 %v1737_v33, %v1733_v10  ;;  %v1672_v28 = vadd.f32 1.0, %v4492_v58  ;;  %v1496_v18 = vadd.f32 %v1432_v63, %v6351_v7  ;;  %v1556_v27 = vmul.f32 0.7978845, %v1492_v15  ;;  %v4377_v63 = vld [vmem:[#allocation11 + $0x164] ss:$8 sps:$4 sm:$0xff]  }
 0x2c5   :  { %v1064_v52 = vpop.f32.mrb[21].mxu1  ;;  %v1497_v16 = vadd.f32 %v1433_v5, %v6357_v54  ;;  %v6384_v48 = vadd.f32 %v1062_v34, %v6149_v17  ;;  %v1732_v38 = vmul.f32 %v1668_v43, %v1220_v13  ;;  %v1557_v8 = vmul.f32 0.7978845, %v1493_v60  ;;  %v4494_v32 = vpop.eup %4493 }
 0x2c6   :  { %v6387_v22 = vadd.f32 %v1064_v52, %v6158_v35  ;;  %v1066_v9 = vpop.f32.mrb[22].mxu1  ;;  %2195 = vmatprep.mubr.bf16.mxu0 %v1789_v37  ;;  %v1736_v30 = vmul.f32 %v1672_v28, %v1224_v62  ;;  %2265 = vmatpush1.bf16.msra.mxu0 %v4369_v23  ;;  %v4496_v50 = vpop.eup %4495  ;;  %v1677_v4 = vadd.f32 1.0, %v4494_v32  ;;  %v1560_v58 = vmul.f32 0.7978845, %v1496_v18 }
 0x2c7   :  { %v6390_v44 = vadd.f32 %v1066_v9, %v6149_v17  ;;  %v1068_v59 = vpop.f32.mrb[23].mxu1  ;;  %v1561_v20 = vmul.f32 0.7978845, %v1497_v16  ;;  %2266 = vmatprep.subr.bf16.mxu0 %v4374_v3  ;;  %4501 = vtanh.f32 %v1557_v8  ;;  %v1681_v21 = vadd.f32 1.0, %v4496_v50  ;;  %v4375_v3 = vld [vmem:[#allocation11 + $0x160] ss:$8 sps:$4 sm:$0xff]  }
 0x2c8   :  { %v1309_v0 = vmul.f32 0.044715, %v6387_v22  ;;  %v6394_v47 = vadd.f32 %v1068_v59, %v6158_v35  ;;  %v1788_v61 = vpack.c.bf16 %v1736_v30, %v1732_v38  ;;  %v1308_v13 = vmul.f32 0.044715, %v6384_v48  ;;  %v4380_v16 = vld [vmem:[#allocation11 + $0x174] ss:$8 sps:$4 sm:$0xff]  }
 0x2c9   :  { %4503 = vtanh.f32 %v1561_v20  ;;  %v4498_v10 = vpop.eup %4497  ;;  %v1312_v33 = vmul.f32 0.044715, %v6390_v44  ;;  %v1741_v23 = vmul.f32 %v1677_v4, %v1229_v41  ;;  %v1745_v60 = vmul.f32 %v1681_v21, %v1233_v1  ;;  %v4378_v50 = vld [vmem:[#allocation11 + $0x170] ss:$8 sps:$4 sm:$0xff]  }
 0x2ca   :  { %v1373_v24 = vmul.f32 %v1309_v0, %v6387_v22  ;;  %v1313_v5 = vmul.f32 0.044715, %v6394_v47  ;;  %2196 = vmatmul.mubr.bf16.gmra.mrb[8].mxu0 %v1788_v61  ;;  %v4500_v34 = vpop.eup %4499  ;;  %2977 = vmatmul.mubr.bf16.gmra.mrb[108].mxu1 %v6122_v51  ;;  %v1676_v43 = vadd.f32 1.0, %v4498_v10  ;;  %4505 = vtanh.f32 %v1556_v27 }
 0x2cb   :  { %2267 = vmatpush1.bf16.msra.mxu0 %v4372_v11  ;;  %2986 = vmatprep.mubr.bf16.mxu1 %v6126_v39  ;;  %v1793_v41 = vpack.c.bf16 %v1745_v60, %v1741_v23  ;;  %v1232_v37 = vmul.f32 0.5, %v6315_v25  ;;  %v1680_v28 = vadd.f32 1.0, %v4500_v34  ;;  %v1372_v18 = vmul.f32 %v1308_v13, %v6384_v48  ;;  %v4381_v60 = vld [vmem:[#allocation11 + $0x180] ss:$8 sps:$4 sm:$0xff]  }
 0x2cc   :  { %v1437_v6 = vmul.f32 %v1373_v24, %v6387_v22  ;;  %v1377_v14 = vmul.f32 %v1313_v5, %v6394_v47  ;;  %v1072_v62 = vpop.f32.mrb[24].mxu1  ;;  %2268 = vmatprep.subr.bf16.mxu0 %v4377_v63  ;;  %4507 = vtanh.f32 %v1560_v58  ;;  %v1740_v32 = vmul.f32 %v1676_v43, %v1228_v57 }
 0x2cd   :  { %v6406_v15 = vadd.f32 %v1072_v62, %v6149_v17  ;;  %v1074_v52 = vpop.f32.mrb[25].mxu1  ;;  %2205 = vmatprep.mubr.bf16.mxu0 %v1793_v41  ;;  %v1744_v59 = vmul.f32 %v1680_v28, %v1232_v37  ;;  %v6418_v39 = vrot.slane %v6138_v31, %v652_v53  ;;  %v1237_v25 = vmul.f32 0.5, %v6347_v29  ;;  %v4383_v53 = vld [vmem:[#allocation11 + $0x184] ss:$8 sps:$4 sm:$0xff]  }
 0x2ce   :  { %v1441_v9 = vmul.f32 %v1377_v14, %v6394_v47  ;;  %v6413_v51 = vadd.f32 %v1074_v52, %v6158_v35  ;;  %v1076_v38 = vpop.f32.mrb[26].mxu1  ;;  %v1376_v30 = vmul.f32 %v1312_v33, %v6390_v44  ;;  %v1501_v0 = vadd.f32 %v1437_v6, %v6387_v22  ;;  %v4386_v14 = vld [vmem:[#allocation11 + $0x194] ss:$8 sps:$4 sm:$0xff]  }
 0x2cf   :  { %v1078_v8 = vpop.f32.mrb[27].mxu1  ;;  %v6423_v20 = vadd.f32 %v1076_v38, %v6149_v17  ;;  %2269 = vmatpush1.bf16.msra.mxu0 %v4375_v3  ;;  %v1316_v11 = vmul.f32 0.044715, %v6406_v15  ;;  %v1792_v46 = vpack.c.bf16 %v1744_v59, %v1740_v32  ;;  %v1241_v31 = vmul.f32 0.5, %v6357_v54  ;;  %v4384_v38 = vld [vmem:[#allocation11 + $0x190] ss:$8 sps:$4 sm:$0xff]  }
 0x2d0   :  { %v6426_v27 = vadd.f32 %v1078_v8, %v6158_v35  ;;  %2270 = vmatprep.subr.bf16.mxu0 %v4380_v16  ;;  %v1505_v29 = vadd.f32 %v1441_v9, %v6394_v47  ;;  %v1436_v61 = vmul.f32 %v1372_v18, %v6384_v48  ;;  %v1317_v1 = vmul.f32 0.044715, %v6413_v51 }
 0x2d1   :  { %v4502_v4 = vpop.eup %4501  ;;  %v1565_v57 = vmul.f32 0.7978845, %v1501_v0  ;;  %v1236_v13 = vmul.f32 0.5, %v6344_v40  ;;  %v1240_v24 = vmul.f32 0.5, %v6351_v7  ;;  %v1440_v54 = vmul.f32 %v1376_v30, %v6390_v44  ;;  %v4389_v0 = vld [vmem:[#allocation11 + $0x1a4] ss:$8 sps:$4 sm:$0xff]  }
 0x2d2   :  { %v1321_v21 = vmul.f32 0.044715, %v6426_v27  ;;  %2206 = vmatmul.mubr.bf16.gmra.mrb[12].mxu0 %v1792_v46  ;;  %v1685_v63 = vadd.f32 1.0, %v4502_v4  ;;  %v1569_v5 = vmul.f32 0.7978845, %v1505_v29  ;;  %2987 = vmatmul.mubr.bf16.gmra.mrb[112].mxu1 %v6154_v42  ;;  %v6441_v58 = vmul.f32 0.5, %v6387_v22 }
 0x2d3   :  { %v4504_v10 = vpop.eup %4503  ;;  %v1320_v33 = vmul.f32 0.044715, %v6423_v20  ;;  %2271 = vmatpush1.bf16.msra.mxu0 %v4378_v50  ;;  %4509 = vtanh.f32 %v1565_v57  ;;  %v1380_v34 = vmul.f32 %v1316_v11, %v6406_v15  ;;  %2996 = vmatprep.mubr.bf16.mxu1 %v6163_v56  ;;  %v6449_v62 = vmul.f32 0.5, %v6394_v47 }
 0x2d4   :  { %v1082_v23 = vpop.f32.mrb[28].mxu1  ;;  %v1689_v6 = vadd.f32 1.0, %v4504_v10  ;;  %2272 = vmatprep.subr.bf16.mxu0 %v4383_v53  ;;  %v4506_v42 = vpop.eup %4505  ;;  %v1381_v43 = vmul.f32 %v1317_v1, %v6413_v51  ;;  %v1385_v22 = vmul.f32 %v1321_v21, %v6426_v27  ;;  %4511 = vtanh.f32 %v1569_v5 }
 0x2d5   :  { %v6445_v40 = vadd.f32 %v1082_v23, %v6149_v17  ;;  %v1084_v7 = vpop.f32.mrb[29].mxu1  ;;  %v1500_v52 = vadd.f32 %v1436_v61, %v6384_v48  ;;  %v1749_v56 = vmul.f32 %v1685_v63, %v1237_v25  ;;  %v1684_v16 = vadd.f32 1.0, %v4506_v42  ;;  %v4387_v63 = vld [vmem:[#allocation11 + $0x1a0] ss:$8 sps:$4 sm:$0xff]  }
 0x2d6   :  { %v1086_v3 = vpop.f32.mrb[30].mxu1  ;;  %v6455_v41 = vadd.f32 %v1084_v7, %v6158_v35  ;;  %v1753_v28 = vmul.f32 %v1689_v6, %v1241_v31  ;;  %v4508_v18 = vpop.eup %4507  ;;  %v1384_v47 = vmul.f32 %v1320_v33, %v6423_v20  ;;  %v1504_v8 = vadd.f32 %v1440_v54, %v6390_v44  ;;  %v4392_v33 = vld [vmem:[#allocation11 + $0x1b4] ss:$8 sps:$4 sm:$0xff]  }
 0x2d7   :  { %v1088_v37 = vpop.f32.mrb[31].mxu1  ;;  %v6459_v9 = vadd.f32 %v1086_v3, %v6149_v17  ;;  %2273 = vmatpush1.bf16.msra.mxu0 %v4381_v60  ;;  %v1564_v32 = vmul.f32 0.7978845, %v1500_v52  ;;  %v1324_v59 = vmul.f32 0.044715, %v6445_v40  ;;  %v1688_v50 = vadd.f32 1.0, %v4508_v18 }
 0x2d8   :  { %v1797_v30 = vpack.c.bf16 %v1753_v28, %v1749_v56  ;;  %2274 = vmatprep.subr.bf16.mxu0 %v4386_v14  ;;  %v6464_v25 = vmul.f32 0.5, %v6384_v48  ;;  %v1445_v11 = vmul.f32 %v1381_v43, %v6413_v51  ;;  %v1449_v46 = vmul.f32 %v1385_v22, %v6426_v27  ;;  %v4390_v22 = vld [vmem:[#allocation11 + $0x1b0] ss:$8 sps:$4 sm:$0xff]  }
 0x2d9   :  { %v6469_v31 = vadd.f32 %v1088_v37, %v6158_v35  ;;  %v1568_v53 = vmul.f32 0.7978845, %v1504_v8  ;;  %v1325_v29 = vmul.f32 0.044715, %v6455_v41  ;;  %v1748_v4 = vmul.f32 %v1684_v16, %v1236_v13 }
 0x2da   :  { %2215 = vmatprep.mubr.bf16.mxu0 %v1797_v30  ;;  %v1752_v61 = vmul.f32 %v1688_v50, %v1240_v24  ;;  %4513 = vtanh.f32 %v1564_v32  ;;  %v6473_v1 = vmul.f32 %v1380_v34, %v6406_v15  ;;  %v6476_v48 = vmul.f32 %v1384_v47, %v6423_v20  ;;  %2997 = vmatmul.mubr.bf16.gmra.mrb[116].mxu1 %v6199_v19  ;;  %v4395_v30 = vld [vmem:[#allocation11 + $0x1c4] ss:$8 sps:$4 sm:$0xff]  }
 0x2db   :  { %v1328_v21 = vmul.f32 0.044715, %v6459_v9  ;;  %2275 = vmatpush1.bf16.msra.mxu0 %v4384_v38  ;;  %4515 = vtanh.f32 %v1568_v53  ;;  %v1388_v5 = vmul.f32 %v1324_v59, %v6445_v40  ;;  %3006 = vmatprep.mubr.bf16.mxu1 %v6204_v49  ;;  %v6484_v54 = vmul.f32 0.5, %v6390_v44 }
 0x2dc   :  { %v1125_v57 = vpop.f32.mrb[32].mxu1  ;;  %v1796_v10 = vpack.c.bf16 %v1752_v61, %v1748_v4  ;;  %2276 = vmatprep.subr.bf16.mxu0 %v4389_v0  ;;  %v1329_v60 = vmul.f32 0.044715, %v6469_v31  ;;  %v1509_v7 = vadd.f32 %v1445_v11, %v6413_v51  ;;  %v1513_v6 = vadd.f32 %v1449_v46, %v6426_v27  ;;  %v4393_v61 = vld [vmem:[#allocation11 + $0x1c0] ss:$8 sps:$4 sm:$0xff]  }
 0x2dd   :  { %v1126_v13 = vadd.f32 %v1125_v57, %v6258_v12  ;;  %v1127_v24 = vpop.f32.mrb[33].mxu1  ;;  %v4510_v23 = vpop.eup %4509  ;;  %v1389_v14 = vmul.f32 %v1325_v29, %v6455_v41  ;;  %v1392_v52 = vmul.f32 %v1328_v21, %v6459_v9  ;;  %v6497_v16 = vmul.f32 %v1388_v5, %v6445_v40 }
 0x2de   :  { %v6488_v19 = vadd.f32 %v1127_v24, %v6418_v39  ;;  %v1129_v34 = vpop.f32.mrb[34].mxu1  ;;  %2216 = vmatmul.mubr.bf16.gmra.mrb[16].mxu0 %v1796_v10  ;;  %v1693_v43 = vadd.f32 1.0, %v4510_v23  ;;  %v4512_v3 = vpop.eup %4511  ;;  %v1573_v56 = vmul.f32 0.7978845, %v1509_v7  ;;  %v1577_v28 = vmul.f32 0.7978845, %v1513_v6 }
 0x2df   :  { %v1270_v42 = vmul.f32 0.044715, %v1126_v13  ;;  %v1130_v49 = vadd.f32 %v1129_v34, %v6258_v12  ;;  %v1131_v44 = vpop.f32.mrb[35].mxu1  ;;  %2277 = vmatpush1.bf16.msra.mxu0 %v4387_v63  ;;  %v1697_v38 = vadd.f32 1.0, %v4512_v3  ;;  %v1393_v8 = vmul.f32 %v1329_v60, %v6469_v31  ;;  %v4398_v10 = vld [vmem:[#allocation11 + $0x1d4] ss:$8 sps:$4 sm:$0xff]  }
 0x2e0   :  { %v1271_v37 = vmul.f32 0.044715, %v6488_v19  ;;  %2278 = vmatprep.subr.bf16.mxu0 %v4392_v33  ;;  %v6501_v32 = vadd.f32 %v1131_v44, %v6418_v39  ;;  %v1757_v59 = vmul.f32 %v1693_v43, %v6441_v58  ;;  %4517 = vtanh.f32 %v1573_v56 }
 0x2e1   :  { %v1334_v18 = vmul.f32 %v1270_v42, %v1126_v13  ;;  %v1274_v47 = vmul.f32 0.044715, %v1130_v49  ;;  %v1761_v11 = vmul.f32 %v1697_v38, %v6449_v62  ;;  %4519 = vtanh.f32 %v1577_v28  ;;  %v4399_v38 = vld [vmem:[#allocation11 + $0x1e0] ss:$8 sps:$4 sm:$0xff]  }
 0x2e2   :  { %v6506_v46 = vmul.f32 %v1389_v14, %v6455_v41  ;;  %v6509_v53 = vmul.f32 %v1392_v52, %v6459_v9  ;;  %v1335_v29 = vmul.f32 %v1271_v37, %v6488_v19  ;;  %3007 = vmatmul.mubr.bf16.gmra.mrb[120].mxu1 %v6211_v26  ;;  %v6514_v58 = vmul.f32 0.5, %v6413_v51 }
 0x2e3   :  { %v1398_v50 = vmul.f32 %v1334_v18, %v1126_v13  ;;  %v1338_v0 = vmul.f32 %v1274_v47, %v1130_v49  ;;  %2279 = vmatpush1.bf16.msra.mxu0 %v4390_v22  ;;  %v1801_v24 = vpack.c.bf16 %v1761_v11, %v1757_v59  ;;  %3016 = vmatprep.mubr.bf16.mxu1 %v6252_v36  ;;  %v1257_v34 = vmul.f32 0.5, %v6426_v27  ;;  %v4396_v27 = vld [vmem:[#allocation11 + $0x1d0] ss:$8 sps:$4 sm:$0xff]  }
 0x2e4   :  { %v1135_v4 = vpop.f32.mrb[36].mxu1  ;;  %v4514_v21 = vpop.eup %4513  ;;  %v6521_v23 = vmul.f32 %v1393_v8, %v6469_v31  ;;  %2280 = vmatprep.subr.bf16.mxu0 %v4395_v30  ;;  %v6527_v7 = vmul.f32 0.5, %v1126_v13  ;;  %v1275_v6 = vmul.f32 0.044715, %v6501_v32  ;;  %v1508_v42 = vadd.f32 %v6473_v1, %v6406_v15 }
 0x2e5   :  { %v1462_v57 = vadd.f32 %v1398_v50, %v1126_v13  ;;  %v1402_v62 = vmul.f32 %v1338_v0, %v1130_v49  ;;  %v6517_v63 = vadd.f32 %v1135_v4, %v6258_v12  ;;  %v1137_v5 = vpop.f32.mrb[37].mxu1  ;;  %v4516_v33 = vpop.eup %4515  ;;  %v1692_v60 = vadd.f32 1.0, %v4514_v21  ;;  %2225 = vmatprep.mubr.bf16.mxu0 %v1801_v24  ;;  %v4401_v13 = vld [vmem:[#allocation11 + $0x1e4] ss:$8 sps:$4 sm:$0xff]  }
 0x2e6   :  { %v6524_v26 = vadd.f32 %v1137_v5, %v6418_v39  ;;  %v1139_v51 = vpop.f32.mrb[38].mxu1  ;;  %v6535_v44 = vmul.f32 0.5, %v1130_v49  ;;  %v1696_v22 = vadd.f32 1.0, %v4516_v33  ;;  %v6541_v37 = vmul.f32 %v1335_v29, %v6488_v19 }
 0x2e7   :  { %v6531_v36 = vadd.f32 %v1139_v51, %v6258_v12  ;;  %v1141_v14 = vpop.f32.mrb[39].mxu1  ;;  %v1466_v43 = vadd.f32 %v1402_v62, %v1130_v49  ;;  %2281 = vmatpush1.bf16.msra.mxu0 %v4393_v61  ;;  %v1526_v52 = vmul.f32 0.7978845, %v1462_v57  ;;  %v1278_v56 = vmul.f32 0.044715, %v6517_v63 }
 0x2e8   :  { %v6538_v3 = vadd.f32 %v1141_v14, %v6418_v39  ;;  %v6545_v28 = vmul.f32 0.5, %v6406_v15  ;;  %2282 = vmatprep.subr.bf16.mxu0 %v4398_v10  ;;  %v1279_v1 = vmul.f32 0.044715, %v6524_v26  ;;  %v1756_v49 = vmul.f32 %v1692_v60, %v6464_v25  ;;  %v4404_v62 = vld [vmem:[#allocation11 + $0x1f4] ss:$8 sps:$4 sm:$0xff]  }
 0x2e9   :  { %v1760_v18 = vmul.f32 %v1696_v22, %v6484_v54  ;;  %v1512_v47 = vadd.f32 %v6476_v48, %v6423_v20  ;;  %v1339_v8 = vmul.f32 %v1275_v6, %v6501_v32  ;;  %v1282_v59 = vmul.f32 0.044715, %v6531_v36  ;;  %v4402_v22 = vld [vmem:[#allocation11 + $0x1f0] ss:$8 sps:$4 sm:$0xff]  }
 0x2ea   :  { %v1283_v30 = vmul.f32 0.044715, %v6538_v3  ;;  %v1572_v50 = vmul.f32 0.7978845, %v1508_v42  ;;  %v4518_v15 = vpop.eup %4517  ;;  %v1530_v0 = vmul.f32 0.7978845, %v1466_v43  ;;  %3017 = vmatmul.mubr.bf16.gmra.mrb[124].mxu1 %v6266_v55  ;;  %v1342_v54 = vmul.f32 %v1278_v56, %v6517_v63 }
 0x2eb   :  { %v1800_v11 = vpack.c.bf16 %v1760_v18, %v1756_v49  ;;  %v6556_v4 = vmul.f32 0.5, %v6423_v20  ;;  %v1576_v25 = vmul.f32 0.7978845, %v1512_v47  ;;  %2283 = vmatpush1.bf16.msra.mxu0 %v4396_v27  ;;  %v4520_v48 = vpop.eup %4519  ;;  %v1701_v57 = vadd.f32 1.0, %v4518_v15 }
 0x2ec   :  { %v1145_v29 = vpop.f32.mrb[40].mxu1  ;;  %4521 = vtanh.f32 %v1572_v50  ;;  %2284 = vmatprep.subr.bf16.mxu0 %v4401_v13  ;;  %v1343_v5 = vmul.f32 %v1279_v1, %v6524_v26  ;;  %v1705_v24 = vadd.f32 1.0, %v4520_v48  ;;  %v6568_v55 = vmul.f32 %v1339_v8, %v6501_v32 }
 0x2ed   :  { %v6561_v61 = vadd.f32 %v1145_v29, %v6258_v12  ;;  %v1147_v21 = vpop.f32.mrb[41].mxu1  ;;  %2226 = vmatmul.mubr.bf16.gmra.mrb[20].mxu0 %v1800_v11  ;;  %4523 = vtanh.f32 %v1576_v25  ;;  %v1346_v33 = vmul.f32 %v1282_v59, %v6531_v36  ;;  %v1347_v51 = vmul.f32 %v1283_v30, %v6538_v3  ;;  %v4758_v29 = vld [vmem:[#allocation11 + $0x4] ss:$8 sps:$4 sm:$0xff]  }
 0x2ee   :  { %v6565_v20 = vadd.f32 %v1147_v21, %v6418_v39  ;;  %v1149_v10 = vpop.f32.mrb[42].mxu1  ;;  %4525 = vtanh.f32 %v1526_v52  ;;  %v1765_v6 = vmul.f32 %v1701_v57, %v6514_v58  ;;  %v1769_v14 = vmul.f32 %v1705_v24, %v1257_v34 }
 0x2ef   :  { %v1151_v60 = vpop.f32.mrb[43].mxu1  ;;  %v6574_v42 = vadd.f32 %v1149_v10, %v6258_v12  ;;  %2285 = vmatpush1.bf16.msra.mxu0 %v4399_v38  ;;  %4527 = vtanh.f32 %v1530_v0  ;;  %v1286_v27 = vmul.f32 0.044715, %v6561_v61  ;;  %v1517_v13 = vadd.f32 %v6506_v46, %v6455_v41 }
 0x2f0   :  { %v6577_v43 = vadd.f32 %v1151_v60, %v6418_v39  ;;  %v1521_v52 = vadd.f32 %v6521_v23, %v6469_v31  ;;  %2286 = vmatprep.subr.bf16.mxu0 %v4404_v62  ;;  %v6585_v58 = vmul.f32 %v1342_v54, %v6517_v63  ;;  %v6588_v34 = vmul.f32 %v1343_v5, %v6524_v26 }
 0x2f1   :  { %v1287_v56 = vmul.f32 0.044715, %v6565_v20  ;;  %v1805_v1 = vpack.c.bf16 %v1769_v14, %v1765_v6  ;;  %v6592_v49 = vmul.f32 %v1346_v33, %v6531_v36  ;;  %v6595_v18 = vmul.f32 %v1347_v51, %v6538_v3 }
 0x2f2   :  { %v1581_v46 = vmul.f32 0.7978845, %v1517_v13  ;;  %v1585_v47 = vmul.f32 0.7978845, %v1521_v52  ;;  %v1290_v23 = vmul.f32 0.044715, %v6574_v42  ;;  %v1516_v30 = vadd.f32 %v6497_v16, %v6445_v40 }
 0x2f3   :  { %2235 = vmatprep.mubr.bf16.mxu0 %v1805_v1  ;;  %v1291_v38 = vmul.f32 0.044715, %v6577_v43  ;;  %v6600_v59 = vmul.f32 0.5, %v6455_v41  ;;  %2287 = vmatpush1.bf16.msra.mxu0 %v4402_v22  ;;  %v1350_v50 = vmul.f32 %v1286_v27, %v6561_v61  ;;  %v1520_v11 = vadd.f32 %v6509_v53, %v6459_v9 }
 0x2f4   :  { %v1155_v8 = vpop.f32.mrb[44].mxu1  ;;  %4529 = vtanh.f32 %v1581_v46  ;;  %3635 = vmatprep.subr.bf16.mxu0 %v4758_v29  ;;  %v1351_v25 = vmul.f32 %v1287_v56, %v6565_v20  ;;  %v1580_v48 = vmul.f32 0.7978845, %v1516_v30  ;;  %v1265_v21 = vmul.f32 0.5, %v6469_v31 }
 0x2f5   :  { %v6606_v15 = vadd.f32 %v1155_v8, %v6258_v12  ;;  %v1157_v0 = vpop.f32.mrb[45].mxu1  ;;  %4531 = vtanh.f32 %v1585_v47  ;;  %v6619_v62 = vmul.f32 0.5, %v6445_v40  ;;  %v1584_v53 = vmul.f32 0.7978845, %v1520_v11 }
 0x2f6   :  { %v6612_v41 = vadd.f32 %v1157_v0, %v6418_v39  ;;  %v1159_v16 = vpop.f32.mrb[46].mxu1  ;;  %v4522_v54 = vpop.eup %4521  ;;  %v1354_v10 = vmul.f32 %v1290_v23, %v6574_v42  ;;  %v1355_v51 = vmul.f32 %v1291_v38, %v6577_v43  ;;  %4533 = vtanh.f32 %v1580_v48 }
 0x2f7   :  { %v6616_v57 = vadd.f32 %v1159_v16, %v6258_v12  ;;  %v1161_v5 = vpop.f32.mrb[47].mxu1  ;;  %v4524_v24 = vpop.eup %4523  ;;  %v1700_v33 = vadd.f32 1.0, %v4522_v54  ;;  %v6624_v6 = vmul.f32 %v1350_v50, %v6561_v61  ;;  %v1294_v14 = vmul.f32 0.044715, %v6606_v15 }
 0x2f8   :  { %v4526_v60 = vpop.eup %4525  ;;  %v1704_v31 = vadd.f32 1.0, %v4524_v24  ;;  %4535 = vtanh.f32 %v1584_v53  ;;  %v6628_v40 = vmul.f32 %v1351_v25, %v6565_v20  ;;  %v1295_v22 = vmul.f32 0.044715, %v6612_v41 }
 0x2f9   :  { %v1264_v27 = vmul.f32 0.5, %v6459_v9  ;;  %v6633_v13 = vadd.f32 %v1161_v5, %v6418_v39  ;;  %v4528_v52 = vpop.eup %4527  ;;  %v1764_v56 = vmul.f32 %v1700_v33, %v6545_v28  ;;  %v1298_v46 = vmul.f32 0.044715, %v6616_v57 }
 0x2fa   :  { %v1768_v1 = vmul.f32 %v1704_v31, %v6556_v4  ;;  %v1463_v47 = vadd.f32 %v6541_v37, %v6488_v19  ;;  %v6641_v23 = vmul.f32 %v1354_v10, %v6574_v42  ;;  %v6644_v38 = vmul.f32 %v1355_v51, %v6577_v43 }
 0x2fb   :  { %v1467_v8 = vadd.f32 %v6568_v55, %v6501_v32  ;;  %v1654_v30 = vadd.f32 1.0, %v4526_v60  ;;  %v1358_v28 = vmul.f32 %v1294_v14, %v6606_v15  ;;  %v1359_v37 = vmul.f32 %v1295_v22, %v6612_v41 }
 0x2fc   :  { %v1165_v9 = vpop.f32.mrb[48].mxu1  ;;  %v1804_v50 = vpack.c.bf16 %v1768_v1, %v1764_v56  ;;  %v1527_v11 = vmul.f32 0.7978845, %v1463_v47  ;;  %v1658_v48 = vadd.f32 1.0, %v4528_v52  ;;  %v1362_v55 = vmul.f32 %v1298_v46, %v6616_v57 }
 0x2fd   :  { %v6650_v4 = vadd.f32 %v1165_v9, %v6258_v12  ;;  %v1167_v0 = vpop.f32.mrb[49].mxu1  ;;  %v1531_v25 = vmul.f32 0.7978845, %v1467_v8  ;;  %v1299_v53 = vmul.f32 0.044715, %v6633_v13  ;;  %v6660_v51 = vmul.f32 %v1654_v30, %v6527_v7 }
 0x2fe   :  { %v6654_v29 = vadd.f32 %v1167_v0, %v6418_v39  ;;  %v1169_v16 = vpop.f32.mrb[50].mxu1  ;;  %v4530_v54 = vpop.eup %4529  ;;  %2236 = vmatmul.mubr.bf16.gmra.mrb[24].mxu0 %v1804_v50  ;;  %4537 = vtanh.f32 %v1527_v11  ;;  %v6663_v60 = vmul.f32 %v1658_v48, %v6535_v44  ;;  %v1207_v22 = vmul.f32 0.5, %v6488_v19 }
 0x2ff   :  { %v1302_v5 = vmul.f32 0.044715, %v6650_v4  ;;  %v1171_v24 = vpop.f32.mrb[51].mxu1  ;;  %v4532_v10 = vpop.eup %4531  ;;  %v1709_v33 = vadd.f32 1.0, %v4530_v54  ;;  %4539 = vtanh.f32 %v1531_v25  ;;  %v6668_v52 = vadd.f32 %v1169_v16, %v6258_v12 }
 0x300   :  { %v1713_v31 = vadd.f32 1.0, %v4532_v10  ;;  %v1303_v14 = vmul.f32 0.044715, %v6654_v29  ;;  %v4534_v56 = vpop.eup %4533  ;;  %v6671_v1 = vmul.f32 %v1358_v28, %v6606_v15  ;;  %v6674_v46 = vmul.f32 %v1359_v37, %v6612_v41 }
 0x301   :  { %v1211_v7 = vmul.f32 0.5, %v6501_v32  ;;  %v1782_v44 = vpack.c.bf16 %v6663_v60, %v6660_v51  ;;  %v1773_v9 = vmul.f32 %v1709_v33, %v6600_v59  ;;  %v1708_v19 = vadd.f32 1.0, %v4534_v56  ;;  %v4759_v60 = vld [vmem:[#allocation11] ss:$8 sps:$4 sm:$0xff]  }
 0x302   :  { %v4536_v47 = vpop.eup %4535  ;;  %v1777_v8 = vmul.f32 %v1713_v31, %v1265_v21  ;;  %v1363_v30 = vmul.f32 %v1299_v53, %v6633_v13  ;;  %v6682_v50 = vmul.f32 %v1362_v55, %v6616_v57  ;;  %v1366_v0 = vmul.f32 %v1302_v5, %v6650_v4 }
 0x303   :  { %v1712_v28 = vadd.f32 1.0, %v4536_v47  ;;  %v6686_v11 = vadd.f32 %v1171_v24, %v6418_v39  ;;  %v1367_v25 = vmul.f32 %v1303_v14, %v6654_v29  ;;  %v1306_v16 = vmul.f32 0.044715, %v6668_v52 }
 0x304   :  { %v1175_v32 = vpop.f32.mrb[52].mxu1  ;;  %v1809_v37 = vpack.c.bf16 %v1777_v8, %v1773_v9  ;;  %v1772_v48 = vmul.f32 %v1708_v19, %v6619_v62  ;;  %v1471_v53 = vadd.f32 %v6588_v34, %v6524_v26  ;;  %v6700_v24 = vmul.f32 %v1363_v30, %v6633_v13 }
 0x305   :  { %v6691_v59 = vadd.f32 %v1175_v32, %v6258_v12  ;;  %v1177_v21 = vpop.f32.mrb[53].mxu1  ;;  %v1776_v54 = vmul.f32 %v1712_v28, %v1264_v27  ;;  %v6703_v10 = vmul.f32 0.5, %v6524_v26  ;;  %v1475_v33 = vadd.f32 %v6595_v18, %v6538_v3 }
 0x306   :  { %v6695_v55 = vadd.f32 %v1177_v21, %v6418_v39  ;;  %v1179_v5 = vpop.f32.mrb[54].mxu1  ;;  %2245 = vmatprep.mubr.bf16.mxu0 %v1809_v37  ;;  %v1307_v14 = vmul.f32 0.044715, %v6686_v11  ;;  %v1535_v56 = vmul.f32 0.7978845, %v1471_v53  ;;  %v6713_v9 = vmul.f32 %v1366_v0, %v6650_v4 }
 0x307   :  { %v6708_v62 = vadd.f32 %v1179_v5, %v6258_v12  ;;  %v1181_v27 = vpop.f32.mrb[55].mxu1  ;;  %v1808_v31 = vpack.c.bf16 %v1776_v54, %v1772_v48  ;;  %v1310_v34 = vmul.f32 0.044715, %v6691_v59  ;;  %v6716_v26 = vmul.f32 %v1367_v25, %v6654_v29 }
 0x308   :  { %v4538_v47 = vpop.eup %4537  ;;  %v1370_v8 = vmul.f32 %v1306_v16, %v6668_v52  ;;  %v1539_v18 = vmul.f32 0.7978845, %v1475_v33  ;;  %v1311_v28 = vmul.f32 0.044715, %v6695_v55  ;;  %4541 = vtanh.f32 %v1535_v56 }
 0x309   :  { %v4540_v19 = vpop.eup %4539  ;;  %2246 = vmatmul.mubr.bf16.gmra.mrb[28].mxu0 %v1808_v31  ;;  %v1655_v30 = vadd.f32 1.0, %v4538_v47  ;;  %v1470_v32 = vadd.f32 %v6585_v58, %v6517_v63  ;;  %v6723_v21 = vmul.f32 0.5, %v6538_v3  ;;  %v1314_v0 = vmul.f32 0.044715, %v6708_v62 }
 0x30a   :  { %v1659_v37 = vadd.f32 1.0, %v4540_v19  ;;  %4543 = vtanh.f32 %v1539_v18  ;;  %v1371_v25 = vmul.f32 %v1307_v14, %v6686_v11  ;;  %v1374_v16 = vmul.f32 %v1310_v34, %v6691_v59 }
 0x30b   :  { %v1474_v48 = vadd.f32 %v6592_v49, %v6531_v36  ;;  %v1534_v54 = vmul.f32 0.7978845, %v1470_v32  ;;  %v1719_v5 = vmul.f32 %v1655_v30, %v1207_v22  ;;  %v6731_v58 = vadd.f32 %v1181_v27, %v6418_v39 }
 0x30c   :  { %v1185_v53 = vpop.f32.mrb[56].mxu1  ;;  %v1723_v33 = vmul.f32 %v1659_v37, %v1211_v7  ;;  %v6737_v56 = vmul.f32 %v1370_v8, %v6668_v52  ;;  %v1375_v14 = vmul.f32 %v1311_v28, %v6695_v55  ;;  %v1378_v18 = vmul.f32 %v1314_v0, %v6708_v62 }
 0x30d   :  { %v6734_v3 = vadd.f32 %v1185_v53, %v6258_v12  ;;  %v1187_v31 = vpop.f32.mrb[57].mxu1  ;;  %v1538_v34 = vmul.f32 0.7978845, %v1474_v48  ;;  %4545 = vtanh.f32 %v1534_v54  ;;  %v6742_v22 = vmul.f32 0.5, %v6517_v63 }
 0x30e   :  { %v1189_v47 = vpop.f32.mrb[58].mxu1  ;;  %v1783_v49 = vpack.c.bf16 %v1723_v33, %v1719_v5  ;;  %v6745_v7 = vadd.f32 %v1187_v31, %v6418_v39  ;;  %v1315_v19 = vmul.f32 0.044715, %v6731_v58  ;;  %v1479_v8 = vadd.f32 %v6628_v40, %v6565_v20  ;;  %v4760_v31 = vld [vmem:[#allocation11 + $0x14] ss:$8 sps:$4 sm:$0xff]  }
 0x30f   :  { %v1191_v27 = vpop.f32.mrb[59].mxu1  ;;  %4547 = vtanh.f32 %v1538_v34  ;;  %v1483_v30 = vadd.f32 %v6644_v38, %v6577_v43  ;;  %v6753_v28 = vmul.f32 %v1371_v25, %v6686_v11  ;;  %v6756_v63 = vmul.f32 %v1374_v16, %v6691_v59 }
 0x310   :  { %2288 = vmatprep.mubr.bf16.mxu0 %v1783_v49  ;;  %v6759_v32 = vmul.f32 0.5, %v6531_v36  ;;  %v1318_v37 = vmul.f32 0.044715, %v6734_v3  ;;  %v6766_v40 = vmul.f32 %v1375_v14, %v6695_v55  ;;  %v1543_v38 = vmul.f32 0.7978845, %v1479_v8 }
 0x311   :  { %2289 = vmatmul.mubr.bf16.vlgmr.msra.gmra.mrb[0].mxu0 %v1782_v44  ;;  %v1547_v0 = vmul.f32 0.7978845, %v1483_v30  ;;  %v6769_v25 = vadd.f32 %v1189_v47, %v6258_v12  ;;  %v6772_v16 = vmul.f32 %v1378_v18, %v6708_v62  ;;  %v1319_v36 = vmul.f32 0.044715, %v6745_v7 }
 0x312   :  { %v6776_v48 = vmul.f32 0.5, %v6565_v20  ;;  %v1478_v51 = vadd.f32 %v6624_v6, %v6561_v61  ;;  %3636 = vmatpush1.bf16.msra.mxu0 %v4759_v60  ;;  %v4542_v44 = vpop.eup %4541  ;;  %v1379_v54 = vmul.f32 %v1315_v19, %v6731_v58  ;;  %4549 = vtanh.f32 %v1543_v38 }
 0x313   :  { %v1482_v53 = vadd.f32 %v6641_v23, %v6574_v42  ;;  %v6784_v5 = vadd.f32 %v1191_v27, %v6418_v39  ;;  %3637 = vmatprep.subr.bf16.mxu0 %v4760_v31  ;;  %v1663_v14 = vadd.f32 1.0, %v4542_v44  ;;  %v1382_v34 = vmul.f32 %v1318_v37, %v6734_v3  ;;  %v4761_v37 = vld [vmem:[#allocation11 + $0x10] ss:$8 sps:$4 sm:$0xff]  }
 0x314   :  { %v1195_v33 = vpop.f32.mrb[60].mxu1  ;;  %v4544_v20 = vpop.eup %4543  ;;  %4551 = vtanh.f32 %v1547_v0  ;;  %v1542_v6 = vmul.f32 0.7978845, %v1478_v51  ;;  %v1322_v18 = vmul.f32 0.044715, %v6769_v25  ;;  %v1383_v30 = vmul.f32 %v1319_v36, %v6745_v7 }
 0x315   :  { %v1197_v47 = vpop.f32.mrb[61].mxu1  ;;  %v1667_v49 = vadd.f32 1.0, %v4544_v20  ;;  %v1546_v19 = vmul.f32 0.7978845, %v1482_v53  ;;  %v6789_v8 = vadd.f32 %v1195_v33, %v6258_v12  ;;  %v1727_v27 = vmul.f32 %v1663_v14, %v6703_v10  ;;  %v4762_v33 = vld [vmem:[#allocation11 + $0x24] ss:$8 sps:$4 sm:$0xff]  }
 0x316   :  { %v1199_v23 = vpop.f32.mrb[62].mxu1  ;;  %4553 = vtanh.f32 %v1542_v6  ;;  %v1323_v38 = vmul.f32 0.044715, %v6784_v5  ;;  %3638 = vmatpush1.bf16.msra.mxu0 %v4761_v37  ;;  %v6799_v53 = vadd.f32 %v1197_v47, %v6418_v39  ;;  %v1227_v36 = vmul.f32 0.5, %v6577_v43  ;;  %v4763_v43 = vld [vmem:[#allocation11 + $0x20] ss:$8 sps:$4 sm:$0xff]  }
 0x317   :  { %v6794_v60 = vpop.f32.mrb[63].mxu1  ;;  %v4546_v0 = vpop.eup %4545  ;;  %v1731_v51 = vmul.f32 %v1667_v49, %v6723_v21  ;;  %4555 = vtanh.f32 %v1546_v19  ;;  %v1326_v44 = vmul.f32 0.044715, %v6789_v8  ;;  %3639 = vmatprep.subr.bf16.mxu0 %v4762_v33  ;;  %v6803_v31 = vmul.f32 0.5, %v6561_v61 }
 0x318   :  { %v1662_v10 = vadd.f32 1.0, %v4546_v0  ;;  %v6806_v20 = vmul.f32 0.5, %v6574_v42  ;;  %v6809_v21 = vmul.f32 %v1379_v54, %v6731_v58  ;;  %v1386_v49 = vmul.f32 %v1322_v18, %v6769_v25  ;;  %v4764_v0 = vld [vmem:[#allocation11 + $0x34] ss:$8 sps:$4 sm:$0xff]  }
 0x319   :  { %v4548_v14 = vpop.eup %4547  ;;  %v1787_v6 = vpack.c.bf16 %v1731_v51, %v1727_v27  ;;  %v1487_v47 = vadd.f32 %v6674_v46, %v6612_v41  ;;  %v6815_v37 = vmul.f32 %v1382_v34, %v6734_v3  ;;  %v6818_v61 = vmul.f32 %v1383_v30, %v6745_v7 }
 0x31a   :  { %v1666_v19 = vadd.f32 1.0, %v4548_v14  ;;  %v1491_v42 = vadd.f32 %v6700_v24, %v6633_v13  ;;  %3640 = vmatpush1.bf16.msra.mxu0 %v4763_v43  ;;  %v1387_v54 = vmul.f32 %v1323_v38, %v6784_v5  ;;  %v1390_v18 = vmul.f32 %v1326_v44, %v6789_v8  ;;  %v4766_v43 = vld [vmem:[#allocation11 + $0x44] ss:$8 sps:$4 sm:$0xff]  }
 0x31b   :  { %2298 = vmatprep.mubr.bf16.mxu0 %v1787_v6  ;;  %v1327_v27 = vmul.f32 0.044715, %v6799_v53  ;;  %v1551_v46 = vmul.f32 0.7978845, %v1487_v47  ;;  %3641 = vmatprep.subr.bf16.mxu0 %v4764_v0  ;;  %v1726_v34 = vmul.f32 %v1662_v10, %v6742_v22  ;;  %v6828_v33 = vadd.f32 %v1199_v23, %v6258_v12  ;;  %v4765_v23 = vld [vmem:[#allocation11 + $0x30] ss:$8 sps:$4 sm:$0xff]  }
 0x31c   :  { %v1730_v30 = vmul.f32 %v1666_v19, %v6759_v32  ;;  %v1555_v51 = vmul.f32 0.7978845, %v1491_v42  ;;  %v4550_v24 = vpop.eup %4549  ;;  %v6831_v14 = vmul.f32 %v1386_v49, %v6769_v25  ;;  %v1486_v38 = vadd.f32 %v6671_v1, %v6606_v15 }
 0x31d   :  { %4557 = vtanh.f32 %v1551_v46  ;;  %v1490_v44 = vadd.f32 %v6682_v50, %v6616_v57  ;;  %v1671_v22 = vadd.f32 1.0, %v4550_v24  ;;  %v6838_v32 = vmul.f32 0.5, %v6612_v41 }
 0x31e   :  { %v4552_v6 = vpop.eup %4551  ;;  %v1786_v47 = vpack.c.bf16 %v1730_v30, %v1726_v34  ;;  %4559 = vtanh.f32 %v1555_v51  ;;  %3642 = vmatpush1.bf16.msra.mxu0 %v4765_v23  ;;  %v1391_v49 = vmul.f32 %v1327_v27, %v6799_v53  ;;  %v1550_v19 = vmul.f32 0.7978845, %v1486_v38 }
 0x31f   :  { %v1675_v10 = vadd.f32 1.0, %v4552_v6  ;;  %v1554_v42 = vmul.f32 0.7978845, %v1490_v44  ;;  %3643 = vmatprep.subr.bf16.mxu0 %v4766_v43  ;;  %v6842_v50 = vmul.f32 %v1387_v54, %v6784_v5  ;;  %v6845_v46 = vmul.f32 %v1390_v18, %v6789_v8  ;;  %v4767_v18 = vld [vmem:[#allocation11 + $0x40] ss:$8 sps:$4 sm:$0xff]  }
 0x320   :  { %v4554_v1 = vpop.eup %4553  ;;  %2299 = vmatmul.mubr.bf16.gmra.mrb[4].mxu0 %v1786_v47  ;;  %v1235_v41 = vmul.f32 0.5, %v6633_v13  ;;  %v1330_v0 = vmul.f32 0.044715, %v6828_v33  ;;  %v1735_v30 = vmul.f32 %v1671_v22, %v6776_v48  ;;  %4561 = vtanh.f32 %v1550_v19  ;;  %v4768_v6 = vld [vmem:[#allocation11 + $0x54] ss:$8 sps:$4 sm:$0xff]  }
 0x321   :  { %v4556_v34 = vpop.eup %4555  ;;  %v1739_v27 = vmul.f32 %v1675_v10, %v1227_v36  ;;  %v1670_v51 = vadd.f32 1.0, %v4554_v1  ;;  %4563 = vtanh.f32 %v1554_v42  ;;  %v6852_v38 = vadd.f32 %v6794_v60, %v6418_v39 }
 0x322   :  { %v1674_v24 = vadd.f32 1.0, %v4556_v34  ;;  %v1495_v54 = vadd.f32 %v6716_v26, %v6654_v29  ;;  %3644 = vmatpush1.bf16.msra.mxu0 %v4767_v18  ;;  %v6857_v44 = vmul.f32 %v1391_v49, %v6799_v53  ;;  %v6860_v48 = vmul.f32 0.5, %v6606_v15 }
 0x323   :  { %v1791_v13 = vpack.c.bf16 %v1739_v27, %v1735_v30  ;;  %v1499_v36 = vadd.f32 %v6753_v28, %v6686_v11  ;;  %3645 = vmatprep.subr.bf16.mxu0 %v4768_v6  ;;  %v1734_v60 = vmul.f32 %v1670_v51, %v6803_v31  ;;  %v1234_v26 = vmul.f32 0.5, %v6616_v57 }
 0x324   :  { %v1738_v47 = vmul.f32 %v1674_v24, %v6806_v20  ;;  %v1559_v22 = vmul.f32 0.7978845, %v1495_v54  ;;  %v1394_v23 = vmul.f32 %v1330_v0, %v6828_v33  ;;  %v1494_v15 = vadd.f32 %v6713_v9, %v6650_v4  ;;  %v4769_v20 = vld [vmem:[#allocation11 + $0x50] ss:$8 sps:$4 sm:$0xff]   ;;  %v4770_v9 = vld [vmem:[#allocation11 + $0x64] ss:$8 sps:$4 sm:$0xff]  }
 0x325   :  { %2308 = vmatprep.mubr.bf16.mxu0 %v1791_v13  ;;  %v1563_v10 = vmul.f32 0.7978845, %v1499_v36  ;;  %v1498_v49 = vadd.f32 %v6737_v56, %v6668_v52  ;;  %v1331_v19 = vmul.f32 0.044715, %v6852_v38  ;;  %v1503_v31 = vadd.f32 %v6766_v40, %v6695_v55 }
 0x326   :  { %v1790_v28 = vpack.c.bf16 %v1738_v47, %v1734_v60  ;;  %4565 = vtanh.f32 %v1559_v22  ;;  %3646 = vmatpush1.bf16.msra.mxu0 %v4769_v20  ;;  %v1558_v42 = vmul.f32 0.7978845, %v1494_v15  ;;  %v1507_v1 = vadd.f32 %v6809_v21, %v6731_v58  ;;  %v4772_v60 = vld [vmem:[#allocation11 + $0x74] ss:$8 sps:$4 sm:$0xff]  }
 0x327   :  { %v4558_v57 = vpop.eup %4557  ;;  %4567 = vtanh.f32 %v1563_v10  ;;  %v1562_v43 = vmul.f32 0.7978845, %v1498_v49  ;;  %3647 = vmatprep.subr.bf16.mxu0 %v4770_v9  ;;  %v1239_v34 = vmul.f32 0.5, %v6654_v29  ;;  %v6879_v30 = vmul.f32 0.5, %v6686_v11  ;;  %v4771_v29 = vld [vmem:[#allocation11 + $0x60] ss:$8 sps:$4 sm:$0xff]  }
 0x328   :  { %v4560_v0 = vpop.eup %4559  ;;  %2309 = vmatmul.mubr.bf16.gmra.mrb[8].mxu0 %v1790_v28  ;;  %v1679_v56 = vadd.f32 1.0, %v4558_v57  ;;  %v1567_v40 = vmul.f32 0.7978845, %v1503_v31  ;;  %4569 = vtanh.f32 %v1558_v42  ;;  %v1571_v51 = vmul.f32 0.7978845, %v1507_v1 }
 0x329   :  { %v1683_v27 = vadd.f32 1.0, %v4560_v0  ;;  %v1502_v24 = vadd.f32 %v6756_v63, %v6691_v59  ;;  %v6884_v54 = vmul.f32 %v1394_v23, %v6828_v33  ;;  %v1395_v21 = vmul.f32 %v1331_v19, %v6852_v38  ;;  %v4773_v28 = vld [vmem:[#allocation11 + $0x70] ss:$8 sps:$4 sm:$0xff]   ;;  %v4774_v57 = vld [vmem:[#allocation11 + $0x84] ss:$8 sps:$4 sm:$0xff]  }
 0x32a   :  { %4571 = vtanh.f32 %v1562_v43  ;;  %v1506_v18 = vadd.f32 %v6772_v16, %v6708_v62  ;;  %3648 = vmatpush1.bf16.msra.mxu0 %v4771_v29  ;;  %v4562_v11 = vpop.eup %4561  ;;  %v1743_v13 = vmul.f32 %v1679_v56, %v6838_v32  ;;  %v1511_v23 = vadd.f32 %v6818_v61, %v6745_v7 }
 0x32b   :  { %v1747_v36 = vmul.f32 %v1683_v27, %v1235_v41  ;;  %4573 = vtanh.f32 %v1567_v40  ;;  %v1566_v6 = vmul.f32 0.7978845, %v1502_v24  ;;  %3649 = vmatprep.subr.bf16.mxu0 %v4772_v60  ;;  %v4564_v63 = vpop.eup %4563  ;;  %v1678_v47 = vadd.f32 1.0, %v4562_v11  ;;  %v4775_v27 = vld [vmem:[#allocation11 + $0x80] ss:$8 sps:$4 sm:$0xff]  }
 0x32c   :  { %4575 = vtanh.f32 %v1571_v51  ;;  %v1570_v22 = vmul.f32 0.7978845, %v1506_v18  ;;  %v1682_v15 = vadd.f32 1.0, %v4564_v63  ;;  %v1515_v16 = vadd.f32 %v6842_v50, %v6784_v5  ;;  %v4776_v24 = vld [vmem:[#allocation11 + $0x94] ss:$8 sps:$4 sm:$0xff]  }
 0x32d   :  { %v1795_v10 = vpack.c.bf16 %v1747_v36, %v1743_v13  ;;  %4577 = vtanh.f32 %v1566_v6  ;;  %v1459_v32 = vmul.f32 %v1395_v21, %v6852_v38  ;;  %v1238_v41 = vmul.f32 0.5, %v6650_v4 }
 0x32e   :  { %4579 = vtanh.f32 %v1570_v22  ;;  %v1575_v49 = vmul.f32 0.7978845, %v1511_v23  ;;  %3650 = vmatpush1.bf16.msra.mxu0 %v4773_v28  ;;  %v1742_v19 = vmul.f32 %v1678_v47, %v6860_v48  ;;  %v1746_v31 = vmul.f32 %v1682_v15, %v1234_v26  ;;  %v4777_v47 = vld [vmem:[#allocation11 + $0x90] ss:$8 sps:$4 sm:$0xff]   ;;  %v4778_v15 = vld [vmem:[#allocation11 + $0xa4] ss:$8 sps:$4 sm:$0xff]  }
 0x32f   :  { %2318 = vmatprep.mubr.bf16.mxu0 %v1795_v10  ;;  %v1579_v20 = vmul.f32 0.7978845, %v1515_v16  ;;  %v1510_v61 = vadd.f32 %v6815_v37, %v6734_v3  ;;  %3651 = vmatprep.subr.bf16.mxu0 %v4774_v57  ;;  %v1242_v50 = vmul.f32 0.5, %v6668_v52  ;;  %v1247_v43 = vmul.f32 0.5, %v6695_v55 }
 0x330   :  { %v4566_v42 = vpop.eup %4565  ;;  %4581 = vtanh.f32 %v1575_v49  ;;  %v1514_v4 = vadd.f32 %v6831_v14, %v6769_v25  ;;  %v1794_v9 = vpack.c.bf16 %v1746_v31, %v1742_v19  ;;  %v1519_v37 = vadd.f32 %v6857_v44, %v6799_v53 }
 0x331   :  { %v4568_v1 = vpop.eup %4567  ;;  %v1687_v0 = vadd.f32 1.0, %v4566_v42  ;;  %4583 = vtanh.f32 %v1579_v20  ;;  %v1574_v48 = vmul.f32 0.7978845, %v1510_v61  ;;  %v1523_v40 = vadd.f32 %v1459_v32, %v6852_v38  ;;  %v4779_v20 = vld [vmem:[#allocation11 + $0xa0] ss:$8 sps:$4 sm:$0xff]  }
 0x332   :  { %v1691_v26 = vadd.f32 1.0, %v4568_v1  ;;  %v1578_v56 = vmul.f32 0.7978845, %v1514_v4  ;;  %3652 = vmatpush1.bf16.msra.mxu0 %v4775_v27  ;;  %v4570_v52 = vpop.eup %4569  ;;  %v1251_v51 = vmul.f32 0.5, %v6731_v58  ;;  %v1246_v14 = vmul.f32 0.5, %v6691_v59 }
 0x333   :  { %2319 = vmatmul.mubr.bf16.gmra.mrb[12].mxu0 %v1794_v9  ;;  %v1751_v55 = vmul.f32 %v1687_v0, %v1239_v34  ;;  %4585 = vtanh.f32 %v1574_v48  ;;  %3653 = vmatprep.subr.bf16.mxu0 %v4776_v24  ;;  %v1686_v29 = vadd.f32 1.0, %v4570_v52  ;;  %v1583_v44 = vmul.f32 0.7978845, %v1519_v37  ;;  %v4780_v1 = vld [vmem:[#allocation11 + $0xb4] ss:$8 sps:$4 sm:$0xff]  }
 0x334   :  { %v4572_v21 = vpop.eup %4571  ;;  %v1755_v18 = vmul.f32 %v1691_v26, %v6879_v30  ;;  %4587 = vtanh.f32 %v1578_v56  ;;  %v1587_v36 = vmul.f32 0.7978845, %v1523_v40  ;;  %v1518_v6 = vadd.f32 %v6845_v46, %v6789_v8  ;;  %v4781_v27 = vld [vmem:[#allocation11 + $0xb0] ss:$8 sps:$4 sm:$0xff]  }
 0x335   :  { %v4574_v11 = vpop.eup %4573  ;;  %v1690_v13 = vadd.f32 1.0, %v4572_v21  ;;  %v1522_v58 = vadd.f32 %v6884_v54, %v6828_v33  ;;  %v1750_v60 = vmul.f32 %v1686_v29, %v1238_v41  ;;  %4589 = vtanh.f32 %v1583_v44 }
 0x336   :  { %v4576_v34 = vpop.eup %4575  ;;  %v1799_v59 = vpack.c.bf16 %v1755_v18, %v1751_v55  ;;  %v1695_v63 = vadd.f32 1.0, %v4574_v11  ;;  %3654 = vmatpush1.bf16.msra.mxu0 %v4777_v47  ;;  %4591 = vtanh.f32 %v1587_v36  ;;  %v1582_v10 = vmul.f32 0.7978845, %v1518_v6  ;;  %v4783_v6 = vld [vmem:[#allocation11 + $0xc0] ss:$8 sps:$4 sm:$0xff]  }
 0x337   :  { %v4578_v30 = vpop.eup %4577  ;;  %v1754_v22 = vmul.f32 %v1690_v13, %v1242_v50  ;;  %v1699_v23 = vadd.f32 1.0, %v4576_v34  ;;  %3655 = vmatprep.subr.bf16.mxu0 %v4778_v15  ;;  %v1250_v32 = vmul.f32 0.5, %v6708_v62  ;;  %v1586_v49 = vmul.f32 0.7978845, %v1522_v58 }
 0x338   :  { %v4580_v16 = vpop.eup %4579  ;;  %2328 = vmatprep.mubr.bf16.mxu0 %v1799_v59  ;;  %v1759_v46 = vmul.f32 %v1695_v63, %v1247_v43  ;;  %v1694_v54 = vadd.f32 1.0, %v4578_v30  ;;  %4593 = vtanh.f32 %v1582_v10  ;;  %v1255_v62 = vmul.f32 0.5, %v6745_v7 }
 0x339   :  { %v1798_v28 = vpack.c.bf16 %v1754_v22, %v1750_v60  ;;  %v1763_v41 = vmul.f32 %v1699_v23, %v1251_v51  ;;  %v1698_v19 = vadd.f32 1.0, %v4580_v16  ;;  %4595 = vtanh.f32 %v1586_v49  ;;  %v4784_v60 = vld [vmem:[#allocation11 + $0xd4] ss:$8 sps:$4 sm:$0xff]   ;;  %v4785_v49 = vld [vmem:[#allocation11 + $0xd0] ss:$8 sps:$4 sm:$0xff]  }
 0x33a   :  { %v4582_v31 = vpop.eup %4581  ;;  %3656 = vmatpush1.bf16.msra.mxu0 %v4779_v20  ;;  %v1758_v42 = vmul.f32 %v1694_v54, %v1246_v14  ;;  %v1259_v43 = vmul.f32 0.5, %v6784_v5  ;;  %v1254_v52 = vmul.f32 0.5, %v6734_v3  ;;  %v1258_v55 = vmul.f32 0.5, %v6769_v25  ;;  %v4782_v14 = vld [vmem:[#allocation11 + $0xc4] ss:$8 sps:$4 sm:$0xff]  }
 0x33b   :  { %v4584_v61 = vpop.eup %4583  ;;  %2329 = vmatmul.mubr.bf16.gmra.mrb[16].mxu0 %v1798_v28  ;;  %v1803_v57 = vpack.c.bf16 %v1763_v41, %v1759_v46  ;;  %v1762_v50 = vmul.f32 %v1698_v19, %v1250_v32  ;;  %v1703_v4 = vadd.f32 1.0, %v4582_v31  ;;  %3657 = vmatprep.subr.bf16.mxu0 %v4780_v1  ;;  %v1263_v44 = vmul.f32 0.5, %v6799_v53  ;;  %v4786_v31 = vld [vmem:[#allocation11 + $0xe4] ss:$8 sps:$4 sm:$0xff]  }
 0x33c   :  { %v1707_v9 = vadd.f32 1.0, %v4584_v61  ;;  %v1267_v11 = vmul.f32 0.5, %v6852_v38  ;;  %v1262_v58 = vmul.f32 0.5, %v6789_v8  ;;  %v1266_v23 = vmul.f32 0.5, %v6828_v33 }
 0x33d   :  { %v4586_v0 = vpop.eup %4585  ;;  %2338 = vmatprep.mubr.bf16.mxu0 %v1803_v57  ;;  %v1802_v48 = vpack.c.bf16 %v1762_v50, %v1758_v42  ;;  %v1767_v56 = vmul.f32 %v1703_v4, %v1255_v62  ;;  %v4787_v62 = vld [vmem:[#allocation11 + $0xe0] ss:$8 sps:$4 sm:$0xff]  }
 0x33e   :  { %v4588_v26 = vpop.eup %4587  ;;  %v1771_v37 = vmul.f32 %v1707_v9, %v1259_v43  ;;  %v1702_v40 = vadd.f32 1.0, %v4586_v0  ;;  %3658 = vmatpush1.bf16.msra.mxu0 %v4781_v27  ;;  %v4788_v0 = vld [vmem:[#allocation11 + $0xf4] ss:$8 sps:$4 sm:$0xff]   ;;  %v4789_v27 = vld [vmem:[#allocation11 + $0xf0] ss:$8 sps:$4 sm:$0xff]  }
 0x33f   :  { %v1706_v51 = vadd.f32 1.0, %v4588_v26  ;;  %3659 = vmatprep.subr.bf16.mxu0 %v4782_v14  ;;  %v4590_v7 = vpop.eup %4589 }
 0x340   :  { %v1807_v24 = vpack.c.bf16 %v1771_v37, %v1767_v56  ;;  %v4592_v5 = vpop.eup %4591  ;;  %v1766_v21 = vmul.f32 %v1702_v40, %v1254_v52  ;;  %v1711_v29 = vadd.f32 1.0, %v4590_v7 }
 0x341   :  { %v1770_v18 = vmul.f32 %v1706_v51, %v1258_v55  ;;  %v1715_v13 = vadd.f32 1.0, %v4592_v5  ;;  %v2835_v36 = vpop.f32.mrb[64].mxu1 }
 0x342   :  { %3660 = vmatpush1.bf16.msra.mxu0 %v4783_v6  ;;  %v4594_v3 = vpop.eup %4593  ;;  %v6922_v34 = vadd.f32 %v2835_v36, %v6149_v17  ;;  %v2837_v59 = vpop.f32.mrb[65].mxu1  ;;  %v1775_v53 = vmul.f32 %v1711_v29, %v1263_v44 }
 0x343   :  { %2339 = vmatmul.mubr.bf16.gmra.mrb[20].mxu0 %v1802_v48  ;;  %v1806_v25 = vpack.c.bf16 %v1770_v18, %v1766_v21  ;;  %3661 = vmatprep.subr.bf16.mxu0 %v4784_v60  ;;  %v4596_v63 = vpop.eup %4595  ;;  %v1779_v47 = vmul.f32 %v1715_v13, %v1267_v11  ;;  %v1710_v38 = vadd.f32 1.0, %v4594_v3  ;;  %v6925_v30 = vadd.f32 %v2837_v59, %v6158_v35  ;;  %v2839_v22 = vpop.f32.mrb[66].mxu1 }
 0x344   :  { %2348 = vmatprep.mubr.bf16.mxu0 %v1807_v24  ;;  %v1714_v10 = vadd.f32 1.0, %v4596_v63  ;;  %v3091_v8 = vmul.f32 0.044715, %v6922_v34  ;;  %v6930_v15 = vadd.f32 %v2839_v22, %v6149_v17  ;;  %v2841_v16 = vpop.f32.mrb[67].mxu1  ;;  %v4790_v24 = vld [vmem:[#allocation11 + $0x104] ss:$8 sps:$4 sm:$0xff]  }
 0x345   :  { %v1811_v46 = vpack.c.bf16 %v1779_v47, %v1775_v53  ;;  %v3092_v32 = vmul.f32 0.044715, %v6925_v30  ;;  %v6934_v54 = vadd.f32 %v2841_v16, %v6158_v35  ;;  %v1774_v28 = vmul.f32 %v1710_v38, %v1262_v58 }
 0x346   :  { %3662 = vmatpush1.bf16.msra.mxu0 %v4785_v49  ;;  %v1778_v41 = vmul.f32 %v1714_v10, %v1266_v23  ;;  %v3155_v19 = vmul.f32 %v3091_v8, %v6922_v34  ;;  %v3095_v33 = vmul.f32 0.044715, %v6930_v15  ;;  %v3027_v38 = vmul.f32 0.5, %v6922_v34 }
 0x347   :  { %3663 = vmatprep.subr.bf16.mxu0 %v4786_v31  ;;  %v3156_v20 = vmul.f32 %v3092_v32, %v6925_v30  ;;  %v3096_v61 = vmul.f32 0.044715, %v6934_v54  ;;  %v3031_v22 = vmul.f32 0.5, %v6930_v15  ;;  %v3032_v31 = vmul.f32 0.5, %v6934_v54 }
 0x348   :  { %v1810_v57 = vpack.c.bf16 %v1778_v41, %v1774_v28  ;;  %v3219_v42 = vmul.f32 %v3155_v19, %v6922_v34  ;;  %v3159_v50 = vmul.f32 %v3095_v33, %v6930_v15  ;;  %v3028_v33 = vmul.f32 0.5, %v6925_v30 }
 0x349   :  { %v3220_v4 = vmul.f32 %v3156_v20, %v6925_v30  ;;  %v3160_v1 = vmul.f32 %v3096_v61, %v6934_v54 }
 0x34a   :  { %3664 = vmatpush1.bf16.msra.mxu0 %v4787_v62  ;;  %v3283_v43 = vadd.f32 %v3219_v42, %v6922_v34  ;;  %v3223_v9 = vmul.f32 %v3159_v50, %v6930_v15 }
 0x34b   :  { %2349 = vmatmul.mubr.bf16.gmra.mrb[24].mxu0 %v1806_v25  ;;  %3665 = vmatprep.subr.bf16.mxu0 %v4788_v0  ;;  %v3224_v48 = vmul.f32 %v3160_v1, %v6934_v54  ;;  %v3284_v26 = vadd.f32 %v3220_v4, %v6925_v30 }
 0x34c   :  { %2358 = vmatprep.mubr.bf16.mxu0 %v1811_v46  ;;  %v3347_v56 = vmul.f32 0.7978845, %v3283_v43  ;;  %v3287_v37 = vadd.f32 %v3223_v9, %v6930_v15 }
 0x34d   :  { %v2845_v40 = vpop.f32.mrb[68].mxu1  ;;  %v3288_v52 = vadd.f32 %v3224_v48, %v6934_v54  ;;  %v3348_v55 = vmul.f32 0.7978845, %v3284_v26 }
 0x34e   :  { %3666 = vmatpush1.bf16.msra.mxu0 %v4789_v27  ;;  %4597 = vtanh.f32 %v3347_v56  ;;  %v3351_v51 = vmul.f32 0.7978845, %v3287_v37  ;;  %v6951_v14 = vadd.f32 %v2845_v40, %v6149_v17  ;;  %v2847_v7 = vpop.f32.mrb[69].mxu1 }
 0x34f   :  { %3748 = vmatprep.subr.bf16.mxu0 %v4790_v24  ;;  %v6954_v5 = vadd.f32 %v2847_v7, %v6158_v35  ;;  %v2849_v21 = vpop.f32.mrb[70].mxu1  ;;  %v3352_v18 = vmul.f32 0.7978845, %v3288_v52  ;;  %4599 = vtanh.f32 %v3348_v55 }
 0x350   :  { %4601 = vtanh.f32 %v3351_v51  ;;  %v3099_v29 = vmul.f32 0.044715, %v6951_v14  ;;  %v6958_v44 = vadd.f32 %v2849_v21, %v6149_v17  ;;  %v2851_v11 = vpop.f32.mrb[71].mxu1 }
 0x351   :  { %v3100_v13 = vmul.f32 0.044715, %v6954_v5  ;;  %v6962_v36 = vadd.f32 %v2851_v11, %v6158_v35  ;;  %4603 = vtanh.f32 %v3352_v18 }
 0x352   :  { %v3163_v6 = vmul.f32 %v3099_v29, %v6951_v14  ;;  %v3103_v3 = vmul.f32 0.044715, %v6958_v44 }
 0x353   :  { %2359 = vmatmul.mubr.bf16.gmra.mrb[28].mxu0 %v1810_v57  ;;  %v3164_v25 = vmul.f32 %v3100_v13, %v6954_v5  ;;  %v3104_v58 = vmul.f32 0.044715, %v6962_v36 }
 0x354   :  { %v3227_v59 = vmul.f32 %v3163_v6, %v6951_v14  ;;  %v3167_v60 = vmul.f32 %v3103_v3, %v6958_v44 }
 0x355   :  { %v3228_v63 = vmul.f32 %v3164_v25, %v6954_v5  ;;  %v3168_v53 = vmul.f32 %v3104_v58, %v6962_v36  ;;  %v2855_v47 = vpop.f32.mrb[72].mxu1 }
 0x356   :  { %v3231_v23 = vmul.f32 %v3167_v60, %v6958_v44  ;;  %v6976_v10 = vadd.f32 %v2855_v47, %v6149_v17  ;;  %v2857_v8 = vpop.f32.mrb[73].mxu1  ;;  %v3291_v28 = vadd.f32 %v3227_v59, %v6951_v14 }
 0x357   :  { %v3232_v16 = vmul.f32 %v3168_v53, %v6962_v36  ;;  %v6980_v46 = vadd.f32 %v2857_v8, %v6158_v35  ;;  %v2859_v32 = vpop.f32.mrb[74].mxu1  ;;  %v3292_v49 = vadd.f32 %v3228_v63, %v6954_v5  ;;  %v3036_v8 = vmul.f32 0.5, %v6954_v5 }
 0x358   :  { %v4598_v41 = vpop.eup %4597  ;;  %v3107_v34 = vmul.f32 0.044715, %v6976_v10  ;;  %v6986_v15 = vadd.f32 %v2859_v32, %v6149_v17  ;;  %v2861_v19 = vpop.f32.mrb[75].mxu1  ;;  %v3295_v9 = vadd.f32 %v3231_v23, %v6958_v44  ;;  %v3355_v26 = vmul.f32 0.7978845, %v3291_v28 }
 0x359   :  { %v4600_v20 = vpop.eup %4599  ;;  %v3108_v61 = vmul.f32 0.044715, %v6980_v46  ;;  %v6992_v57 = vadd.f32 %v2861_v19, %v6158_v35  ;;  %v3475_v42 = vadd.f32 1.0, %v4598_v41  ;;  %v3296_v50 = vadd.f32 %v3232_v16, %v6962_v36 }
 0x35a   :  { %v4602_v4 = vpop.eup %4601  ;;  %v3111_v1 = vmul.f32 0.044715, %v6986_v15  ;;  %v3476_v62 = vadd.f32 1.0, %v4600_v20  ;;  %v3356_v43 = vmul.f32 0.7978845, %v3292_v49  ;;  %v3171_v56 = vmul.f32 %v3107_v34, %v6976_v10 }
 0x35b   :  { %v4604_v0 = vpop.eup %4603  ;;  %v3172_v30 = vmul.f32 %v3108_v61, %v6980_v46  ;;  %v3112_v54 = vmul.f32 0.044715, %v6992_v57  ;;  %v3479_v48 = vadd.f32 1.0, %v4602_v4  ;;  %v3539_v27 = vmul.f32 %v3475_v42, %v3027_v38  ;;  %v4791_v34 = vld [vmem:[#allocation11 + $0x100] ss:$8 sps:$4 sm:$0xff]  }
 0x35c   :  { %v3175_v37 = vmul.f32 %v3111_v1, %v6986_v15  ;;  %v3480_v40 = vadd.f32 1.0, %v4604_v0  ;;  %v3540_v51 = vmul.f32 %v3476_v62, %v3028_v33  ;;  %v3360_v24 = vmul.f32 0.7978845, %v3296_v50 }
 0x35d   :  { %v3176_v52 = vmul.f32 %v3112_v54, %v6992_v57  ;;  %v2865_v55 = vpop.f32.mrb[76].mxu1  ;;  %v3543_v7 = vmul.f32 %v3479_v48, %v3031_v22  ;;  %v3236_v21 = vmul.f32 %v3172_v30, %v6980_v46  ;;  %4605 = vtanh.f32 %v3356_v43  ;;  %v4793_v48 = vld [vmem:[#allocation11 + $0x110] ss:$8 sps:$4 sm:$0xff]  }
 0x35e   :  { %v7004_v18 = vadd.f32 %v2865_v55, %v6149_v17  ;;  %v2867_v29 = vpop.f32.mrb[77].mxu1  ;;  %v3544_v11 = vmul.f32 %v3480_v40, %v3032_v31  ;;  %4607 = vtanh.f32 %v3360_v24  ;;  %v3359_v53 = vmul.f32 0.7978845, %v3295_v9  ;;  %v4792_v31 = vld [vmem:[#allocation11 + $0x114] ss:$8 sps:$4 sm:$0xff]  }
 0x35f   :  { %v3240_v13 = vmul.f32 %v3176_v52, %v6992_v57  ;;  %v7008_v6 = vadd.f32 %v2867_v29, %v6158_v35  ;;  %v2869_v3 = vpop.f32.mrb[78].mxu1  ;;  %v3603_v25 = vpack.c.bf16 %v3543_v7, %v3539_v27  ;;  %v7018_v38 = vmul.f32 0.5, %v6951_v14  ;;  %v4794_v52 = vld [vmem:[#allocation11 + $0x124] ss:$8 sps:$4 sm:$0xff]  }
 0x360   :  { %v3115_v58 = vmul.f32 0.044715, %v7004_v18  ;;  %v7012_v59 = vadd.f32 %v2869_v3, %v6149_v17  ;;  %v2871_v60 = vpop.f32.mrb[79].mxu1  ;;  %v3604_v63 = vpack.c.bf16 %v3544_v11, %v3540_v51  ;;  %4609 = vtanh.f32 %v3355_v26 }
 0x361   :  { %v7015_v47 = vadd.f32 %v2871_v60, %v6158_v35  ;;  %v3235_v22 = vmul.f32 %v3171_v56, %v6976_v10  ;;  %v3239_v23 = vmul.f32 %v3175_v37, %v6986_v15  ;;  %4611 = vtanh.f32 %v3359_v53  ;;  %v4795_v53 = vld [vmem:[#allocation11 + $0x120] ss:$8 sps:$4 sm:$0xff]  }
 0x362   :  { %3667 = vmatprep.mubr.bf16.mxu0 %v3604_v63  ;;  %v3116_v16 = vmul.f32 0.044715, %v7008_v6  ;;  %v3300_v49 = vadd.f32 %v3236_v21, %v6980_v46  ;;  %v3304_v28 = vadd.f32 %v3240_v13, %v6992_v57  ;;  %v3179_v14 = vmul.f32 %v3115_v58, %v7004_v18 }
 0x363   :  { %v3120_v32 = vmul.f32 0.044715, %v7015_v47  ;;  %3668 = vmatmul.mubr.bf16.vlgmr.msra.gmra.mrb[32].mxu0 %v3603_v25  ;;  %v3119_v41 = vmul.f32 0.044715, %v7012_v59  ;;  %v3040_v19 = vmul.f32 0.5, %v6962_v36  ;;  %v7031_v5 = vmul.f32 0.5, %v6958_v44 }
 0x364   :  { %3749 = vmatpush1.bf16.msra.mxu0 %v4791_v34  ;;  %v7034_v20 = vmul.f32 0.5, %v6980_v46  ;;  %v3364_v61 = vmul.f32 0.7978845, %v3300_v49  ;;  %v3368_v42 = vmul.f32 0.7978845, %v3304_v28  ;;  %v7040_v1 = vmul.f32 0.5, %v6992_v57 }
 0x365   :  { %v2875_v33 = vpop.f32.mrb[80].mxu1  ;;  %3750 = vmatprep.subr.bf16.mxu0 %v4792_v31  ;;  %v3299_v36 = vadd.f32 %v3235_v22, %v6976_v10  ;;  %v3303_v44 = vadd.f32 %v3239_v23, %v6986_v15  ;;  %v3180_v62 = vmul.f32 %v3116_v16, %v7008_v6  ;;  %v3184_v43 = vmul.f32 %v3120_v32, %v7015_v47  ;;  %v4796_v49 = vld [vmem:[#allocation11 + $0x134] ss:$8 sps:$4 sm:$0xff]  }
 0x366   :  { %v7037_v50 = vadd.f32 %v2875_v33, %v6149_v17  ;;  %v2877_v4 = vpop.f32.mrb[81].mxu1  ;;  %4613 = vtanh.f32 %v3364_v61  ;;  %v7050_v30 = vmul.f32 %v3179_v14, %v7004_v18  ;;  %v3183_v37 = vmul.f32 %v3119_v41, %v7012_v59 }
 0x367   :  { %v7047_v46 = vadd.f32 %v2877_v4, %v6158_v35  ;;  %v2879_v9 = vpop.f32.mrb[82].mxu1  ;;  %v4606_v0 = vpop.eup %4605  ;;  %4615 = vtanh.f32 %v3368_v42  ;;  %v3363_v26 = vmul.f32 0.7978845, %v3299_v36  ;;  %v3367_v55 = vmul.f32 0.7978845, %v3303_v44 }
 0x368   :  { %v7053_v57 = vadd.f32 %v2879_v9, %v6149_v17  ;;  %v2881_v54 = vpop.f32.mrb[83].mxu1  ;;  %3751 = vmatpush1.bf16.msra.mxu0 %v4793_v48  ;;  %v4608_v56 = vpop.eup %4607  ;;  %v3123_v40 = vmul.f32 0.044715, %v7037_v50  ;;  %v3484_v27 = vadd.f32 1.0, %v4606_v0  ;;  %v3244_v29 = vmul.f32 %v3180_v62, %v7008_v6  ;;  %v4797_v44 = vld [vmem:[#allocation11 + $0x130] ss:$8 sps:$4 sm:$0xff]  }
 0x369   :  { %3752 = vmatprep.subr.bf16.mxu0 %v4794_v52  ;;  %v3124_v51 = vmul.f32 0.044715, %v7047_v46  ;;  %v7059_v7 = vadd.f32 %v2881_v54, %v6158_v35  ;;  %v3488_v24 = vadd.f32 1.0, %v4608_v56  ;;  %4617 = vtanh.f32 %v3363_v26  ;;  %v4798_v54 = vld [vmem:[#allocation11 + $0x144] ss:$8 sps:$4 sm:$0xff]  }
 0x36a   :  { %v4610_v21 = vpop.eup %4609  ;;  %v3248_v11 = vmul.f32 %v3184_v43, %v7015_v47  ;;  %v7064_v13 = vmul.f32 0.5, %v6976_v10  ;;  %4619 = vtanh.f32 %v3367_v55  ;;  %v3127_v25 = vmul.f32 0.044715, %v7053_v57 }
 0x36b   :  { %v4612_v3 = vpop.eup %4611  ;;  %v3548_v58 = vmul.f32 %v3484_v27, %v3036_v8  ;;  %v3552_v60 = vmul.f32 %v3488_v24, %v3040_v19  ;;  %v3483_v63 = vadd.f32 1.0, %v4610_v21  ;;  %v7068_v22 = vmul.f32 %v3183_v37, %v7012_v59 }
 0x36c   :  { %3753 = vmatpush1.bf16.msra.mxu0 %v4795_v53  ;;  %v3187_v23 = vmul.f32 %v3123_v40, %v7037_v50  ;;  %v3487_v32 = vadd.f32 1.0, %v4612_v3  ;;  %v7072_v10 = vmul.f32 0.5, %v6986_v15  ;;  %v3188_v28 = vmul.f32 %v3124_v51, %v7047_v46 }
 0x36d   :  { %v2885_v16 = vpop.f32.mrb[84].mxu1  ;;  %3754 = vmatprep.subr.bf16.mxu0 %v4796_v49  ;;  %v3128_v8 = vmul.f32 0.044715, %v7059_v7  ;;  %v3608_v34 = vpack.c.bf16 %v3552_v60, %v3548_v58  ;;  %v3547_v31 = vmul.f32 %v3483_v63, %v7018_v38  ;;  %v3308_v15 = vadd.f32 %v3244_v29, %v7008_v6  ;;  %v4799_v29 = vld [vmem:[#allocation11 + $0x140] ss:$8 sps:$4 sm:$0xff]  }
 0x36e   :  { %v7077_v14 = vadd.f32 %v2885_v16, %v6149_v17  ;;  %v2887_v41 = vpop.f32.mrb[85].mxu1  ;;  %v3551_v61 = vmul.f32 %v3487_v32, %v7031_v5  ;;  %v3191_v42 = vmul.f32 %v3127_v25, %v7053_v57  ;;  %v7090_v62 = vmul.f32 0.5, %v7008_v6 }
 0x36f   :  { %v7080_v19 = vadd.f32 %v2887_v41, %v6158_v35  ;;  %v2889_v33 = vpop.f32.mrb[86].mxu1  ;;  %3677 = vmatprep.mubr.bf16.mxu0 %v3608_v34  ;;  %v3312_v43 = vadd.f32 %v3248_v11, %v7015_v47  ;;  %v7094_v38 = vmul.f32 %v3187_v23, %v7037_v50  ;;  %v3372_v48 = vmul.f32 0.7978845, %v3308_v15  ;;  %v4800_v23 = vld [vmem:[#allocation11 + $0x154] ss:$8 sps:$4 sm:$0xff]  }
 0x370   :  { %v7087_v4 = vadd.f32 %v2889_v33, %v6149_v17  ;;  %v2891_v36 = vpop.f32.mrb[87].mxu1  ;;  %3755 = vmatpush1.bf16.msra.mxu0 %v4797_v44  ;;  %v4614_v9 = vpop.eup %4613  ;;  %v3607_v5 = vpack.c.bf16 %v3551_v61, %v3547_v31  ;;  %v3192_v56 = vmul.f32 %v3128_v8, %v7059_v7  ;;  %v3131_v37 = vmul.f32 0.044715, %v7077_v14 }
 0x371   :  { %v7097_v0 = vadd.f32 %v2891_v36, %v6158_v35  ;;  %3756 = vmatprep.subr.bf16.mxu0 %v4798_v54  ;;  %v4616_v26 = vpop.eup %4615  ;;  %v3492_v6 = vadd.f32 1.0, %v4614_v9  ;;  %v3376_v40 = vmul.f32 0.7978845, %v3312_v43  ;;  %v3132_v27 = vmul.f32 0.044715, %v7080_v19 }
 0x372   :  { %v3135_v52 = vmul.f32 0.044715, %v7087_v4  ;;  %3678 = vmatmul.mubr.bf16.gmra.mrb[36].mxu0 %v3607_v5  ;;  %v3496_v55 = vadd.f32 1.0, %v4616_v26  ;;  %4621 = vtanh.f32 %v3372_v48  ;;  %v3252_v24 = vmul.f32 %v3188_v28, %v7047_v46  ;;  %v4802_v9 = vld [vmem:[#allocation11 + $0x164] ss:$8 sps:$4 sm:$0xff]  }
 0x373   :  { %v4618_v51 = vpop.eup %4617  ;;  %v7105_v21 = vmul.f32 %v3191_v42, %v7053_v57  ;;  %v7108_v11 = vmul.f32 0.5, %v7015_v47  ;;  %4623 = vtanh.f32 %v3376_v40  ;;  %v3136_v25 = vmul.f32 0.044715, %v7097_v0  ;;  %v4801_v42 = vld [vmem:[#allocation11 + $0x150] ss:$8 sps:$4 sm:$0xff]  }
 0x374   :  { %3757 = vmatpush1.bf16.msra.mxu0 %v4799_v29  ;;  %v4620_v3 = vpop.eup %4619  ;;  %v3556_v60 = vmul.f32 %v3492_v6, %v7034_v20  ;;  %v3560_v63 = vmul.f32 %v3496_v55, %v7040_v1  ;;  %v3491_v53 = vadd.f32 1.0, %v4618_v51  ;;  %v3256_v16 = vmul.f32 %v3192_v56, %v7059_v7  ;;  %v4803_v29 = vld [vmem:[#allocation11 + $0x160] ss:$8 sps:$4 sm:$0xff]  }
 0x375   :  { %v2895_v58 = vpop.f32.mrb[88].mxu1  ;;  %3758 = vmatprep.subr.bf16.mxu0 %v4800_v23  ;;  %v3195_v32 = vmul.f32 %v3131_v37, %v7077_v14  ;;  %v3495_v28 = vadd.f32 1.0, %v4620_v3  ;;  %v3196_v8 = vmul.f32 %v3132_v27, %v7080_v19  ;;  %v3199_v41 = vmul.f32 %v3135_v52, %v7087_v4 }
 0x376   :  { %v7116_v49 = vadd.f32 %v2895_v58, %v6149_v17  ;;  %v2897_v47 = vpop.f32.mrb[89].mxu1  ;;  %v3612_v1 = vpack.c.bf16 %v3560_v63, %v3556_v60  ;;  %v3555_v31 = vmul.f32 %v3491_v53, %v7064_v13  ;;  %v3307_v36 = vadd.f32 %v7050_v30, %v7004_v18  ;;  %v4804_v63 = vld [vmem:[#allocation11 + $0x174] ss:$8 sps:$4 sm:$0xff]  }
 0x377   :  { %v7121_v20 = vadd.f32 %v2897_v47, %v6158_v35  ;;  %v2899_v34 = vpop.f32.mrb[90].mxu1  ;;  %v3559_v61 = vmul.f32 %v3495_v28, %v7072_v10  ;;  %v3200_v44 = vmul.f32 %v3136_v25, %v7097_v0  ;;  %v7135_v5 = vmul.f32 0.5, %v7004_v18 }
 0x378   :  { %v7124_v33 = vadd.f32 %v2899_v34, %v6149_v17  ;;  %v2901_v15 = vpop.f32.mrb[91].mxu1  ;;  %3759 = vmatpush1.bf16.msra.mxu0 %v4801_v42  ;;  %3687 = vmatprep.mubr.bf16.mxu0 %v3612_v1  ;;  %v3311_v13 = vadd.f32 %v7068_v22, %v7012_v59  ;;  %v7140_v10 = vmul.f32 %v3195_v32, %v7077_v14  ;;  %v3139_v54 = vmul.f32 0.044715, %v7116_v49  ;;  %v4805_v42 = vld [vmem:[#allocation11 + $0x170] ss:$8 sps:$4 sm:$0xff]  }
 0x379   :  { %v7132_v43 = vadd.f32 %v2901_v15, %v6158_v35  ;;  %3760 = vmatprep.subr.bf16.mxu0 %v4802_v9  ;;  %v3611_v30 = vpack.c.bf16 %v3559_v61, %v3555_v31  ;;  %v3371_v48 = vmul.f32 0.7978845, %v3307_v36  ;;  %v7144_v26 = vmul.f32 %v3196_v8, %v7080_v19 }
 0x37a   :  { %v7147_v56 = vmul.f32 %v3199_v41, %v7087_v4  ;;  %v3140_v37 = vmul.f32 0.044715, %v7121_v20  ;;  %v3375_v18 = vmul.f32 0.7978845, %v3311_v13  ;;  %v3143_v6 = vmul.f32 0.044715, %v7124_v33 }
 0x37b   :  { %3688 = vmatmul.mubr.bf16.gmra.mrb[40].mxu0 %v3611_v30  ;;  %v7152_v22 = vmul.f32 0.5, %v7012_v59  ;;  %4625 = vtanh.f32 %v3371_v48  ;;  %v3316_v40 = vadd.f32 %v3252_v24, %v7047_v46  ;;  %v7156_v52 = vmul.f32 %v3200_v44, %v7097_v0  ;;  %v4806_v13 = vld [vmem:[#allocation11 + $0x184] ss:$8 sps:$4 sm:$0xff]  }
 0x37c   :  { %v4622_v27 = vpop.eup %4621  ;;  %v3144_v55 = vmul.f32 0.044715, %v7132_v43  ;;  %4627 = vtanh.f32 %v3375_v18  ;;  %3761 = vmatpush1.bf16.msra.mxu0 %v4803_v29  ;;  %v3320_v3 = vadd.f32 %v3256_v16, %v7059_v7  ;;  %v3203_v58 = vmul.f32 %v3139_v54, %v7116_v49 }
 0x37d   :  { %v2905_v51 = vpop.f32.mrb[92].mxu1  ;;  %v4624_v25 = vpop.eup %4623  ;;  %v3500_v24 = vadd.f32 1.0, %v4622_v27  ;;  %3762 = vmatprep.subr.bf16.mxu0 %v4804_v63  ;;  %v3380_v53 = vmul.f32 0.7978845, %v3316_v40  ;;  %v3204_v23 = vmul.f32 %v3140_v37, %v7121_v20  ;;  %v3207_v16 = vmul.f32 %v3143_v6, %v7124_v33  ;;  %v4807_v27 = vld [vmem:[#allocation11 + $0x180] ss:$8 sps:$4 sm:$0xff]  }
 0x37e   :  { %v7162_v59 = vadd.f32 %v2905_v51, %v6149_v17  ;;  %v2907_v60 = vpop.f32.mrb[93].mxu1  ;;  %v3504_v47 = vadd.f32 1.0, %v4624_v25  ;;  %v3384_v8 = vmul.f32 0.7978845, %v3320_v3  ;;  %v3208_v31 = vmul.f32 %v3144_v55, %v7132_v43 }
 0x37f   :  { %v7166_v32 = vadd.f32 %v2907_v60, %v6158_v35  ;;  %v2909_v28 = vpop.f32.mrb[94].mxu1  ;;  %4629 = vtanh.f32 %v3380_v53  ;;  %v3564_v61 = vmul.f32 %v3500_v24, %v7090_v62  ;;  %v7181_v9 = vmul.f32 0.5, %v7047_v46 }
 0x380   :  { %v3147_v41 = vmul.f32 0.044715, %v7162_v59  ;;  %v7171_v1 = vadd.f32 %v2909_v28, %v6149_v17  ;;  %v2911_v34 = vpop.f32.mrb[95].mxu1  ;;  %v3568_v15 = vmul.f32 %v3504_v47, %v7108_v11  ;;  %3763 = vmatpush1.bf16.msra.mxu0 %v4805_v42  ;;  %4631 = vtanh.f32 %v3384_v8 }
 0x381   :  { %v3148_v36 = vmul.f32 0.044715, %v7166_v32  ;;  %v7178_v44 = vadd.f32 %v2911_v34, %v6158_v35  ;;  %v7184_v17 = vmul.f32 0.5, %v7059_v7  ;;  %3764 = vmatprep.subr.bf16.mxu0 %v4806_v13  ;;  %v7187_v62 = vmul.f32 %v3203_v58, %v7116_v49  ;;  %v4808_v58 = vld [vmem:[#allocation11 + $0x194] ss:$8 sps:$4 sm:$0xff]  }
 0x382   :  { %v3211_v11 = vmul.f32 %v3147_v41, %v7162_v59  ;;  %v3616_v54 = vpack.c.bf16 %v3568_v15, %v3564_v61  ;;  %v3315_v30 = vadd.f32 %v7094_v38, %v7037_v50  ;;  %v7193_v35 = vmul.f32 %v3204_v23, %v7121_v20  ;;  %v4809_v34 = vld [vmem:[#allocation11 + $0x190] ss:$8 sps:$4 sm:$0xff]  }
 0x383   :  { %v7196_v46 = vmul.f32 %v3207_v16, %v7124_v33  ;;  %v3151_v7 = vmul.f32 0.044715, %v7171_v1  ;;  %v3319_v48 = vadd.f32 %v7105_v21, %v7053_v57  ;;  %v7202_v37 = vmul.f32 %v3208_v31, %v7132_v43 }
 0x384   :  { %3697 = vmatprep.mubr.bf16.mxu0 %v3616_v54  ;;  %v7205_v6 = vmul.f32 0.5, %v7037_v50  ;;  %v7208_v38 = vmul.f32 0.5, %v7053_v57  ;;  %v3379_v40 = vmul.f32 0.7978845, %v3315_v30  ;;  %3765 = vmatpush1.bf16.msra.mxu0 %v4807_v27  ;;  %v3212_v51 = vmul.f32 %v3148_v36, %v7166_v32 }
 0x385   :  { %v2948_v18 = vpop.f32.mrb[96].mxu1  ;;  %v4626_v55 = vpop.eup %4625  ;;  %v3152_v29 = vmul.f32 0.044715, %v7178_v44  ;;  %v3383_v25 = vmul.f32 0.7978845, %v3319_v48  ;;  %3766 = vmatprep.subr.bf16.mxu0 %v4808_v58  ;;  %v7216_v60 = vmul.f32 %v3211_v11, %v7162_v59  ;;  %v3215_v53 = vmul.f32 %v3151_v7, %v7171_v1 }
 0x386   :  { %v7213_v21 = vadd.f32 %v2948_v18, %v6258_v12  ;;  %v2950_v3 = vpop.f32.mrb[97].mxu1  ;;  %v4628_v50 = vpop.eup %4627  ;;  %v3499_v57 = vadd.f32 1.0, %v4626_v55  ;;  %4633 = vtanh.f32 %v3379_v40  ;;  %v3324_v31 = vadd.f32 %v7144_v26, %v7080_v19  ;;  %v4810_v11 = vld [vmem:[#allocation11 + $0x1a4] ss:$8 sps:$4 sm:$0xff]  }
 0x387   :  { %v7219_v24 = vadd.f32 %v2950_v3, %v6418_v39  ;;  %v2952_v63 = vpop.f32.mrb[98].mxu1  ;;  %v3503_v23 = vadd.f32 1.0, %v4628_v50  ;;  %4635 = vtanh.f32 %v3383_v25  ;;  %v7235_v48 = vmul.f32 0.5, %v7080_v19  ;;  %v4811_v50 = vld [vmem:[#allocation11 + $0x1a0] ss:$8 sps:$4 sm:$0xff]  }
 0x388   :  { %v3093_v47 = vmul.f32 0.044715, %v7213_v21  ;;  %v2953_v28 = vadd.f32 %v2952_v63, %v6258_v12  ;;  %v2954_v8 = vpop.f32.mrb[99].mxu1  ;;  %3767 = vmatpush1.bf16.msra.mxu0 %v4809_v34  ;;  %v3563_v15 = vmul.f32 %v3499_v57, %v7135_v5  ;;  %v3328_v26 = vadd.f32 %v7156_v52, %v7097_v0 }
 0x389   :  { %v3094_v16 = vmul.f32 0.044715, %v7219_v24  ;;  %v7226_v41 = vadd.f32 %v2954_v8, %v6418_v39  ;;  %v4630_v61 = vpop.eup %4629  ;;  %v3567_v42 = vmul.f32 %v3503_v23, %v7152_v22  ;;  %3768 = vmatprep.subr.bf16.mxu0 %v4810_v11  ;;  %v7241_v27 = vmul.f32 %v3212_v51, %v7166_v32  ;;  %v4813_v11 = vld [vmem:[#allocation11 + $0x1b0] ss:$8 sps:$4 sm:$0xff]  }
 0x38a   :  { %v3157_v36 = vmul.f32 %v3093_v47, %v7213_v21  ;;  %v3097_v13 = vmul.f32 0.044715, %v2953_v28  ;;  %v4632_v54 = vpop.eup %4631  ;;  %v3508_v30 = vadd.f32 1.0, %v4630_v61  ;;  %v3216_v55 = vmul.f32 %v3152_v29, %v7178_v44 }
 0x38b   :  { %v3098_v7 = vmul.f32 0.044715, %v7226_v41  ;;  %v3615_v18 = vpack.c.bf16 %v3567_v42, %v3563_v15  ;;  %v3512_v40 = vadd.f32 1.0, %v4632_v54  ;;  %v3158_v3 = vmul.f32 %v3094_v16, %v7219_v24  ;;  %v4812_v16 = vld [vmem:[#allocation11 + $0x1b4] ss:$8 sps:$4 sm:$0xff]  }
 0x38c   :  { %v3221_v5 = vmul.f32 %v3157_v36, %v7213_v21  ;;  %v3161_v22 = vmul.f32 %v3097_v13, %v2953_v28  ;;  %v3388_v58 = vmul.f32 0.7978845, %v3324_v31  ;;  %3769 = vmatpush1.bf16.msra.mxu0 %v4811_v50  ;;  %v3572_v19 = vmul.f32 %v3508_v30, %v7181_v9 }
 0x38d   :  { %v2958_v25 = vpop.f32.mrb[100].mxu1  ;;  %3698 = vmatmul.mubr.bf16.gmra.mrb[44].mxu0 %v3615_v18  ;;  %v3576_v52 = vmul.f32 %v3512_v40, %v7184_v17  ;;  %v3162_v51 = vmul.f32 %v3098_v7, %v7226_v41  ;;  %v3392_v47 = vmul.f32 0.7978845, %v3328_v26  ;;  %3770 = vmatprep.subr.bf16.mxu0 %v4812_v16  ;;  %v7255_v34 = vmul.f32 %v3215_v53, %v7171_v1  ;;  %v4814_v7 = vld [vmem:[#allocation11 + $0x1c4] ss:$8 sps:$4 sm:$0xff]  }
 0x38e   :  { %v3225_v57 = vmul.f32 %v3161_v22, %v2953_v28  ;;  %v7248_v63 = vadd.f32 %v2958_v25, %v6258_v12  ;;  %v2960_v23 = vpop.f32.mrb[101].mxu1  ;;  %4637 = vtanh.f32 %v3388_v58  ;;  %v3285_v9 = vadd.f32 %v3221_v5, %v7213_v21 }
 0x38f   :  { %v7252_v29 = vadd.f32 %v2960_v23, %v6418_v39  ;;  %v2962_v8 = vpop.f32.mrb[102].mxu1  ;;  %v3620_v17 = vpack.c.bf16 %v3576_v52, %v3572_v19  ;;  %v7259_v31 = vmul.f32 0.5, %v7097_v0  ;;  %4639 = vtanh.f32 %v3392_v47 }
 0x390   :  { %v2964_v61 = vpop.f32.mrb[103].mxu1  ;;  %v4634_v15 = vpop.eup %4633  ;;  %v3289_v42 = vadd.f32 %v3225_v57, %v2953_v28  ;;  %v3101_v36 = vmul.f32 0.044715, %v7248_v63  ;;  %v7263_v13 = vadd.f32 %v2962_v8, %v6258_v12  ;;  %3771 = vmatpush1.bf16.msra.mxu0 %v4813_v11  ;;  %v7266_v53 = vmul.f32 %v3216_v55, %v7178_v44  ;;  %v4815_v57 = vld [vmem:[#allocation11 + $0x1c0] ss:$8 sps:$4 sm:$0xff]  }
 0x391   :  { %v7269_v54 = vmul.f32 0.5, %v7213_v21  ;;  %3707 = vmatprep.mubr.bf16.mxu0 %v3620_v17  ;;  %v7271_v0 = vmul.f32 0.5, %v2953_v28  ;;  %v3507_v30 = vadd.f32 1.0, %v4634_v15  ;;  %3772 = vmatprep.subr.bf16.mxu0 %v4814_v7  ;;  %v4636_v26 = vpop.eup %4635  ;;  %v7274_v18 = vmul.f32 %v3158_v3, %v7219_v24  ;;  %v4816_v8 = vld [vmem:[#allocation11 + $0x1d4] ss:$8 sps:$4 sm:$0xff]  }
 0x392   :  { %v7277_v5 = vmul.f32 %v3162_v51, %v7226_v41  ;;  %v3102_v40 = vmul.f32 0.044715, %v7252_v29  ;;  %v3323_v22 = vadd.f32 %v7140_v10, %v7077_v14  ;;  %v3349_v21 = vmul.f32 0.7978845, %v3285_v9  ;;  %v4817_v7 = vld [vmem:[#allocation11 + $0x1d0] ss:$8 sps:$4 sm:$0xff]  }
 0x393   :  { %v3511_v55 = vadd.f32 1.0, %v4636_v26  ;;  %v3105_v28 = vmul.f32 0.044715, %v7263_v13  ;;  %v7284_v25 = vmul.f32 0.5, %v7077_v14  ;;  %v3353_v58 = vmul.f32 0.7978845, %v3289_v42 }
 0x394   :  { %v3165_v50 = vmul.f32 %v3101_v36, %v7248_v63  ;;  %v3327_v3 = vadd.f32 %v7147_v56, %v7087_v4  ;;  %v3387_v19 = vmul.f32 0.7978845, %v3323_v22  ;;  %3773 = vmatpush1.bf16.msra.mxu0 %v4815_v57  ;;  %v3571_v23 = vmul.f32 %v3507_v30, %v7205_v6 }
 0x395   :  { %v2968_v52 = vpop.f32.mrb[104].mxu1  ;;  %v3575_v10 = vmul.f32 %v3511_v55, %v7208_v38  ;;  %v7292_v51 = vadd.f32 %v2964_v61, %v6418_v39  ;;  %3774 = vmatprep.subr.bf16.mxu0 %v4816_v8  ;;  %v3166_v16 = vmul.f32 %v3102_v40, %v7252_v29  ;;  %v3169_v38 = vmul.f32 %v3105_v28, %v7263_v13 }
 0x396   :  { %v7295_v14 = vadd.f32 %v2968_v52, %v6258_v12  ;;  %v2970_v47 = vpop.f32.mrb[105].mxu1  ;;  %v3391_v56 = vmul.f32 0.7978845, %v3327_v3  ;;  %4641 = vtanh.f32 %v3387_v19  ;;  %v3332_v11 = vadd.f32 %v7193_v35, %v7121_v20 }
 0x397   :  { %v7299_v9 = vadd.f32 %v2970_v47, %v6418_v39  ;;  %v2972_v17 = vpop.f32.mrb[106].mxu1  ;;  %4643 = vtanh.f32 %v3349_v21  ;;  %v3619_v6 = vpack.c.bf16 %v3575_v10, %v3571_v23  ;;  %v3106_v61 = vmul.f32 0.044715, %v7292_v51  ;;  %v4818_v21 = vld [vmem:[#allocation11 + $0x1e4] ss:$8 sps:$4 sm:$0xff]  }
 0x398   :  { %v2974_v15 = vpop.f32.mrb[107].mxu1  ;;  %v4638_v42 = vpop.eup %4637  ;;  %4645 = vtanh.f32 %v3391_v56  ;;  %v3109_v36 = vmul.f32 0.044715, %v7295_v14  ;;  %v3336_v30 = vadd.f32 %v7202_v37, %v7132_v43  ;;  %3775 = vmatpush1.bf16.msra.mxu0 %v4817_v7  ;;  %v7309_v26 = vmul.f32 %v3165_v50, %v7248_v63  ;;  %v4819_v47 = vld [vmem:[#allocation11 + $0x1e0] ss:$8 sps:$4 sm:$0xff]  }
 0x399   :  { %4647 = vtanh.f32 %v3353_v58  ;;  %3708 = vmatmul.mubr.bf16.gmra.mrb[48].mxu0 %v3619_v6  ;;  %v3516_v40 = vadd.f32 1.0, %v4638_v42  ;;  %v7312_v22 = vmul.f32 0.5, %v7087_v4  ;;  %3776 = vmatprep.subr.bf16.mxu0 %v4818_v21  ;;  %v4640_v55 = vpop.eup %4639  ;;  %v7315_v28 = vmul.f32 %v3166_v16, %v7252_v29  ;;  %v4821_v21 = vld [vmem:[#allocation11 + $0x1f0] ss:$8 sps:$4 sm:$0xff]  }
 0x39a   :  { %v3110_v35 = vmul.f32 0.044715, %v7299_v9  ;;  %v3396_v37 = vmul.f32 0.7978845, %v3332_v11  ;;  %v3400_v3 = vmul.f32 0.7978845, %v3336_v30  ;;  %v7319_v58 = vmul.f32 %v3169_v38, %v7263_v13 }
 0x39b   :  { %v3520_v19 = vadd.f32 1.0, %v4640_v55  ;;  %v3170_v50 = vmul.f32 %v3106_v61, %v7292_v51  ;;  %v7323_v52 = vmul.f32 0.5, %v7121_v20  ;;  %v3580_v4 = vmul.f32 %v3516_v40, %v7235_v48  ;;  %v4820_v48 = vld [vmem:[#allocation11 + $0x1f4] ss:$8 sps:$4 sm:$0xff]  }
 0x39c   :  { %v3173_v57 = vmul.f32 %v3109_v36, %v7295_v14  ;;  %4649 = vtanh.f32 %v3396_v37  ;;  %v7328_v23 = vadd.f32 %v2972_v17, %v6258_v12  ;;  %3777 = vmatpush1.bf16.msra.mxu0 %v4819_v47  ;;  %v3331_v16 = vadd.f32 %v7187_v62, %v7116_v49 }
 0x39d   :  { %v2978_v10 = vpop.f32.mrb[108].mxu1  ;;  %v3584_v8 = vmul.f32 %v3520_v19, %v7259_v31  ;;  %4651 = vtanh.f32 %v3400_v3  ;;  %v3335_v20 = vadd.f32 %v7196_v46, %v7124_v33  ;;  %3778 = vmatprep.subr.bf16.mxu0 %v4820_v48  ;;  %v3174_v6 = vmul.f32 %v3110_v35, %v7299_v9 }
 0x39e   :  { %v2980_v56 = vpop.f32.mrb[109].mxu1  ;;  %v7337_v17 = vmul.f32 0.5, %v7132_v43  ;;  %v7340_v38 = vadd.f32 %v2974_v15, %v6418_v39  ;;  %v7343_v31 = vadd.f32 %v2978_v10, %v6258_v12  ;;  %v3395_v62 = vmul.f32 0.7978845, %v3331_v16 }
 0x39f   :  { %v2982_v61 = vpop.f32.mrb[110].mxu1  ;;  %v3624_v42 = vpack.c.bf16 %v3584_v8, %v3580_v4  ;;  %v3399_v36 = vmul.f32 0.7978845, %v3335_v20  ;;  %v7346_v46 = vadd.f32 %v2980_v56, %v6418_v39  ;;  %v7349_v7 = vmul.f32 %v3170_v50, %v7292_v51 }
 0x3a0   :  { %v2984_v11 = vpop.f32.mrb[111].mxu1  ;;  %v4642_v30 = vpop.eup %4641  ;;  %v3113_v43 = vmul.f32 0.044715, %v7328_v23  ;;  %v7353_v15 = vmul.f32 0.5, %v7116_v49  ;;  %v3114_v40 = vmul.f32 0.044715, %v7340_v38  ;;  %3779 = vmatpush1.bf16.msra.mxu0 %v4821_v21  ;;  %v7359_v37 = vmul.f32 %v3173_v57, %v7295_v14 }
 0x3a1   :  { %v7356_v55 = vpop.eup %4643  ;;  %3717 = vmatprep.mubr.bf16.mxu0 %v3624_v42  ;;  %v3515_v35 = vadd.f32 1.0, %v4642_v30  ;;  %4653 = vtanh.f32 %v3395_v62  ;;  %v3340_v3 = vadd.f32 %v7241_v27, %v7166_v32  ;;  %v7364_v50 = vmul.f32 %v3174_v6, %v7299_v9 }
 0x3a2   :  { %v4646_v19 = vpop.eup %4645  ;;  %v7367_v49 = vmul.f32 0.5, %v7124_v33  ;;  %4655 = vtanh.f32 %v3399_v36  ;;  %v3117_v4 = vmul.f32 0.044715, %v7343_v31  ;;  %v3118_v57 = vmul.f32 0.044715, %v7346_v46 }
 0x3a3   :  { %v7370_v10 = vpop.eup %4647  ;;  %v3519_v47 = vadd.f32 1.0, %v4646_v19  ;;  %v3344_v8 = vadd.f32 %v7266_v53, %v7178_v44  ;;  %v3404_v16 = vmul.f32 0.7978845, %v3340_v3  ;;  %v3177_v27 = vmul.f32 %v3113_v43, %v7328_v23 }
 0x3a4   :  { %v3178_v20 = vmul.f32 %v3114_v40, %v7340_v38  ;;  %v7378_v56 = vmul.f32 0.5, %v7166_v32  ;;  %v7381_v33 = vadd.f32 %v2982_v61, %v6258_v12  ;;  %v3579_v6 = vmul.f32 %v3515_v35, %v7284_v25 }
 0x3a5   :  { %v2988_v48 = vpop.f32.mrb[112].mxu1  ;;  %v3583_v42 = vmul.f32 %v3519_v47, %v7312_v22  ;;  %v3408_v62 = vmul.f32 0.7978845, %v3344_v8  ;;  %4657 = vtanh.f32 %v3404_v16  ;;  %v3181_v30 = vmul.f32 %v3117_v4, %v7343_v31 }
 0x3a6   :  { %v2990_v36 = vpop.f32.mrb[113].mxu1  ;;  %v4650_v53 = vpop.eup %4649  ;;  %v3121_v43 = vmul.f32 0.044715, %v7381_v33  ;;  %v3339_v32 = vadd.f32 %v7216_v60, %v7162_v59  ;;  %v3343_v61 = vadd.f32 %v7255_v34, %v7171_v1  ;;  %v3182_v22 = vmul.f32 %v3118_v57, %v7346_v46 }
 0x3a7   :  { %v2992_v40 = vpop.f32.mrb[114].mxu1  ;;  %v4652_v21 = vpop.eup %4651  ;;  %v3623_v3 = vpack.c.bf16 %v3583_v42, %v3579_v6  ;;  %v3524_v25 = vadd.f32 1.0, %v4650_v53  ;;  %4659 = vtanh.f32 %v3408_v62  ;;  %v7393_v4 = vadd.f32 %v2984_v11, %v6418_v39 }
 0x3a8   :  { %v2994_v35 = vpop.f32.mrb[115].mxu1  ;;  %v3528_v19 = vadd.f32 1.0, %v4652_v21  ;;  %v3403_v47 = vmul.f32 0.7978845, %v3339_v32  ;;  %v3407_v8 = vmul.f32 0.7978845, %v3343_v61  ;;  %v7396_v60 = vmul.f32 %v3177_v27, %v7328_v23 }
 0x3a9   :  { %3718 = vmatmul.mubr.bf16.gmra.mrb[52].mxu0 %v3623_v3  ;;  %v3088_v34 = vmul.f32 0.5, %v7178_v44  ;;  %v3185_v16 = vmul.f32 %v3121_v43, %v7381_v33  ;;  %v7401_v6 = vadd.f32 %v2988_v48, %v6258_v12  ;;  %v3588_v57 = vmul.f32 %v3524_v25, %v7323_v52 }
 0x3aa   :  { %v3592_v42 = vmul.f32 %v3528_v19, %v7337_v17  ;;  %4661 = vtanh.f32 %v3403_v47  ;;  %v7406_v62 = vadd.f32 %v2990_v36, %v6418_v39  ;;  %v7409_v53 = vmul.f32 %v3178_v20, %v7340_v38 }
 0x3ab   :  { %v4654_v11 = vpop.eup %4653  ;;  %v7412_v27 = vmul.f32 %v3181_v30, %v7343_v31  ;;  %v7415_v44 = vmul.f32 %v3182_v22, %v7346_v46  ;;  %4663 = vtanh.f32 %v3407_v8  ;;  %v3122_v17 = vmul.f32 0.044715, %v7393_v4 }
 0x3ac   :  { %v4656_v48 = vpop.eup %4655  ;;  %v3628_v43 = vpack.c.bf16 %v3592_v42, %v3588_v57  ;;  %v3523_v52 = vadd.f32 1.0, %v4654_v11  ;;  %v3286_v36 = vadd.f32 %v7274_v18, %v7219_v24  ;;  %v3083_v20 = vmul.f32 0.5, %v7162_v59 }
 0x3ad   :  { %v2998_v32 = vpop.f32.mrb[116].mxu1  ;;  %v3527_v61 = vadd.f32 1.0, %v4656_v48  ;;  %v3087_v21 = vmul.f32 0.5, %v7171_v1  ;;  %v3125_v30 = vmul.f32 0.044715, %v7401_v6  ;;  %v7424_v25 = vmul.f32 %v3185_v16, %v7381_v33 }
 0x3ae   :  { %v3000_v3 = vpop.f32.mrb[117].mxu1  ;;  %3727 = vmatprep.mubr.bf16.mxu0 %v3628_v43  ;;  %v3126_v22 = vmul.f32 0.044715, %v7406_v62  ;;  %v3290_v19 = vadd.f32 %v7277_v5, %v7226_v41  ;;  %v3350_v47 = vmul.f32 0.7978845, %v3286_v36  ;;  %v3587_v57 = vmul.f32 %v3523_v52, %v7353_v15 }
 0x3af   :  { %v3002_v18 = vpop.f32.mrb[118].mxu1  ;;  %v4658_v8 = vpop.eup %4657  ;;  %v3591_v59 = vmul.f32 %v3527_v61, %v7367_v49  ;;  %v7432_v1 = vadd.f32 %v2992_v40, %v6258_v12  ;;  %v3477_v42 = vadd.f32 1.0, %v7356_v55  ;;  %v3186_v48 = vmul.f32 %v3122_v17, %v7393_v4 }
 0x3b0   :  { %v3004_v11 = vpop.f32.mrb[119].mxu1  ;;  %v3532_v16 = vadd.f32 1.0, %v4658_v8  ;;  %v3354_v43 = vmul.f32 0.7978845, %v3290_v19  ;;  %4665 = vtanh.f32 %v3350_v47  ;;  %v7437_v36 = vmul.f32 0.5, %v7219_v24 }
 0x3b1   :  { %v4660_v45 = vpop.eup %4659  ;;  %v3627_v5 = vpack.c.bf16 %v3591_v59, %v3587_v57  ;;  %v3481_v15 = vadd.f32 1.0, %v7370_v10  ;;  %v7441_v49 = vadd.f32 %v2994_v35, %v6418_v39  ;;  %v3189_v52 = vmul.f32 %v3125_v30, %v7401_v6 }
 0x3b2   :  { %v3536_v40 = vadd.f32 1.0, %v4660_v45  ;;  %v3190_v55 = vmul.f32 %v3126_v22, %v7406_v62  ;;  %4667 = vtanh.f32 %v3354_v43  ;;  %v3129_v17 = vmul.f32 0.044715, %v7432_v1 }
 0x3b3   :  { %3728 = vmatmul.mubr.bf16.gmra.mrb[56].mxu0 %v3627_v5  ;;  %v7447_v61 = vmul.f32 %v3477_v42, %v7269_v54  ;;  %v7450_v24 = vmul.f32 %v3481_v15, %v7271_v0  ;;  %v7453_v10 = vadd.f32 %v2998_v32, %v6258_v12  ;;  %v3596_v45 = vmul.f32 %v3532_v16, %v7378_v56 }
 0x3b4   :  { %v4662_v35 = vpop.eup %4661  ;;  %v3600_v19 = vmul.f32 %v3536_v40, %v3088_v34  ;;  %v7457_v30 = vmul.f32 %v3186_v48, %v7393_v4  ;;  %v3034_v22 = vmul.f32 0.5, %v7226_v41  ;;  %v3130_v0 = vmul.f32 0.044715, %v7441_v49 }
 0x3b5   :  { %v3008_v47 = vpop.f32.mrb[120].mxu1  ;;  %v4664_v8 = vpop.eup %4663  ;;  %v3531_v57 = vadd.f32 1.0, %v4662_v35  ;;  %v7464_v32 = vadd.f32 %v3000_v3, %v6418_v39  ;;  %v3133_v34 = vmul.f32 0.044715, %v7453_v10  ;;  %v3294_v16 = vadd.f32 %v7315_v28, %v7252_v29 }
 0x3b6   :  { %v3010_v59 = vpop.f32.mrb[121].mxu1  ;;  %v3632_v42 = vpack.c.bf16 %v3600_v19, %v3596_v45  ;;  %v3535_v56 = vadd.f32 1.0, %v4664_v8  ;;  %v7470_v48 = vmul.f32 %v3189_v52, %v7401_v6  ;;  %v7473_v43 = vmul.f32 %v3190_v55, %v7406_v62 }
 0x3b7   :  { %v3012_v41 = vpop.f32.mrb[122].mxu1  ;;  %v3193_v5 = vmul.f32 %v3129_v17, %v7432_v1  ;;  %v3298_v3 = vadd.f32 %v7349_v7, %v7292_v51  ;;  %v3595_v40 = vmul.f32 %v3531_v57, %v3083_v20  ;;  %v3358_v45 = vmul.f32 0.7978845, %v3294_v16 }
 0x3b8   :  { %v3014_v15 = vpop.f32.mrb[123].mxu1  ;;  %3737 = vmatprep.mubr.bf16.mxu0 %v3632_v42  ;;  %v3599_v35 = vmul.f32 %v3535_v56, %v3087_v21  ;;  %v7479_v19 = vadd.f32 %v3002_v18, %v6258_v12  ;;  %v3194_v28 = vmul.f32 %v3130_v0, %v7441_v49  ;;  %v3134_v52 = vmul.f32 0.044715, %v7464_v32 }
 0x3b9   :  { %v7484_v55 = vmul.f32 0.5, %v7252_v29  ;;  %v3362_v8 = vmul.f32 0.7978845, %v3298_v3  ;;  %v3197_v7 = vmul.f32 %v3133_v34, %v7453_v10  ;;  %4669 = vtanh.f32 %v3358_v45 }
 0x3ba   :  { %v4666_v17 = vpop.eup %4665  ;;  %v3631_v54 = vpack.c.bf16 %v3599_v35, %v3595_v40  ;;  %v3137_v20 = vmul.f32 0.044715, %v7479_v19  ;;  %v3293_v18 = vadd.f32 %v7309_v26, %v7248_v63  ;;  %v3297_v57 = vadd.f32 %v7319_v58, %v7263_v13 }
 0x3bb   :  { %v3478_v21 = vadd.f32 1.0, %v4666_v17  ;;  %4671 = vtanh.f32 %v3362_v8  ;;  %v3042_v29 = vmul.f32 0.5, %v7292_v51  ;;  %v7494_v42 = vadd.f32 %v3004_v11, %v6418_v39 }
 0x3bc   :  { %v4668_v0 = vpop.eup %4667  ;;  %3738 = vmatmul.mubr.bf16.gmra.mrb[60].mxu0 %v3631_v54  ;;  %v7497_v56 = vadd.f32 %v3008_v47, %v6258_v12  ;;  %v7500_v34 = vadd.f32 %v3010_v59, %v6418_v39  ;;  %v7503_v26 = vmul.f32 %v3193_v5, %v7432_v1  ;;  %v3357_v40 = vmul.f32 0.7978845, %v3293_v18 }
 0x3bd   :  { %v3018_v16 = vpop.f32.mrb[124].mxu1  ;;  %v3482_v3 = vadd.f32 1.0, %v4668_v0  ;;  %v3361_v58 = vmul.f32 0.7978845, %v3297_v57  ;;  %v7506_v54 = vmul.f32 %v3194_v28, %v7441_v49  ;;  %v3198_v51 = vmul.f32 %v3134_v52, %v7464_v32 }
 0x3be   :  { %v3020_v35 = vpop.f32.mrb[125].mxu1  ;;  %v3201_v11 = vmul.f32 %v3137_v20, %v7479_v19  ;;  %v3138_v47 = vmul.f32 0.044715, %v7494_v42  ;;  %v3542_v59 = vmul.f32 %v3478_v21, %v7437_v36  ;;  %v7513_v8 = vmul.f32 %v3197_v7, %v7453_v10 }
 0x3bf   :  { %v3546_v45 = vmul.f32 %v3482_v3, %v3034_v22  ;;  %4673 = vtanh.f32 %v3357_v40  ;;  %v3022_v5 = vpop.f32.mrb[126].mxu1  ;;  %v3037_v17 = vmul.f32 0.5, %v7248_v63  ;;  %v3141_v28 = vmul.f32 0.044715, %v7497_v56 }
 0x3c0   :  { %4675 = vtanh.f32 %v3361_v58  ;;  %v3142_v18 = vmul.f32 0.044715, %v7500_v34  ;;  %v7518_v52 = vpop.f32.mrb[127].mxu1  ;;  %v3302_v57 = vadd.f32 %v7364_v50, %v7299_v9  ;;  %v3306_v36 = vadd.f32 %v7409_v53, %v7340_v38 }
 0x3c1   :  { %v3606_v20 = vpack.c.bf16 %v3546_v45, %v3542_v59  ;;  %v7525_v22 = vadd.f32 %v3012_v41, %v6258_v12  ;;  %v7528_v7 = vmul.f32 %v3198_v51, %v7464_v32  ;;  %v7531_v63 = vmul.f32 %v3201_v11, %v7479_v19 }
 0x3c2   :  { %v3041_v21 = vmul.f32 0.5, %v7263_v13  ;;  %v3202_v0 = vmul.f32 %v3138_v47, %v7494_v42  ;;  %v3366_v3 = vmul.f32 0.7978845, %v3302_v57  ;;  %v3370_v40 = vmul.f32 0.7978845, %v3306_v36 }
 0x3c3   :  { %3780 = vmatprep.mubr.bf16.mxu0 %v3606_v20  ;;  %v3145_v50 = vmul.f32 0.044715, %v7525_v22  ;;  %v3301_v53 = vadd.f32 %v7359_v37, %v7295_v14  ;;  %v4670_v41 = vpop.eup %4669  ;;  %v7937_v58 = vpack.c.bf16 %v7450_v24, %v7447_v61  ;;  %v3205_v51 = vmul.f32 %v3141_v28, %v7497_v56 }
 0x3c4   :  { %v3305_v13 = vadd.f32 %v7396_v60, %v7328_v23  ;;  %v7545_v11 = vadd.f32 %v3014_v15, %v6418_v39  ;;  %v7548_v47 = vadd.f32 %v3018_v16, %v6258_v12  ;;  %v3486_v45 = vadd.f32 1.0, %v4670_v41 }
 0x3c5   :  { %3781 = vmatmul.mubr.bf16.vlgmr.msra.gmra.mrb[32].mxu0 %v7937_v58  ;;  %v4672_v59 = vpop.eup %4671  ;;  %v3206_v37 = vmul.f32 %v3142_v18, %v7500_v34  ;;  %4677 = vtanh.f32 %v3366_v3  ;;  %v3365_v20 = vmul.f32 0.7978845, %v3301_v53  ;;  %v3046_v61 = vmul.f32 0.5, %v7299_v9 }
 0x3c6   :  { %v3490_v57 = vadd.f32 1.0, %v4672_v59  ;;  %4679 = vtanh.f32 %v3370_v40  ;;  %v3369_v24 = vmul.f32 0.7978845, %v3305_v13  ;;  %v3050_v28 = vmul.f32 0.5, %v7340_v38 }
 0x3c7   :  { %v3209_v60 = vmul.f32 %v3145_v50, %v7525_v22  ;;  %4681 = vtanh.f32 %v3365_v20  ;;  %v3146_v15 = vmul.f32 0.044715, %v7545_v11  ;;  %v3550_v16 = vmul.f32 %v3486_v45, %v7484_v55 }
 0x3c8   :  { %v3554_v36 = vmul.f32 %v3490_v57, %v3042_v29  ;;  %4683 = vtanh.f32 %v3369_v24  ;;  %v3149_v18 = vmul.f32 0.044715, %v7548_v47  ;;  %v7558_v53 = vmul.f32 %v3202_v0, %v7494_v42 }
 0x3c9   :  { %v4674_v3 = vpop.eup %4673  ;;  %v7561_v9 = vmul.f32 %v3205_v51, %v7497_v56  ;;  %v7564_v38 = vmul.f32 %v3206_v37, %v7500_v34  ;;  %v3310_v40 = vadd.f32 %v7415_v44, %v7346_v46  ;;  %v3045_v29 = vmul.f32 0.5, %v7295_v14 }
 0x3ca   :  { %v4676_v50 = vpop.eup %4675  ;;  %v3610_v41 = vpack.c.bf16 %v3554_v36, %v3550_v16  ;;  %v3485_v55 = vadd.f32 1.0, %v4674_v3  ;;  %v7570_v58 = vadd.f32 %v3020_v35, %v6418_v39  ;;  %v3049_v0 = vmul.f32 0.5, %v7328_v23 }
 0x3cb   :  { %v3489_v13 = vadd.f32 1.0, %v4676_v50  ;;  %v3314_v51 = vadd.f32 %v7457_v30, %v7393_v4  ;;  %v3374_v59 = vmul.f32 0.7978845, %v3310_v40  ;;  %v7576_v45 = vmul.f32 %v3209_v60, %v7525_v22 }
 0x3cc   :  { %3790 = vmatprep.mubr.bf16.mxu0 %v3610_v41  ;;  %v3210_v44 = vmul.f32 %v3146_v15, %v7545_v11  ;;  %v3213_v37 = vmul.f32 %v3149_v18, %v7548_v47  ;;  %v7581_v14 = vadd.f32 %v3022_v5, %v6258_v12  ;;  %v3549_v35 = vmul.f32 %v3485_v55, %v3037_v17 }
 0x3cd   :  { %v3553_v20 = vmul.f32 %v3489_v13, %v3041_v21  ;;  %v3378_v57 = vmul.f32 0.7978845, %v3314_v51  ;;  %4685 = vtanh.f32 %v3374_v59  ;;  %v3150_v23 = vmul.f32 0.044715, %v7570_v58 }
 0x3ce   :  { %v7585_v30 = vmul.f32 0.5, %v7346_v46  ;;  %v3309_v24 = vadd.f32 %v7412_v27, %v7343_v31  ;;  %v3313_v60 = vadd.f32 %v7424_v25, %v7381_v33  ;;  %v3153_v12 = vmul.f32 0.044715, %v7581_v14 }
 0x3cf   :  { %v4678_v15 = vpop.eup %4677  ;;  %v3609_v16 = vpack.c.bf16 %v3553_v20, %v3549_v35  ;;  %4687 = vtanh.f32 %v3378_v57  ;;  %v7594_v5 = vadd.f32 %v7518_v52, %v6418_v39  ;;  %v3058_v46 = vmul.f32 0.5, %v7393_v4 }
 0x3d0   :  { %v4680_v17 = vpop.eup %4679  ;;  %v3494_v21 = vadd.f32 1.0, %v4678_v15  ;;  %v3373_v36 = vmul.f32 0.7978845, %v3309_v24  ;;  %v3377_v18 = vmul.f32 0.7978845, %v3313_v60  ;;  %v7598_v25 = vmul.f32 %v3210_v44, %v7545_v11 }
 0x3d1   :  { %v4682_v3 = vpop.eup %4681  ;;  %3791 = vmatmul.mubr.bf16.gmra.mrb[36].mxu0 %v3609_v16  ;;  %v3498_v27 = vadd.f32 1.0, %v4680_v17  ;;  %v3154_v40 = vmul.f32 0.044715, %v7594_v5  ;;  %v3318_v50 = vadd.f32 %v7473_v43, %v7406_v62  ;;  %v7604_v52 = vmul.f32 %v3213_v37, %v7548_v47 }
 0x3d2   :  { %v4684_v41 = vpop.eup %4683  ;;  %v3493_v39 = vadd.f32 1.0, %v4682_v3  ;;  %v3214_v4 = vmul.f32 %v3150_v23, %v7570_v58  ;;  %4689 = vtanh.f32 %v3373_v36  ;;  %v3558_v55 = vmul.f32 %v3494_v21, %v3046_v61 }
 0x3d3   :  { %v3562_v13 = vmul.f32 %v3498_v27, %v3050_v28  ;;  %v3497_v51 = vadd.f32 1.0, %v4684_v41  ;;  %4691 = vtanh.f32 %v3377_v18  ;;  %v3217_v59 = vmul.f32 %v3153_v12, %v7581_v14  ;;  %v117_v41 = vld [vmem:[#allocation13] sm:$0x3] }
 0x3d4   :  { %v3053_v44 = vmul.f32 0.5, %v7343_v31  ;;  %v3322_v35 = vadd.f32 %v7506_v54, %v7441_v49  ;;  %v3382_v43 = vmul.f32 0.7978845, %v3318_v50  ;;  %v3557_v57 = vmul.f32 %v3493_v39, %v3045_v29 }
 0x3d5   :  { %v3614_v20 = vpack.c.bf16 %v3562_v13, %v3558_v55  ;;  %v3561_v24 = vmul.f32 %v3497_v51, %v3049_v0  ;;  %v3218_v37 = vmul.f32 %v3154_v40, %v7594_v5  ;;  %v3317_v61 = vadd.f32 %v7470_v48, %v7401_v6 }
 0x3d6   :  { %v3386_v60 = vmul.f32 0.7978845, %v3322_v35  ;;  %4693 = vtanh.f32 %v3382_v43  ;;  %v3321_v28 = vadd.f32 %v7503_v26, %v7432_v1  ;;  %v7617_v15 = vmul.f32 %v3214_v4, %v7570_v58 }
 0x3d7   :  { %v4686_v23 = vpop.eup %4685  ;;  %3800 = vmatprep.mubr.bf16.mxu0 %v3614_v20  ;;  %v3613_v31 = vpack.c.bf16 %v3561_v24, %v3557_v57  ;;  %v3057_v54 = vmul.f32 0.5, %v7381_v33  ;;  %v3062_v29 = vmul.f32 0.5, %v7406_v62  ;;  %v3381_v16 = vmul.f32 0.7978845, %v3317_v61  ;;  %v7938_v20 = vld [vmem:[#allocation46_spill] sm:$0xff] }
 0x3d8   :  { %v3502_v0 = vadd.f32 1.0, %v4686_v23  ;;  %4695 = vtanh.f32 %v3386_v60  ;;  %v3385_v12 = vmul.f32 0.7978845, %v3321_v28  ;;  %v7622_v48 = vmul.f32 %v3217_v59, %v7581_v14 }
 0x3d9   :  { %v4688_v17 = vpop.eup %4687  ;;  %3801 = vmatmul.mubr.bf16.gmra.mrb[40].mxu0 %v3613_v31  ;;  %v3066_v26 = vmul.f32 0.5, %v7441_v49  ;;  %v3326_v21 = vadd.f32 %v7528_v7, %v7464_v32  ;;  %v3330_v36 = vadd.f32 %v7558_v53, %v7494_v42  ;;  %v7630_v62 = vmul.f32 %v3218_v37, %v7594_v5 }
 0x3da   :  { %v3506_v33 = vadd.f32 1.0, %v4688_v17  ;;  %v7633_v18 = vmul.f32 0.5, %v7401_v6  ;;  %4697 = vtanh.f32 %v3381_v16  ;;  %v3325_v49 = vadd.f32 %v7513_v8, %v7453_v10 }
 0x3db   :  { %4699 = vtanh.f32 %v3385_v12  ;;  %v3390_v3 = vmul.f32 0.7978845, %v3326_v21  ;;  %v3394_v27 = vmul.f32 0.7978845, %v3330_v36  ;;  %v3566_v7 = vmul.f32 %v3502_v0, %v7585_v30 }
 0x3dc   :  { %v4690_v40 = vpop.eup %4689  ;;  %v3570_v50 = vmul.f32 %v3506_v33, %v3058_v46  ;;  %v7639_v53 = vmul.f32 0.5, %v7432_v1  ;;  %v3329_v39 = vadd.f32 %v7531_v63, %v7479_v19  ;;  %v3389_v55 = vmul.f32 0.7978845, %v3325_v49 }
 0x3dd   :  { %v4692_v6 = vpop.eup %4691  ;;  %v3501_v4 = vadd.f32 1.0, %v4690_v40  ;;  %4701 = vtanh.f32 %v3390_v3  ;;  %v3334_v13 = vadd.f32 %v7564_v38, %v7500_v34  ;;  %v7646_v30 = vrot.slane %v117_v41, %v7927_v2  ;;  %v4823_v40 = vld [vmem:[#allocation2 + $0x8] sm:$0xff] }
 0x3de   :  { %v3618_v51 = vpack.c.bf16 %v3570_v50, %v3566_v7  ;;  %v3505_v8 = vadd.f32 1.0, %v4692_v6  ;;  %4703 = vtanh.f32 %v3394_v27  ;;  %v3393_v59 = vmul.f32 0.7978845, %v3329_v39 }
 0x3df   :  { %4705 = vtanh.f32 %v3389_v55  ;;  %v3338_v1 = vadd.f32 %v7598_v25, %v7545_v11  ;;  %v3398_v46 = vmul.f32 0.7978845, %v3334_v13  ;;  %v3565_v35 = vmul.f32 %v3501_v4, %v3053_v44  ;;  %v4825_v13 = vld [vmem:[#allocation2 + $0x18] sm:$0xff] }
 0x3e0   :  { %v4694_v63 = vpop.eup %4693  ;;  %3810 = vmatprep.mubr.bf16.mxu0 %v3618_v51  ;;  %v3569_v43 = vmul.f32 %v3505_v8, %v3057_v54  ;;  %v7651_v57 = vrot.slane %v117_v41, %v7938_v20  ;;  %4707 = vtanh.f32 %v3393_v59  ;;  %v3333_v2 = vadd.f32 %v7561_v9, %v7497_v56 }
 0x3e1   :  { %v3510_v38 = vadd.f32 1.0, %v4694_v63  ;;  %v3402_v24 = vmul.f32 0.7978845, %v3338_v1  ;;  %4709 = vtanh.f32 %v3398_v46  ;;  %v3070_v25 = vmul.f32 0.5, %v7464_v32 }
 0x3e2   :  { %v4696_v37 = vpop.eup %4695  ;;  %v3617_v60 = vpack.c.bf16 %v3569_v43, %v3565_v35  ;;  %v3074_v28 = vmul.f32 0.5, %v7494_v42  ;;  %v3337_v44 = vadd.f32 %v7576_v45, %v7525_v22  ;;  %v3397_v17 = vmul.f32 0.7978845, %v3333_v2  ;;  %v4822_v45 = vld [vmem:[#allocation2] sm:$0xff] }
 0x3e3   :  { %v3514_v23 = vadd.f32 1.0, %v4696_v37  ;;  %v3574_v31 = vmul.f32 %v3510_v38, %v3062_v29  ;;  %4711 = vtanh.f32 %v3402_v24  ;;  %v3342_v32 = vadd.f32 %v7617_v15, %v7570_v58  ;;  %v4824_v15 = vld [vmem:[#allocation2 + $0x10] sm:$0xff] }
 0x3e4   :  { %v2290_v61 = vpop.f32.mrb[0].mxu0  ;;  %v4698_v16 = vpop.eup %4697  ;;  %3811 = vmatmul.mubr.bf16.gmra.mrb[44].mxu0 %v3617_v60  ;;  %v3401_v21 = vmul.f32 0.7978845, %v3337_v44  ;;  %4713 = vtanh.f32 %v3397_v17  ;;  %v3346_v59 = vadd.f32 %v7630_v62, %v7594_v5  ;;  %v3073_v63 = vmul.f32 0.5, %v7479_v19 }
 0x3e5   :  { %v4073_v54 = vadd.f32 %v2290_v61, %v7646_v30  ;;  %v2292_v0 = vpop.f32.mrb[1].mxu0  ;;  %v4700_v42 = vpop.eup %4699  ;;  %v3578_v36 = vmul.f32 %v3514_v23, %v3066_v26  ;;  %v3509_v33 = vadd.f32 1.0, %v4698_v16  ;;  %v3406_v35 = vmul.f32 0.7978845, %v3342_v32 }
 0x3e6   :  { %v4074_v9 = vadd.f32 %v2292_v0, %v7651_v57  ;;  %v2294_v12 = vpop.f32.mrb[2].mxu0  ;;  %v3513_v49 = vadd.f32 1.0, %v4700_v42  ;;  %4715 = vtanh.f32 %v3401_v21  ;;  %v3410_v24 = vmul.f32 0.7978845, %v3346_v59 }
 0x3e7   :  { %v2369_v3 = vadd.f32 %v4822_v45, %v4073_v54  ;;  %v4075_v29 = vadd.f32 %v2294_v12, %v7646_v30  ;;  %v2296_v27 = vpop.f32.mrb[3].mxu0  ;;  %v4702_v41 = vpop.eup %4701  ;;  %v3622_v39 = vpack.c.bf16 %v3578_v36, %v3574_v31  ;;  %v3573_v6 = vmul.f32 %v3509_v33, %v7633_v18 }
 0x3e8   :  { %v2370_v7 = vadd.f32 %v4823_v40, %v4074_v9  ;;  %v4076_v50 = vadd.f32 %v2296_v27, %v7651_v57  ;;  %v4704_v26 = vpop.eup %4703  ;;  %v3577_v55 = vmul.f32 %v3513_v49, %v7639_v53  ;;  %v3518_v8 = vadd.f32 1.0, %v4702_v41  ;;  %v4826_v27 = vld [vmem:[#allocation2 + $0x20] sm:$0xff] }
 0x3e9   :  { %2401 = vst [vmem:[#allocation14] sm:$0xff] %v2369_v3  ;;  %v2371_v4 = vadd.f32 %v4824_v15, %v4075_v29  ;;  %v4706_v1 = vpop.eup %4705  ;;  %3820 = vmatprep.mubr.bf16.mxu0 %v3622_v39  ;;  %v3522_v46 = vadd.f32 1.0, %v4704_v26  ;;  %v3069_v18 = vmul.f32 0.5, %v7453_v10  ;;  %4717 = vtanh.f32 %v3406_v35  ;;  %v4827_v39 = vld [vmem:[#allocation2 + $0x28] sm:$0xff] }
 0x3ea   :  { %2402 = vst [vmem:[#allocation14 + $0x8] sm:$0xff] %v2370_v7  ;;  %v2372_v51 = vadd.f32 %v4825_v13, %v4076_v50  ;;  %v4708_v43 = vpop.eup %4707  ;;  %v3621_v20 = vpack.c.bf16 %v3577_v55, %v3573_v6  ;;  %v3582_v53 = vmul.f32 %v3518_v8, %v3070_v25  ;;  %v3517_v38 = vadd.f32 1.0, %v4706_v1 }
 0x3eb   :  { %2403 = vst [vmem:[#allocation14 + $0x10] sm:$0xff] %v2371_v4  ;;  %v4710_v2 = vpop.eup %4709  ;;  %v3586_v37 = vmul.f32 %v3522_v46, %v3074_v28  ;;  %v3521_v60 = vadd.f32 1.0, %v4708_v43  ;;  %v3341_v62 = vadd.f32 %v7604_v52, %v7548_v47  ;;  %4719 = vtanh.f32 %v3410_v24 }
 0x3ec   :  { %2404 = vst [vmem:[#allocation14 + $0x18] sm:$0xff] %v2372_v51  ;;  %3821 = vmatmul.mubr.bf16.gmra.mrb[48].mxu0 %v3621_v20  ;;  %v3526_v61 = vadd.f32 1.0, %v4710_v2  ;;  %v3345_v10 = vadd.f32 %v7622_v48, %v7581_v14  ;;  %v3581_v23 = vmul.f32 %v3517_v38, %v3069_v18  ;;  %v3078_v54 = vmul.f32 0.5, %v7500_v34  ;;  %v4829_v51 = vld [vmem:[#allocation2 + $0x38] sm:$0xff] }
 0x3ed   :  { %v4712_v19 = vpop.eup %4711  ;;  %v3626_v44 = vpack.c.bf16 %v3586_v37, %v3582_v53  ;;  %v3585_v31 = vmul.f32 %v3521_v60, %v3073_v63  ;;  %v3405_v25 = vmul.f32 0.7978845, %v3341_v62  ;;  %v3082_v28 = vmul.f32 0.5, %v7545_v11 }
 0x3ee   :  { %v3530_v0 = vadd.f32 1.0, %v4712_v19  ;;  %v3409_v16 = vmul.f32 0.7978845, %v3345_v10  ;;  %v4714_v52 = vpop.eup %4713  ;;  %v3590_v12 = vmul.f32 %v3526_v61, %v3078_v54  ;;  %v3077_v32 = vmul.f32 0.5, %v7497_v56  ;;  %v4830_v61 = vld [vmem:[#allocation2 + $0x40] sm:$0xff] }
 0x3ef   :  { %3830 = vmatprep.mubr.bf16.mxu0 %v3626_v44  ;;  %v3625_v9 = vpack.c.bf16 %v3585_v31, %v3581_v23  ;;  %4721 = vtanh.f32 %v3405_v25  ;;  %v3525_v42 = vadd.f32 1.0, %v4714_v52  ;;  %v3081_v11 = vmul.f32 0.5, %v7525_v22  ;;  %v4828_v22 = vld [vmem:[#allocation2 + $0x30] sm:$0xff]  ;;  %v4831_v23 = vld [vmem:[#allocation2 + $0x48] sm:$0xff] }
 0x3f0   :  { %v3594_v17 = vmul.f32 %v3530_v0, %v3082_v28  ;;  %4723 = vtanh.f32 %v3409_v16  ;;  %v4716_v21 = vpop.eup %4715  ;;  %v3086_v59 = vmul.f32 0.5, %v7570_v58  ;;  %v3090_v1 = vmul.f32 0.5, %v7594_v5  ;;  %v4832_v28 = vld [vmem:[#allocation2 + $0x50] sm:$0xff]  ;;  %v4833_v16 = vld [vmem:[#allocation2 + $0x58] sm:$0xff] }
 0x3f1   :  { %v3529_v45 = vadd.f32 1.0, %v4716_v21  ;;  %v3589_v50 = vmul.f32 %v3525_v42, %v3077_v32  ;;  %v3085_v24 = vmul.f32 0.5, %v7548_v47  ;;  %v3089_v5 = vmul.f32 0.5, %v7581_v14  ;;  %v4834_v32 = vld [vmem:[#allocation2 + $0x60] sm:$0xff] }
 0x3f2   :  { %v3630_v34 = vpack.c.bf16 %v3594_v17, %v3590_v12 }
 0x3f3   :  { %v2300_v48 = vpop.f32.mrb[4].mxu0  ;;  %v3593_v41 = vmul.f32 %v3529_v45, %v3081_v11  ;;  %v4718_v56 = vpop.eup %4717 }
 0x3f4   :  { %v4077_v36 = vadd.f32 %v2300_v48, %v7646_v30  ;;  %v2302_v33 = vpop.f32.mrb[5].mxu0  ;;  %3831 = vmatmul.mubr.bf16.gmra.mrb[52].mxu0 %v3625_v9  ;;  %v3534_v13 = vadd.f32 1.0, %v4718_v56 }
 0x3f5   :  { %v4078_v3 = vadd.f32 %v2302_v33, %v7651_v57  ;;  %v2304_v29 = vpop.f32.mrb[6].mxu0  ;;  %3840 = vmatprep.mubr.bf16.mxu0 %v3630_v34  ;;  %v4720_v4 = vpop.eup %4719  ;;  %v3629_v55 = vpack.c.bf16 %v3593_v41, %v3589_v50  ;;  %v4835_v34 = vld [vmem:[#allocation2 + $0x68] sm:$0xff] }
 0x3f6   :  { %v2373_v49 = vadd.f32 %v4826_v27, %v4077_v36  ;;  %v4079_v40 = vadd.f32 %v2304_v29, %v7646_v30  ;;  %v2306_v7 = vpop.f32.mrb[7].mxu0  ;;  %v3538_v46 = vadd.f32 1.0, %v4720_v4  ;;  %v3598_v35 = vmul.f32 %v3534_v13, %v3086_v59  ;;  %v4837_v27 = vld [vmem:[#allocation2 + $0x78] sm:$0xff]  ;;  %v4840_v13 = vld [vmem:[#allocation2 + $0x90] sm:$0xff] }
 0x3f7   :  { %v2374_v6 = vadd.f32 %v4827_v39, %v4078_v3  ;;  %v4080_v15 = vadd.f32 %v2306_v7, %v7651_v57  ;;  %v4836_v3 = vld [vmem:[#allocation2 + $0x70] sm:$0xff]  ;;  %v4838_v39 = vld [vmem:[#allocation2 + $0x80] sm:$0xff] }
 0x3f8   :  { %2405 = vst [vmem:[#allocation14 + $0x20] sm:$0xff] %v2373_v49  ;;  %v2375_v26 = vadd.f32 %v4828_v22, %v4079_v40  ;;  %v3602_v43 = vmul.f32 %v3538_v46, %v3090_v1  ;;  %v4839_v22 = vld [vmem:[#allocation2 + $0x88] sm:$0xff] }
 0x3f9   :  { %2406 = vst [vmem:[#allocation14 + $0x28] sm:$0xff] %v2374_v6  ;;  %v2376_v8 = vadd.f32 %v4829_v51, %v4080_v15  ;;  %v4722_v18 = vpop.eup %4721 }
 0x3fa   :  { %2407 = vst [vmem:[#allocation14 + $0x30] sm:$0xff] %v2375_v26  ;;  %v4724_v20 = vpop.eup %4723  ;;  %v3533_v2 = vadd.f32 1.0, %v4722_v18  ;;  %v3634_v58 = vpack.c.bf16 %v3602_v43, %v3598_v35  ;;  %v4842_v43 = vld [vmem:[#allocation2 + $0xa0] sm:$0xff] }
 0x3fb   :  { %2408 = vst [vmem:[#allocation14 + $0x38] sm:$0xff] %v2376_v8  ;;  %v2310_v63 = vpop.f32.mrb[8].mxu0  ;;  %v3537_v62 = vadd.f32 1.0, %v4724_v20  ;;  %v4841_v8 = vld [vmem:[#allocation2 + $0x98] sm:$0xff] }
 0x3fc   :  { %v4081_v53 = vadd.f32 %v2310_v63, %v7646_v30  ;;  %v2312_v38 = vpop.f32.mrb[9].mxu0  ;;  %3841 = vmatmul.mubr.bf16.gmra.mrb[56].mxu0 %v3629_v55  ;;  %v3597_v47 = vmul.f32 %v3533_v2, %v3085_v24  ;;  %v4843_v24 = vld [vmem:[#allocation2 + $0xa8] sm:$0xff] }
 0x3fd   :  { %v4082_v37 = vadd.f32 %v2312_v38, %v7651_v57  ;;  %v2314_v60 = vpop.f32.mrb[10].mxu0  ;;  %3850 = vmatprep.mubr.bf16.mxu0 %v3634_v58  ;;  %v3601_v54 = vmul.f32 %v3537_v62, %v3089_v5  ;;  %v4845_v5 = vld [vmem:[#allocation2 + $0xb8] sm:$0xff] }
 0x3fe   :  { %v2377_v10 = vadd.f32 %v4830_v61, %v4081_v53  ;;  %v4083_v19 = vadd.f32 %v2314_v60, %v7646_v30  ;;  %v2316_v44 = vpop.f32.mrb[11].mxu0  ;;  %v4844_v60 = vld [vmem:[#allocation2 + $0xb0] sm:$0xff] }
 0x3ff   :  { %v2378_v31 = vadd.f32 %v4831_v23, %v4082_v37  ;;  %v4084_v25 = vadd.f32 %v2316_v44, %v7651_v57  ;;  %v3633_v9 = vpack.c.bf16 %v3601_v54, %v3597_v47 }
 0x400   :  { %2409 = vst [vmem:[#allocation14 + $0x40] sm:$0xff] %v2377_v10  ;;  %v2379_v0 = vadd.f32 %v4832_v28, %v4083_v19  ;;  %v4847_v28 = vld [vmem:[#allocation2 + $0xc8] sm:$0xff] }
 0x401   :  { %2410 = vst [vmem:[#allocation14 + $0x48] sm:$0xff] %v2378_v31  ;;  %v2380_v14 = vadd.f32 %v4833_v16, %v4084_v25  ;;  %v4846_v31 = vld [vmem:[#allocation2 + $0xc0] sm:$0xff] }
 0x402   :  { %2411 = vst [vmem:[#allocation14 + $0x50] sm:$0xff] %v2379_v0 }
 0x403   :  { %2412 = vst [vmem:[#allocation14 + $0x58] sm:$0xff] %v2380_v14  ;;  %v4848_v14 = vld [vmem:[#allocation2 + $0xd0] sm:$0xff] }
 0x404   :  { %3851 = vmatmul.mubr.bf16.gmra.mrb[60].mxu0 %v3633_v9 }
 0x406   :  { %v2320_v52 = vpop.f32.mrb[12].mxu0 }
 0x407   :  { %v4085_v12 = vadd.f32 %v2320_v52, %v7646_v30  ;;  %v2322_v17 = vpop.f32.mrb[13].mxu0  ;;  %v4849_v52 = vld [vmem:[#allocation2 + $0xd8] sm:$0xff] }
 0x408   :  { %v4086_v21 = vadd.f32 %v2322_v17, %v7651_v57  ;;  %v2324_v48 = vpop.f32.mrb[14].mxu0 }
 0x409   :  { %v2381_v42 = vadd.f32 %v4834_v32, %v4085_v12  ;;  %v4087_v36 = vadd.f32 %v2324_v48, %v7646_v30  ;;  %v2326_v33 = vpop.f32.mrb[15].mxu0 }
 0x40a   :  { %v2382_v11 = vadd.f32 %v4835_v34, %v4086_v21  ;;  %v4088_v45 = vadd.f32 %v2326_v33, %v7651_v57 }
 0x40b   :  { %2413 = vst [vmem:[#allocation14 + $0x60] sm:$0xff] %v2381_v42  ;;  %v2383_v29 = vadd.f32 %v4836_v3, %v4087_v36  ;;  %v4850_v36 = vld [vmem:[#allocation2 + $0xe0] sm:$0xff] }
 0x40c   :  { %2414 = vst [vmem:[#allocation14 + $0x68] sm:$0xff] %v2382_v11  ;;  %v2384_v49 = vadd.f32 %v4837_v27, %v4088_v45  ;;  %v4851_v45 = vld [vmem:[#allocation2 + $0xe8] sm:$0xff]  ;;  %v4852_v27 = vld [vmem:[#allocation2 + $0xf0] sm:$0xff] }
 0x40d   :  { %2415 = vst [vmem:[#allocation14 + $0x70] sm:$0xff] %v2383_v29 }
 0x40e   :  { %2416 = vst [vmem:[#allocation14 + $0x78] sm:$0xff] %v2384_v49  ;;  %v2330_v40 = vpop.f32.mrb[16].mxu0 }
 0x40f   :  { %v4089_v7 = vadd.f32 %v2330_v40, %v7646_v30  ;;  %v2332_v50 = vpop.f32.mrb[17].mxu0  ;;  %v4853_v40 = vld [vmem:[#allocation2 + $0xf8] sm:$0xff] }
 0x410   :  { %v4090_v41 = vadd.f32 %v2332_v50, %v7651_v57  ;;  %v2334_v56 = vpop.f32.mrb[18].mxu0 }
 0x411   :  { %v2385_v6 = vadd.f32 %v4838_v39, %v4089_v7  ;;  %v4091_v15 = vadd.f32 %v2334_v56, %v7646_v30  ;;  %v2336_v4 = vpop.f32.mrb[19].mxu0 }
 0x412   :  { %v2386_v26 = vadd.f32 %v4839_v22, %v4090_v41  ;;  %v4092_v55 = vadd.f32 %v2336_v4, %v7651_v57 }
 0x413   :  { %2417 = vst [vmem:[#allocation14 + $0x80] sm:$0xff] %v2385_v6  ;;  %v2387_v51 = vadd.f32 %v4840_v13, %v4091_v15  ;;  %v4854_v15 = vld [vmem:[#allocation2 + $0x100] sm:$0xff] }
 0x414   :  { %2418 = vst [vmem:[#allocation14 + $0x88] sm:$0xff] %v2386_v26  ;;  %v2388_v59 = vadd.f32 %v4841_v8, %v4092_v55  ;;  %v4855_v55 = vld [vmem:[#allocation2 + $0x108] sm:$0xff]  ;;  %v4856_v8 = vld [vmem:[#allocation2 + $0x110] sm:$0xff] }
 0x415   :  { %2419 = vst [vmem:[#allocation14 + $0x90] sm:$0xff] %v2387_v51 }
 0x416   :  { %2420 = vst [vmem:[#allocation14 + $0x98] sm:$0xff] %v2388_v59  ;;  %v2340_v1 = vpop.f32.mrb[20].mxu0 }
 0x417   :  { %v4093_v46 = vadd.f32 %v2340_v1, %v7646_v30  ;;  %v2342_v18 = vpop.f32.mrb[21].mxu0  ;;  %v4857_v1 = vld [vmem:[#allocation2 + $0x118] sm:$0xff] }
 0x418   :  { %v4094_v63 = vadd.f32 %v2342_v18, %v7651_v57  ;;  %v2344_v35 = vpop.f32.mrb[22].mxu0 }
 0x419   :  { %v2389_v20 = vadd.f32 %v4842_v43, %v4093_v46  ;;  %v4095_v53 = vadd.f32 %v2344_v35, %v7646_v30  ;;  %v2346_v38 = vpop.f32.mrb[23].mxu0 }
 0x41a   :  { %v2390_v2 = vadd.f32 %v4843_v24, %v4094_v63  ;;  %v4096_v37 = vadd.f32 %v2346_v38, %v7651_v57 }
 0x41b   :  { %2421 = vst [vmem:[#allocation14 + $0xa0] sm:$0xff] %v2389_v20  ;;  %v2391_v58 = vadd.f32 %v4844_v60, %v4095_v53  ;;  %v4858_v53 = vld [vmem:[#allocation2 + $0x120] sm:$0xff] }
 0x41c   :  { %2422 = vst [vmem:[#allocation14 + $0xa8] sm:$0xff] %v2390_v2  ;;  %v2392_v62 = vadd.f32 %v4845_v5, %v4096_v37  ;;  %v4859_v37 = vld [vmem:[#allocation2 + $0x128] sm:$0xff]  ;;  %v4860_v5 = vld [vmem:[#allocation2 + $0x130] sm:$0xff] }
 0x41d   :  { %2423 = vst [vmem:[#allocation14 + $0xb0] sm:$0xff] %v2391_v58 }
 0x41e   :  { %2424 = vst [vmem:[#allocation14 + $0xb8] sm:$0xff] %v2392_v62  ;;  %v2350_v61 = vpop.f32.mrb[24].mxu0 }
 0x41f   :  { %v4097_v10 = vadd.f32 %v2350_v61, %v7646_v30  ;;  %v2352_v19 = vpop.f32.mrb[25].mxu0  ;;  %v4861_v61 = vld [vmem:[#allocation2 + $0x138] sm:$0xff] }
 0x420   :  { %v4098_v44 = vadd.f32 %v2352_v19, %v7651_v57  ;;  %v2354_v23 = vpop.f32.mrb[26].mxu0 }
 0x421   :  { %v2393_v25 = vadd.f32 %v4846_v31, %v4097_v10  ;;  %v4099_v47 = vadd.f32 %v2354_v23, %v7646_v30  ;;  %v2356_v54 = vpop.f32.mrb[27].mxu0 }
 0x422   :  { %v2394_v0 = vadd.f32 %v4847_v28, %v4098_v44  ;;  %v4100_v16 = vadd.f32 %v2356_v54, %v7651_v57 }
 0x423   :  { %2425 = vst [vmem:[#allocation14 + $0xc0] sm:$0xff] %v2393_v25  ;;  %v2395_v9 = vadd.f32 %v4848_v14, %v4099_v47  ;;  %v4862_v47 = vld [vmem:[#allocation2 + $0x140] sm:$0xff] }
 0x424   :  { %2426 = vst [vmem:[#allocation14 + $0xc8] sm:$0xff] %v2394_v0  ;;  %v2396_v12 = vadd.f32 %v4849_v52, %v4100_v16  ;;  %v4863_v16 = vld [vmem:[#allocation2 + $0x148] sm:$0xff]  ;;  %v4864_v52 = vld [vmem:[#allocation2 + $0x150] sm:$0xff] }
 0x425   :  { %2427 = vst [vmem:[#allocation14 + $0xd0] sm:$0xff] %v2395_v9 }
 0x426   :  { %2428 = vst [vmem:[#allocation14 + $0xd8] sm:$0xff] %v2396_v12  ;;  %v2360_v17 = vpop.f32.mrb[28].mxu0 }
 0x427   :  { %v4101_v21 = vadd.f32 %v2360_v17, %v7646_v30  ;;  %v2362_v48 = vpop.f32.mrb[29].mxu0  ;;  %v4865_v17 = vld [vmem:[#allocation2 + $0x158] sm:$0xff] }
 0x428   :  { %v4102_v32 = vadd.f32 %v2362_v48, %v7651_v57  ;;  %v2364_v42 = vpop.f32.mrb[30].mxu0 }
 0x429   :  { %v2397_v33 = vadd.f32 %v4850_v36, %v4101_v21  ;;  %v4103_v34 = vadd.f32 %v2364_v42, %v7646_v30  ;;  %v2366_v11 = vpop.f32.mrb[31].mxu0 }
 0x42a   :  { %v2398_v3 = vadd.f32 %v4851_v45, %v4102_v32  ;;  %v4104_v29 = vadd.f32 %v2366_v11, %v7651_v57 }
 0x42b   :  { %2429 = vst [vmem:[#allocation14 + $0xe0] sm:$0xff] %v2397_v33  ;;  %v2399_v49 = vadd.f32 %v4852_v27, %v4103_v34  ;;  %v4866_v34 = vld [vmem:[#allocation2 + $0x160] sm:$0xff] }
 0x42c   :  { %2430 = vst [vmem:[#allocation14 + $0xe8] sm:$0xff] %v2398_v3  ;;  %v2400_v7 = vadd.f32 %v4853_v40, %v4104_v29  ;;  %v4867_v29 = vld [vmem:[#allocation2 + $0x168] sm:$0xff]  ;;  %v4868_v40 = vld [vmem:[#allocation2 + $0x170] sm:$0xff] }
 0x42d   :  { %2431 = vst [vmem:[#allocation14 + $0xf0] sm:$0xff] %v2399_v49 }
 0x42e   :  { %2432 = vst [vmem:[#allocation14 + $0xf8] sm:$0xff] %v2400_v7 }
 0x498   :  { %v3782_v50 = vpop.f32.mrb[32].mxu0 }
 0x499   :  { %v4105_v41 = vadd.f32 %v3782_v50, %v7646_v30  ;;  %v3784_v56 = vpop.f32.mrb[33].mxu0  ;;  %v4869_v50 = vld [vmem:[#allocation2 + $0x178] sm:$0xff] }
 0x49a   :  { %v4106_v39 = vadd.f32 %v3784_v56, %v7651_v57  ;;  %v3786_v6 = vpop.f32.mrb[34].mxu0 }
 0x49b   :  { %v3861_v4 = vadd.f32 %v4854_v15, %v4105_v41  ;;  %v4107_v22 = vadd.f32 %v3786_v6, %v7646_v30  ;;  %v3788_v26 = vpop.f32.mrb[35].mxu0 }
 0x49c   :  { %v3862_v13 = vadd.f32 %v4855_v55, %v4106_v39  ;;  %v4108_v51 = vadd.f32 %v3788_v26, %v7651_v57 }
 0x49d   :  { %3893 = vst [vmem:[#allocation14 + $0x100] sm:$0xff] %v3861_v4  ;;  %v3863_v59 = vadd.f32 %v4856_v8, %v4107_v22  ;;  %v4870_v22 = vld [vmem:[#allocation2 + $0x180] sm:$0xff] }
 0x49e   :  { %3894 = vst [vmem:[#allocation14 + $0x108] sm:$0xff] %v3862_v13  ;;  %v3864_v46 = vadd.f32 %v4857_v1, %v4108_v51  ;;  %v4871_v51 = vld [vmem:[#allocation2 + $0x188] sm:$0xff]  ;;  %v4872_v1 = vld [vmem:[#allocation2 + $0x190] sm:$0xff] }
 0x49f   :  { %3895 = vst [vmem:[#allocation14 + $0x110] sm:$0xff] %v3863_v59 }
 0x4a0   :  { %3896 = vst [vmem:[#allocation14 + $0x118] sm:$0xff] %v3864_v46 }
 0x4a4   :  { %v3792_v18 = vpop.f32.mrb[36].mxu0 }
 0x4a5   :  { %v4109_v63 = vadd.f32 %v3792_v18, %v7646_v30  ;;  %v3794_v35 = vpop.f32.mrb[37].mxu0  ;;  %v4873_v18 = vld [vmem:[#allocation2 + $0x198] sm:$0xff] }
 0x4a6   :  { %v4110_v43 = vadd.f32 %v3794_v35, %v7651_v57  ;;  %v3796_v20 = vpop.f32.mrb[38].mxu0 }
 0x4a7   :  { %v3865_v38 = vadd.f32 %v4858_v53, %v4109_v63  ;;  %v4111_v24 = vadd.f32 %v3796_v20, %v7646_v30  ;;  %v3798_v2 = vpop.f32.mrb[39].mxu0 }
 0x4a8   :  { %v3866_v60 = vadd.f32 %v4859_v37, %v4110_v43  ;;  %v4112_v58 = vadd.f32 %v3798_v2, %v7651_v57 }
 0x4a9   :  { %3897 = vst [vmem:[#allocation14 + $0x120] sm:$0xff] %v3865_v38  ;;  %v3867_v62 = vadd.f32 %v4860_v5, %v4111_v24  ;;  %v4874_v24 = vld [vmem:[#allocation2 + $0x1a0] sm:$0xff] }
 0x4aa   :  { %3898 = vst [vmem:[#allocation14 + $0x128] sm:$0xff] %v3866_v60  ;;  %v3868_v10 = vadd.f32 %v4861_v61, %v4112_v58  ;;  %v4875_v58 = vld [vmem:[#allocation2 + $0x1a8] sm:$0xff]  ;;  %v4876_v61 = vld [vmem:[#allocation2 + $0x1b0] sm:$0xff] }
 0x4ab   :  { %3899 = vst [vmem:[#allocation14 + $0x130] sm:$0xff] %v3867_v62 }
 0x4ac   :  { %3900 = vst [vmem:[#allocation14 + $0x138] sm:$0xff] %v3868_v10  ;;  %v3802_v19 = vpop.f32.mrb[40].mxu0 }
 0x4ad   :  { %v4113_v44 = vadd.f32 %v3802_v19, %v7646_v30  ;;  %v3804_v23 = vpop.f32.mrb[41].mxu0  ;;  %v4877_v19 = vld [vmem:[#allocation2 + $0x1b8] sm:$0xff] }
 0x4ae   :  { %v4114_v31 = vadd.f32 %v3804_v23, %v7651_v57  ;;  %v3806_v25 = vpop.f32.mrb[42].mxu0 }
 0x4af   :  { %v3869_v54 = vadd.f32 %v4862_v47, %v4113_v44  ;;  %v4115_v28 = vadd.f32 %v3806_v25, %v7646_v30  ;;  %v3808_v0 = vpop.f32.mrb[43].mxu0 }
 0x4b0   :  { %v3870_v14 = vadd.f32 %v4863_v16, %v4114_v31  ;;  %v4116_v9 = vadd.f32 %v3808_v0, %v7651_v57 }
 0x4b1   :  { %3901 = vst [vmem:[#allocation14 + $0x140] sm:$0xff] %v3869_v54  ;;  %v3871_v12 = vadd.f32 %v4864_v52, %v4115_v28  ;;  %v4878_v28 = vld [vmem:[#allocation2 + $0x1c0] sm:$0xff] }
 0x4b2   :  { %3902 = vst [vmem:[#allocation14 + $0x148] sm:$0xff] %v3870_v14  ;;  %v3872_v21 = vadd.f32 %v4865_v17, %v4116_v9  ;;  %v4879_v9 = vld [vmem:[#allocation2 + $0x1c8] sm:$0xff]  ;;  %v4880_v17 = vld [vmem:[#allocation2 + $0x1d0] sm:$0xff] }
 0x4b3   :  { %3903 = vst [vmem:[#allocation14 + $0x150] sm:$0xff] %v3871_v12 }
 0x4b4   :  { %3904 = vst [vmem:[#allocation14 + $0x158] sm:$0xff] %v3872_v21 }
 0x4b7   :  { %v3812_v48 = vpop.f32.mrb[44].mxu0 }
 0x4b8   :  { %v4117_v32 = vadd.f32 %v3812_v48, %v7646_v30  ;;  %v3814_v42 = vpop.f32.mrb[45].mxu0  ;;  %v4881_v48 = vld [vmem:[#allocation2 + $0x1d8] sm:$0xff] }
 0x4b9   :  { %v4118_v36 = vadd.f32 %v3814_v42, %v7651_v57  ;;  %v3816_v33 = vpop.f32.mrb[46].mxu0 }
 0x4ba   :  { %v3873_v11 = vadd.f32 %v4866_v34, %v4117_v32  ;;  %v4119_v45 = vadd.f32 %v3816_v33, %v7646_v30  ;;  %v3818_v3 = vpop.f32.mrb[47].mxu0 }
 0x4bb   :  { %v3874_v27 = vadd.f32 %v4867_v29, %v4118_v36  ;;  %v4120_v49 = vadd.f32 %v3818_v3, %v7651_v57 }
 0x4bc   :  { %3905 = vst [vmem:[#allocation14 + $0x160] sm:$0xff] %v3873_v11  ;;  %v3875_v7 = vadd.f32 %v4868_v40, %v4119_v45  ;;  %v4882_v45 = vld [vmem:[#allocation2 + $0x1e0] sm:$0xff] }
 0x4bd   :  { %3906 = vst [vmem:[#allocation14 + $0x168] sm:$0xff] %v3874_v27  ;;  %v3876_v41 = vadd.f32 %v4869_v50, %v4120_v49  ;;  %v4883_v49 = vld [vmem:[#allocation2 + $0x1e8] sm:$0xff]  ;;  %v4884_v50 = vld [vmem:[#allocation2 + $0x1f0] sm:$0xff] }
 0x4be   :  { %3907 = vst [vmem:[#allocation14 + $0x170] sm:$0xff] %v3875_v7 }
 0x4bf   :  { %3908 = vst [vmem:[#allocation14 + $0x178] sm:$0xff] %v3876_v41  ;;  %v3822_v56 = vpop.f32.mrb[48].mxu0 }
 0x4c0   :  { %v4121_v39 = vadd.f32 %v3822_v56, %v7646_v30  ;;  %v3824_v6 = vpop.f32.mrb[49].mxu0  ;;  %v4885_v56 = vld [vmem:[#allocation2 + $0x1f8] sm:$0xff] }
 0x4c1   :  { %v4122_v15 = vadd.f32 %v3824_v6, %v7651_v57  ;;  %v3826_v4 = vpop.f32.mrb[50].mxu0 }
 0x4c2   :  { %v3877_v26 = vadd.f32 %v4870_v22, %v4121_v39  ;;  %v4123_v55 = vadd.f32 %v3826_v4, %v7646_v30  ;;  %v3828_v13 = vpop.f32.mrb[51].mxu0 }
 0x4c3   :  { %v3878_v8 = vadd.f32 %v4871_v51, %v4122_v15  ;;  %v4124_v59 = vadd.f32 %v3828_v13, %v7651_v57 }
 0x4c4   :  { %3909 = vst [vmem:[#allocation14 + $0x180] sm:$0xff] %v3877_v26  ;;  %v3879_v46 = vadd.f32 %v4872_v1, %v4123_v55 }
 0x4c5   :  { %3910 = vst [vmem:[#allocation14 + $0x188] sm:$0xff] %v3878_v8  ;;  %v3880_v63 = vadd.f32 %v4873_v18, %v4124_v59 }
 0x4c6   :  { %3911 = vst [vmem:[#allocation14 + $0x190] sm:$0xff] %v3879_v46 }
 0x4c7   :  { %3912 = vst [vmem:[#allocation14 + $0x198] sm:$0xff] %v3880_v63  ;;  %v3832_v35 = vpop.f32.mrb[52].mxu0 }
 0x4c8   :  { %v4125_v43 = vadd.f32 %v3832_v35, %v7646_v30  ;;  %v3834_v20 = vpop.f32.mrb[53].mxu0 }
 0x4c9   :  { %v4126_v53 = vadd.f32 %v3834_v20, %v7651_v57  ;;  %v3836_v38 = vpop.f32.mrb[54].mxu0 }
 0x4ca   :  { %v3881_v2 = vadd.f32 %v4874_v24, %v4125_v43  ;;  %v4127_v37 = vadd.f32 %v3836_v38, %v7646_v30  ;;  %v3838_v60 = vpop.f32.mrb[55].mxu0 }
 0x4cb   :  { %v3882_v5 = vadd.f32 %v4875_v58, %v4126_v53  ;;  %v4128_v62 = vadd.f32 %v3838_v60, %v7651_v57 }
 0x4cc   :  { %3913 = vst [vmem:[#allocation14 + $0x1a0] sm:$0xff] %v3881_v2  ;;  %v3883_v10 = vadd.f32 %v4876_v61, %v4127_v37 }
 0x4cd   :  { %3914 = vst [vmem:[#allocation14 + $0x1a8] sm:$0xff] %v3882_v5  ;;  %v3884_v44 = vadd.f32 %v4877_v19, %v4128_v62 }
 0x4ce   :  { %3915 = vst [vmem:[#allocation14 + $0x1b0] sm:$0xff] %v3883_v10 }
 0x4cf   :  { %3916 = vst [vmem:[#allocation14 + $0x1b8] sm:$0xff] %v3884_v44  ;;  %v3842_v23 = vpop.f32.mrb[56].mxu0 }
 0x4d0   :  { %v4129_v31 = vadd.f32 %v3842_v23, %v7646_v30  ;;  %v3844_v25 = vpop.f32.mrb[57].mxu0 }
 0x4d1   :  { %v4130_v47 = vadd.f32 %v3844_v25, %v7651_v57  ;;  %v3846_v54 = vpop.f32.mrb[58].mxu0 }
 0x4d2   :  { %v3885_v0 = vadd.f32 %v4878_v28, %v4129_v31  ;;  %v4131_v16 = vadd.f32 %v3846_v54, %v7646_v30  ;;  %v3848_v14 = vpop.f32.mrb[59].mxu0 }
 0x4d3   :  { %v3886_v52 = vadd.f32 %v4879_v9, %v4130_v47  ;;  %v4132_v12 = vadd.f32 %v3848_v14, %v7651_v57 }
 0x4d4   :  { %3917 = vst [vmem:[#allocation14 + $0x1c0] sm:$0xff] %v3885_v0  ;;  %v3887_v21 = vadd.f32 %v4880_v17, %v4131_v16 }
 0x4d5   :  { %3918 = vst [vmem:[#allocation14 + $0x1c8] sm:$0xff] %v3886_v52  ;;  %v3888_v32 = vadd.f32 %v4881_v48, %v4132_v12 }
 0x4d6   :  { %3919 = vst [vmem:[#allocation14 + $0x1d0] sm:$0xff] %v3887_v21 }
 0x4d7   :  { %3920 = vst [vmem:[#allocation14 + $0x1d8] sm:$0xff] %v3888_v32  ;;  %v3852_v42 = vpop.f32.mrb[60].mxu0 }
 0x4d8   :  { %v4133_v36 = vadd.f32 %v3852_v42, %v7646_v30  ;;  %v3854_v33 = vpop.f32.mrb[61].mxu0 }
 0x4d9   :  { %v4134_v34 = vadd.f32 %v3854_v33, %v7651_v57  ;;  %v3856_v11 = vpop.f32.mrb[62].mxu0 }
 0x4da   :  { %v3889_v3 = vadd.f32 %v4882_v45, %v4133_v36  ;;  %v4135_v29 = vadd.f32 %v3856_v11, %v7646_v30  ;;  %v3858_v27 = vpop.f32.mrb[63].mxu0 }
 0x4db   :  { %v3890_v40 = vadd.f32 %v4883_v49, %v4134_v34  ;;  %v4136_v7 = vadd.f32 %v3858_v27, %v7651_v57 }
 0x4dc   :  { %3921 = vst [vmem:[#allocation14 + $0x1e0] sm:$0xff] %v3889_v3  ;;  %v3891_v41 = vadd.f32 %v4884_v50, %v4135_v29 }
 0x4dd   :  { %3922 = vst [vmem:[#allocation14 + $0x1e8] sm:$0xff] %v3890_v40  ;;  %v3892_v39 = vadd.f32 %v4885_v56, %v4136_v7 }
 0x4de   :  { %3923 = vst [vmem:[#allocation14 + $0x1f0] sm:$0xff] %v3891_v41 }
 0x4df   :  { %3924 = vst [vmem:[#allocation14 + $0x1f8] sm:$0xff] %v3892_v39 }
 0x4e0   :  { %5051 = shalt.err (!%p5048_p4)
}
 0x4e1   :  { %s5052_s17 = scalar_lea.hbm %s7765_s7, 8192 }
 0x4e2   :  { %p5053_p5 = scmp.ne.s32.totalorder %s7765_s7, %s5052_s17  ;;  %p5056_p6 = scmp.lt.u32.totalorder %s5052_s17, %s7765_s7 }
 0x4e4   :  { %p5058_p7 = pnand %p5056_p6, %p5053_p5 }
 0x4e6   :  { %5061 = shalt.err (!%p5058_p7)
}
 0x4e7   :  { %3936 = dma.vmem_to_hbm [thread:$0]  %s3931_s13, 8192, %s7765_s7, [#allocation4], %s5075_s24, %s5075_s24, %s5076_s25  }
 0x4e8   :  { %5070 = dma.done.wait [#allocation4], 8192  }
 0x4e9   :  { %5071 = vsyncadd [#allocation4], 4294959104 }
 0x4ea   :  { %3940 = vsyncpa [#allocation3], 1 }
 0x4eb   :  { %3941 = vsyncpa [#allocation6], 1 }
 0x4ec   :  { %3942 = vsyncpa [#allocation9], 1 }
 0x4ed   :  { %3943 = vsyncpa [#allocation12], 1 }
 0x4ee   :  { %3944 = vsyncpa [#allocation4], 1 }

</bundles_post_ra>
